<compile_context>
chip_gen: v6e
topology: v6e:2x2x1
jax: 0.10.0
libtpu: 0.0.40
codegen_flags: <defaults>
</compile_context>

<pallas_src>
import functools

import jax
import jax.numpy as jnp
import numpy as np
from jax import lax
from jax.experimental import pallas as pl
from jax.experimental.pallas import tpu as pltpu


def _round_up(x, m):
    return ((x + m - 1) // m) * m


# Large but finite sentinel: > any physical depth, well below bf16 max so the
# HIGHEST-precision bf16x3 split stays finite (no 0*inf = NaN in the one-hot
# matmul).
_DEPTH_SENTINEL = 1.0e30


# ----------------------------------------------------------------------------
# Kernels
# ----------------------------------------------------------------------------
def _novel_views_kernel(m_ref, k_ref, pts_ref, cls_ref, conf_ref, tdepth_ref,
                        out_ref, *, H, W, Hpad, Wpad, R, G, logit_thr,
                        set_conf):
    """One grid step = one (view, pixel-tile) pair; tile = R*128 pixels.

    Per pixel:
      p_in  = ((x,y,z,1) @ (w2c_in @ c2w_view).T)[:3] / w
      (u,v) = int((p_in @ K.T)[:2] / z_proj)            (trunc toward zero)
      project = in_bounds & (p_in.z > depth_table[v,u])  (mask folded as 1e30)
      out     = project & (classifier > logit(thr)) & (conf > set_conf)
    """
    view = pl.program_id(0)

    def m(i, j):  # row-major flattened per-view 4x4 transform, SMEM scalar
        return m_ref[view, 4 * i + j]

    def k(i, j):  # row-major flattened 3x3 intrinsics, SMEM scalar
        return k_ref[3 * i + j]

    x = pts_ref[0, 0]                      # (R, 128) f32
    y = pts_ref[0, 1]
    z = pts_ref[0, 2]
    cls = cls_ref[0].astype(jnp.float32)   # (R, 128)
    conf = conf_ref[0].astype(jnp.float32)

    # Homogeneous transform into the input camera frame (== p_h @ M.T).
    X = m(0, 0) * x + m(0, 1) * y + m(0, 2) * z + m(0, 3)
    Y = m(1, 0) * x + m(1, 1) * y + m(1, 2) * z + m(1, 3)
    Z = m(2, 0) * x + m(2, 1) * y + m(2, 2) * z + m(2, 3)
    Wh = m(3, 0) * x + m(3, 1) * y + m(3, 2) * z + m(3, 3)
    inv_Wh = 1.0 / Wh                      # one exact reciprocal, reused x3
    Xc = X * inv_Wh
    Yc = Y * inv_Wh
    Zc = Z * inv_Wh

    # Project with intrinsics (== p_in @ K.T).
    un = k(0, 0) * Xc + k(0, 1) * Yc + k(0, 2) * Zc
    vn = k(1, 0) * Xc + k(1, 1) * Yc + k(1, 2) * Zc
    wd = k(2, 0) * Xc + k(2, 1) * Yc + k(2, 2) * Zc
    inv_wd = 1.0 / wd                      # one exact reciprocal, reused x2
    u = (un * inv_wd).astype(jnp.int32)    # trunc toward zero == torch .int()
    v = (vn * inv_wd).astype(jnp.int32)

    valid = (u >= 0) & (u < W) & (v >= 0) & (v < H)
    pre_mask = (cls > logit_thr) & (conf > set_conf) & valid

    uc = jnp.clip(u, 0, W - 1)             # pad pixels may hold garbage ints;
    vc = jnp.clip(v, 0, H - 1)             # clipped + discarded by the slice.

    # Exact depth lookup at (v, u).  Column gather for G=8 rows at a time via a
    # single one-hot MXU matmul (f32 @ HIGHEST is exact for a 0/1 one-hot, so
    # Zc > depth is exact — do not lower the precision flag); row select per
    # 128-lane slice via VPU multiply + XLU sublane reduction.
    tdepth = tdepth_ref[...]               # (Hpad, Wpad) f32, mask folded
    iota_w = lax.broadcasted_iota(jnp.int32, (Wpad, 128), 0)
    iota_h = lax.broadcasted_iota(jnp.int32, (Hpad, 128), 0)

    gd_groups = []
    for g in range(R // G):
        r0 = g * G
        oh_u = jnp.concatenate(
            [(iota_w == uc[r0 + j:r0 + j + 1, :]).astype(jnp.float32)
             for j in range(G)], axis=1)                       # (Wpad, G*128)
        col_d = jnp.dot(tdepth, oh_u,
                        preferred_element_type=jnp.float32,
                        precision=lax.Precision.HIGHEST)       # (Hpad, G*128)
        rows = []
        for j in range(G):
            oh_v = (iota_h == vc[r0 + j:r0 + j + 1, :]).astype(jnp.float32)
            rows.append(jnp.sum(col_d[:, j * 128:(j + 1) * 128] * oh_v,
                                axis=0, keepdims=True))        # (1, 128)
        gd_groups.append(jnp.concatenate(rows, axis=0))        # (G, 128)
    g_depth = jnp.concatenate(gd_groups, axis=0)               # (R, 128)

    combined = pre_mask & (Zc > g_depth)
    out_ref[0] = combined.astype(jnp.uint8)                    # one full store


def _input_view_kernel(cls_ref, conf_ref, vm_ref, out_ref, *, logit_thr,
                       set_conf):
    pred = cls_ref[0].astype(jnp.float32) > logit_thr
    conf = conf_ref[0].astype(jnp.float32) > set_conf
    prev = vm_ref[0] != 0
    out_ref[0] = (pred & conf & prev).astype(jnp.uint8)


# ----------------------------------------------------------------------------
# Wrappers (glue: reshapes, matrix inversion, parameter plumbing)
# ----------------------------------------------------------------------------
def _compose_transforms(input_c2w, new_c2ws):
    """M_v = inv(input_c2w) @ new_c2w_v.  Shared by kernel wrapper & reference."""
    w2c = jnp.linalg.inv(input_c2w.astype(jnp.float32))
    return jnp.einsum('ij,vjk->vik', w2c, new_c2ws.astype(jnp.float32),
                      precision=lax.Precision.HIGHEST)


def post_process_novel_views(pointmaps, classifier, conf_pointmaps,
                             input_mask, input_depths, input_c2w, input_K,
                             new_c2ws, *, pred_mask_threshold=0.5,
                             set_conf=1.5, rows_per_tile=32, group_rows=8):
    """pointmaps (1,V,H,W,3); classifier/conf (1,V,H,W); mask/depth (H,W).

    Returns the (1,V,H,W) bool combined mask (batch['new_cams']['valid_masks']).
    """
    _, V, H, W, _ = pointmaps.shape
    N = H * W
    G = group_rows
    R = min(rows_per_tile, _round_up(pl.cdiv(N, 128), G))
    R = _round_up(max(R, G), G)
    tile = R * 128
    n_pad = _round_up(N, tile)
    n_rows = n_pad // 128
    n_tiles = n_pad // tile
    h_pad = _round_up(H, 8)
    w_pad = _round_up(W, 128)      # lane/MXU-K axis: keep 128-aligned

    # Per-view transform + intrinsics -> SMEM scalars.
    ms = _compose_transforms(input_c2w, new_c2ws)                  # (V,4,4) f32
    m_flat = ms.reshape(V, 16)
    k_flat = input_K.astype(jnp.float32).reshape(9)

    # Pointmaps as three lane-dense channels; classifier / conf stay in their
    # native dtype and only get the (free) reshape + tail pad.
    pts = jnp.transpose(pointmaps[0].astype(jnp.float32).reshape(V, N, 3),
                        (0, 2, 1))                                 # (V,3,N)
    pts = jnp.pad(pts, ((0, 0), (0, 0), (0, n_pad - N)))
    pts = pts.reshape(V, 3, n_rows, 128)

    def prep(a):
        a = a.reshape(V, N)
        return jnp.pad(a, ((0, 0), (0, n_pad - N))).reshape(V, n_rows, 128)

    cls = prep(classifier[0])
    conf = prep(conf_pointmaps[0])

    # Depth table with input_mask folded in as a large *finite* sentinel.
    depth = jnp.where(input_mask, input_depths.astype(jnp.float32),
                      jnp.float32(_DEPTH_SENTINEL))
    table_depth = jnp.full((h_pad, w_pad), _DEPTH_SENTINEL, jnp.float32)
    table_depth = table_depth.at[:H, :W].set(depth)

    logit_thr = float(np.log(pred_mask_threshold / (1.0 - pred_mask_threshold)))
    kernel = functools.partial(
        _novel_views_kernel, H=H, W=W, Hpad=h_pad, Wpad=w_pad, R=R, G=G,
        logit_thr=logit_thr, set_conf=float(set_conf))

    out = pl.pallas_call(
        kernel,
        out_shape=jax.ShapeDtypeStruct((V, n_rows, 128), jnp.uint8),
        grid_spec=pltpu.PrefetchScalarGridSpec(
            num_scalar_prefetch=0,
            grid=(V, n_tiles),
            in_specs=[
                pl.BlockSpec(memory_space=pltpu.MemorySpace.SMEM),   # m_flat
                pl.BlockSpec(memory_space=pltpu.MemorySpace.SMEM),   # k_flat
                pl.BlockSpec((1, 3, R, 128), lambda v, t: (v, 0, t, 0)),
                pl.BlockSpec((1, R, 128), lambda v, t: (v, t, 0)),   # classifier
                pl.BlockSpec((1, R, 128), lambda v, t: (v, t, 0)),   # conf
                pl.BlockSpec((h_pad, w_pad), lambda v, t: (0, 0)),   # depth tbl
            ],
            out_specs=pl.BlockSpec((1, R, 128), lambda v, t: (v, t, 0))),
        compiler_params=pltpu.CompilerParams(
            dimension_semantics=("parallel", "parallel"),
            vmem_limit_bytes=48 * 1024 * 1024),   # headroom on v7x's 64 MiB
    )(m_flat, k_flat, pts, cls, conf, table_depth)

    out = out.reshape(V, n_pad)[:, :N].reshape(1, V, H, W)
    return out != 0


def post_process_input_view(classifier, conf_pointmaps, valid_masks, *,
                            pred_mask_threshold=0.5, set_conf=1.5,
                            rows_per_tile=256):
    """mode='input_view': conf & previous_valid & pred, all elementwise."""
    _, V, H, W = classifier.shape
    N = H * W
    R = min(rows_per_tile, _round_up(pl.cdiv(N, 128), 8))
    R = _round_up(max(R, 8), 8)
    tile = R * 128
    n_pad = _round_up(N, tile)
    n_rows = n_pad // 128
    n_tiles = n_pad // tile

    def prep(a):
        a = a.reshape(V, N)
        return jnp.pad(a, ((0, 0), (0, n_pad - N))).reshape(V, n_rows, 128)

    cls = prep(classifier[0])                       # native dtype
    conf = prep(conf_pointmaps[0])                  # native dtype
    vm = prep(valid_masks[0].astype(jnp.uint8))     # 1 byte / pixel

    logit_thr = float(np.log(pred_mask_threshold / (1.0 - pred_mask_threshold)))
    kernel = functools.partial(_input_view_kernel, logit_thr=logit_thr,
                               set_conf=float(set_conf))
    spec = pl.BlockSpec((1, R, 128), lambda v, t: (v, t, 0))
    out = pl.pallas_call(
        kernel,
        out_shape=jax.ShapeDtypeStruct((V, n_rows, 128), jnp.uint8),
        grid_spec=pltpu.PrefetchScalarGridSpec(
            num_scalar_prefetch=0,
            grid=(V, n_tiles),
            in_specs=[spec, spec, spec],
            out_specs=spec),
        compiler_params=pltpu.CompilerParams(
            dimension_semantics=("parallel", "parallel"),
            vmem_limit_bytes=48 * 1024 * 1024),
    )(cls, conf, vm)

    out = out.reshape(V, n_pad)[:, :N].reshape(1, V, H, W)
    return out != 0


# ----------------------------------------------------------------------------
# Pure-JAX references (mirror the torch module; same monotone-equivalent
# logit threshold and reciprocal-multiply refactoring as the kernel, so the
# comparison is bit-exact -- differences vs. the literal torch ops are <=1 ulp
# and can only affect razor-edge pixels).
# ----------------------------------------------------------------------------
def reference_novel_views(pointmaps, classifier, conf_pointmaps, input_mask,
                          input_depths, input_c2w, input_K, new_c2ws, *,
                          pred_mask_threshold=0.5, set_conf=1.5):
    _, V, H, W, _ = pointmaps.shape
    ms = _compose_transforms(input_c2w, new_c2ws)            # (V,4,4)
    pm = pointmaps[0].astype(jnp.float32)                    # (V,H,W,3)
    x, y, z = pm[..., 0], pm[..., 1], pm[..., 2]

    def m(i, j):
        return ms[:, i, j][:, None, None]

    X = m(0, 0) * x + m(0, 1) * y + m(0, 2) * z + m(0, 3)
    Y = m(1, 0) * x + m(1, 1) * y + m(1, 2) * z + m(1, 3)
    Z = m(2, 0) * x + m(2, 1) * y + m(2, 2) * z + m(2, 3)
    Wh = m(3, 0) * x + m(3, 1) * y + m(3, 2) * z + m(3, 3)
    inv_Wh = 1.0 / Wh
    Xc, Yc, Zc = X * inv_Wh, Y * inv_Wh, Z * inv_Wh

    K = input_K.astype(jnp.float32)
    un = K[0, 0] * Xc + K[0, 1] * Yc + K[0, 2] * Zc
    vn = K[1, 0] * Xc + K[1, 1] * Yc + K[1, 2] * Zc
    wd = K[2, 0] * Xc + K[2, 1] * Yc + K[2, 2] * Zc
    inv_wd = 1.0 / wd
    u = (un * inv_wd).astype(jnp.int32)
    vv = (vn * inv_wd).astype(jnp.int32)

    valid = (u >= 0) & (u < W) & (vv >= 0) & (vv < H)
    uc = jnp.clip(u, 0, W - 1)
    vc = jnp.clip(vv, 0, H - 1)
    g_mask = input_mask[vc, uc]
    g_depth = input_depths.astype(jnp.float32)[vc, uc]
    project = valid & g_mask & (Zc > g_depth)

    logit_thr = float(np.log(pred_mask_threshold / (1.0 - pred_mask_threshold)))
    pred = classifier[0].astype(jnp.float32) > logit_thr
    conf = conf_pointmaps[0].astype(jnp.float32) > float(set_conf)
    return (project & pred & conf).reshape(1, V, H, W)


def reference_input_view(classifier, conf_pointmaps, valid_masks, *,
                         pred_mask_threshold=0.5, set_conf=1.5):
    logit_thr = float(np.log(pred_mask_threshold / (1.0 - pred_mask_threshold)))
    pred = classifier.astype(jnp.float32) > logit_thr
    conf = conf_pointmaps.astype(jnp.float32) > float(set_conf)
    return conf & valid_masks & pred


# ----------------------------------------------------------------------------
if __name__ == "__main__":
    V, H, W = 2, 16, 16
    key = jax.random.PRNGKey(0)
    k1, k2, k3, k4, k5, k6 = jax.random.split(key, 6)

    xy = jax.random.uniform(k1, (1, V, H, W, 2), minval=-1.0, maxval=1.0)
    zz = jax.random.uniform(k2, (1, V, H, W, 1), minval=1.0, maxval=5.0)
    pointmaps = jnp.concatenate([xy, zz], axis=-1).astype(jnp.float32)

    classifier = jax.random.normal(k3, (1, V, H, W), jnp.float32)
    conf_pointmaps = jax.random.uniform(k4, (1, V, H, W),
                                        minval=0.0, maxval=3.0)
    input_mask = jax.random.uniform(k5, (H, W)) > 0.3
    input_depths = jax.random.uniform(k6, (H, W), minval=0.5, maxval=4.0)

    input_c2w = jnp.eye(4, dtype=jnp.float32).at[:3, 3].set(
        jnp.array([0.1, -0.05, 0.2], jnp.float32))
    input_K = jnp.array([[20.0, 0.0, 8.0],
                         [0.0, 20.0, 8.0],
                         [0.0, 0.0, 1.0]], jnp.float32)

    def rot_y(a):
        c, s = np.cos(a), np.sin(a)
        rm = np.eye(4, dtype=np.float32)
        rm[0, 0], rm[0, 2], rm[2, 0], rm[2, 2] = c, s, -s, c
        return rm

    new_c2ws = []
    for v in range(V):
        T = rot_y(0.1 * (v + 1))
        T[:3, 3] = np.array([0.2 * v, 0.05, 0.1 * v], np.float32)
        new_c2ws.append(T)
    new_c2ws = jnp.asarray(np.stack(new_c2ws))

    params = dict(pred_mask_threshold=0.5, set_conf=1.5)

    # mode='novel_views'
    combined = post_process_novel_views(
        pointmaps, classifier, conf_pointmaps, input_mask, input_depths,
        input_c2w, input_K, new_c2ws, **params)
    combined = jax.block_until_ready(combined)

    ref = reference_novel_views(
        pointmaps, classifier, conf_pointmaps, input_mask, input_depths,
        input_c2w, input_K, new_c2ws, **params)
    ref = jax.block_until_ready(ref)
    np.testing.assert_array_equal(np.asarray(combined), np.asarray(ref))

    # mode='input_view' (uses the novel-view output as the previous valid mask)
    iv = post_process_input_view(classifier, conf_pointmaps, combined, **params)
    iv = jax.block_until_ready(iv)
    iv_ref = jax.block_until_ready(
        reference_input_view(classifier, conf_pointmaps, combined, **params))
    np.testing.assert_array_equal(np.asarray(iv), np.asarray(iv_ref))

    # TODO(synk): no_input_mask / no_pred_mask / percentile conf_dist modes are
    # config branches of the module and are not exercised here (defaults only).
    print("KERNEL_OK")
</pallas_src>

<mosaic_0001>
module attributes {stable_mosaic.version = 11 : i64} {
  func.func @_novel_views_kernel(%arg0: i32, %arg1: i32, %arg2: memref<2x16xf32, #tpu.memory_space<smem>>, %arg3: memref<9xf32, #tpu.memory_space<smem>>, %arg4: memref<1x3x8x128xf32, #tpu.memory_space<vmem>>, %arg5: memref<1x8x128xf32, #tpu.memory_space<vmem>>, %arg6: memref<1x8x128xf32, #tpu.memory_space<vmem>>, %arg7: memref<16x128xf32, #tpu.memory_space<vmem>>, %arg8: memref<1x8x128xi8, #tpu.memory_space<vmem>>) attributes {dimension_semantics = [#tpu.dimension_semantics<parallel>, #tpu.dimension_semantics<parallel>], iteration_bounds = array<i64: 2, 1>, scalar_prefetch = 0 : i64, scratch_operands = 0 : i64, tpu.core_type = #tpu.core_type<tc>, window_params = [{transform_indices = @transform_0, window_bounds = array<i64: 2, 16>}, {transform_indices = @transform_1, window_bounds = array<i64: 9>}, {transform_indices = @transform_2, window_bounds = array<i64: 1, 3, 8, 128>}, {transform_indices = @transform_3, window_bounds = array<i64: 1, 8, 128>}, {transform_indices = @transform_4, window_bounds = array<i64: 1, 8, 128>}, {pipeline_mode = #tpu.pipeline_mode<synchronous>, transform_indices = @transform_5, window_bounds = array<i64: 16, 128>}, {transform_indices = @transform_6, window_bounds = array<i64: 1, 8, 128>}]} {
    %c0 = arith.constant 0 : index
    %c0_0 = arith.constant 0 : index
    %c0_1 = arith.constant 0 : index
    %c0_2 = arith.constant 0 : index
    %0 = vector.load %arg4[%c0, %c0_0, %c0_1, %c0_2] : memref<1x3x8x128xf32, #tpu.memory_space<vmem>>, vector<1x1x8x128xf32>
    %1 = vector.shape_cast %0 : vector<1x1x8x128xf32> to vector<8x128xf32>
    %c0_3 = arith.constant 0 : index
    %c1 = arith.constant 1 : index
    %c0_4 = arith.constant 0 : index
    %c0_5 = arith.constant 0 : index
    %2 = vector.load %arg4[%c0_3, %c1, %c0_4, %c0_5] : memref<1x3x8x128xf32, #tpu.memory_space<vmem>>, vector<1x1x8x128xf32>
    %3 = vector.shape_cast %2 : vector<1x1x8x128xf32> to vector<8x128xf32>
    %c0_6 = arith.constant 0 : index
    %c2 = arith.constant 2 : index
    %c0_7 = arith.constant 0 : index
    %c0_8 = arith.constant 0 : index
    %4 = vector.load %arg4[%c0_6, %c2, %c0_7, %c0_8] : memref<1x3x8x128xf32, #tpu.memory_space<vmem>>, vector<1x1x8x128xf32>
    %5 = vector.shape_cast %4 : vector<1x1x8x128xf32> to vector<8x128xf32>
    %c0_9 = arith.constant 0 : index
    %c0_10 = arith.constant 0 : index
    %c0_11 = arith.constant 0 : index
    %6 = vector.load %arg5[%c0_9, %c0_10, %c0_11] : memref<1x8x128xf32, #tpu.memory_space<vmem>>, vector<1x8x128xf32>
    %7 = vector.shape_cast %6 : vector<1x8x128xf32> to vector<8x128xf32>
    %c0_12 = arith.constant 0 : index
    %c0_13 = arith.constant 0 : index
    %c0_14 = arith.constant 0 : index
    %8 = vector.load %arg6[%c0_12, %c0_13, %c0_14] : memref<1x8x128xf32, #tpu.memory_space<vmem>>, vector<1x8x128xf32>
    %9 = vector.shape_cast %8 : vector<1x8x128xf32> to vector<8x128xf32>
    %10 = arith.index_cast %arg0 : i32 to index
    %c0_15 = arith.constant 0 : index
    %11 = memref.load %arg2[%10, %c0_15] : memref<2x16xf32, #tpu.memory_space<smem>>
    %12 = vector.broadcast %11 : f32 to vector<8x128xf32>
    %13 = arith.mulf %12, %1 : vector<8x128xf32>
    %14 = arith.index_cast %arg0 : i32 to index
    %c1_16 = arith.constant 1 : index
    %15 = memref.load %arg2[%14, %c1_16] : memref<2x16xf32, #tpu.memory_space<smem>>
    %16 = vector.broadcast %15 : f32 to vector<8x128xf32>
    %17 = arith.mulf %16, %3 : vector<8x128xf32>
    %18 = arith.addf %13, %17 : vector<8x128xf32>
    %19 = arith.index_cast %arg0 : i32 to index
    %c2_17 = arith.constant 2 : index
    %20 = memref.load %arg2[%19, %c2_17] : memref<2x16xf32, #tpu.memory_space<smem>>
    %21 = vector.broadcast %20 : f32 to vector<8x128xf32>
    %22 = arith.mulf %21, %5 : vector<8x128xf32>
    %23 = arith.addf %18, %22 : vector<8x128xf32>
    %24 = arith.index_cast %arg0 : i32 to index
    %c3 = arith.constant 3 : index
    %25 = memref.load %arg2[%24, %c3] : memref<2x16xf32, #tpu.memory_space<smem>>
    %26 = vector.broadcast %25 : f32 to vector<8x128xf32>
    %27 = arith.addf %23, %26 : vector<8x128xf32>
    %28 = arith.index_cast %arg0 : i32 to index
    %c4 = arith.constant 4 : index
    %29 = memref.load %arg2[%28, %c4] : memref<2x16xf32, #tpu.memory_space<smem>>
    %30 = vector.broadcast %29 : f32 to vector<8x128xf32>
    %31 = arith.mulf %30, %1 : vector<8x128xf32>
    %32 = arith.index_cast %arg0 : i32 to index
    %c5 = arith.constant 5 : index
    %33 = memref.load %arg2[%32, %c5] : memref<2x16xf32, #tpu.memory_space<smem>>
    %34 = vector.broadcast %33 : f32 to vector<8x128xf32>
    %35 = arith.mulf %34, %3 : vector<8x128xf32>
    %36 = arith.addf %31, %35 : vector<8x128xf32>
    %37 = arith.index_cast %arg0 : i32 to index
    %c6 = arith.constant 6 : index
    %38 = memref.load %arg2[%37, %c6] : memref<2x16xf32, #tpu.memory_space<smem>>
    %39 = vector.broadcast %38 : f32 to vector<8x128xf32>
    %40 = arith.mulf %39, %5 : vector<8x128xf32>
    %41 = arith.addf %36, %40 : vector<8x128xf32>
    %42 = arith.index_cast %arg0 : i32 to index
    %c7 = arith.constant 7 : index
    %43 = memref.load %arg2[%42, %c7] : memref<2x16xf32, #tpu.memory_space<smem>>
    %44 = vector.broadcast %43 : f32 to vector<8x128xf32>
    %45 = arith.addf %41, %44 : vector<8x128xf32>
    %46 = arith.index_cast %arg0 : i32 to index
    %c8 = arith.constant 8 : index
    %47 = memref.load %arg2[%46, %c8] : memref<2x16xf32, #tpu.memory_space<smem>>
    %48 = vector.broadcast %47 : f32 to vector<8x128xf32>
    %49 = arith.mulf %48, %1 : vector<8x128xf32>
    %50 = arith.index_cast %arg0 : i32 to index
    %c9 = arith.constant 9 : index
    %51 = memref.load %arg2[%50, %c9] : memref<2x16xf32, #tpu.memory_space<smem>>
    %52 = vector.broadcast %51 : f32 to vector<8x128xf32>
    %53 = arith.mulf %52, %3 : vector<8x128xf32>
    %54 = arith.addf %49, %53 : vector<8x128xf32>
    %55 = arith.index_cast %arg0 : i32 to index
    %c10 = arith.constant 10 : index
    %56 = memref.load %arg2[%55, %c10] : memref<2x16xf32, #tpu.memory_space<smem>>
    %57 = vector.broadcast %56 : f32 to vector<8x128xf32>
    %58 = arith.mulf %57, %5 : vector<8x128xf32>
    %59 = arith.addf %54, %58 : vector<8x128xf32>
    %60 = arith.index_cast %arg0 : i32 to index
    %c11 = arith.constant 11 : index
    %61 = memref.load %arg2[%60, %c11] : memref<2x16xf32, #tpu.memory_space<smem>>
    %62 = vector.broadcast %61 : f32 to vector<8x128xf32>
    %63 = arith.addf %59, %62 : vector<8x128xf32>
    %64 = arith.index_cast %arg0 : i32 to index
    %c12 = arith.constant 12 : index
    %65 = memref.load %arg2[%64, %c12] : memref<2x16xf32, #tpu.memory_space<smem>>
    %66 = vector.broadcast %65 : f32 to vector<8x128xf32>
    %67 = arith.mulf %66, %1 : vector<8x128xf32>
    %68 = arith.index_cast %arg0 : i32 to index
    %c13 = arith.constant 13 : index
    %69 = memref.load %arg2[%68, %c13] : memref<2x16xf32, #tpu.memory_space<smem>>
    %70 = vector.broadcast %69 : f32 to vector<8x128xf32>
    %71 = arith.mulf %70, %3 : vector<8x128xf32>
    %72 = arith.addf %67, %71 : vector<8x128xf32>
    %73 = arith.index_cast %arg0 : i32 to index
    %c14 = arith.constant 14 : index
    %74 = memref.load %arg2[%73, %c14] : memref<2x16xf32, #tpu.memory_space<smem>>
    %75 = vector.broadcast %74 : f32 to vector<8x128xf32>
    %76 = arith.mulf %75, %5 : vector<8x128xf32>
    %77 = arith.addf %72, %76 : vector<8x128xf32>
    %78 = arith.index_cast %arg0 : i32 to index
    %c15 = arith.constant 15 : index
    %79 = memref.load %arg2[%78, %c15] : memref<2x16xf32, #tpu.memory_space<smem>>
    %80 = vector.broadcast %79 : f32 to vector<8x128xf32>
    %81 = arith.addf %77, %80 : vector<8x128xf32>
    %cst = arith.constant 1.000000e+00 : f32
    %82 = vector.broadcast %cst : f32 to vector<8x128xf32>
    %83 = arith.divf %82, %81 : vector<8x128xf32>
    %84 = arith.mulf %27, %83 : vector<8x128xf32>
    %85 = arith.mulf %45, %83 : vector<8x128xf32>
    %86 = arith.mulf %63, %83 : vector<8x128xf32>
    %c0_18 = arith.constant 0 : index
    %87 = memref.load %arg3[%c0_18] : memref<9xf32, #tpu.memory_space<smem>>
    %88 = vector.broadcast %87 : f32 to vector<8x128xf32>
    %89 = arith.mulf %88, %84 : vector<8x128xf32>
    %c1_19 = arith.constant 1 : index
    %90 = memref.load %arg3[%c1_19] : memref<9xf32, #tpu.memory_space<smem>>
    %91 = vector.broadcast %90 : f32 to vector<8x128xf32>
    %92 = arith.mulf %91, %85 : vector<8x128xf32>
    %93 = arith.addf %89, %92 : vector<8x128xf32>
    %c2_20 = arith.constant 2 : index
    %94 = memref.load %arg3[%c2_20] : memref<9xf32, #tpu.memory_space<smem>>
    %95 = vector.broadcast %94 : f32 to vector<8x128xf32>
    %96 = arith.mulf %95, %86 : vector<8x128xf32>
    %97 = arith.addf %93, %96 : vector<8x128xf32>
    %c3_21 = arith.constant 3 : index
    %98 = memref.load %arg3[%c3_21] : memref<9xf32, #tpu.memory_space<smem>>
    %99 = vector.broadcast %98 : f32 to vector<8x128xf32>
    %100 = arith.mulf %99, %84 : vector<8x128xf32>
    %c4_22 = arith.constant 4 : index
    %101 = memref.load %arg3[%c4_22] : memref<9xf32, #tpu.memory_space<smem>>
    %102 = vector.broadcast %101 : f32 to vector<8x128xf32>
    %103 = arith.mulf %102, %85 : vector<8x128xf32>
    %104 = arith.addf %100, %103 : vector<8x128xf32>
    %c5_23 = arith.constant 5 : index
    %105 = memref.load %arg3[%c5_23] : memref<9xf32, #tpu.memory_space<smem>>
    %106 = vector.broadcast %105 : f32 to vector<8x128xf32>
    %107 = arith.mulf %106, %86 : vector<8x128xf32>
    %108 = arith.addf %104, %107 : vector<8x128xf32>
    %c6_24 = arith.constant 6 : index
    %109 = memref.load %arg3[%c6_24] : memref<9xf32, #tpu.memory_space<smem>>
    %110 = vector.broadcast %109 : f32 to vector<8x128xf32>
    %111 = arith.mulf %110, %84 : vector<8x128xf32>
    %c7_25 = arith.constant 7 : index
    %112 = memref.load %arg3[%c7_25] : memref<9xf32, #tpu.memory_space<smem>>
    %113 = vector.broadcast %112 : f32 to vector<8x128xf32>
    %114 = arith.mulf %113, %85 : vector<8x128xf32>
    %115 = arith.addf %111, %114 : vector<8x128xf32>
    %c8_26 = arith.constant 8 : index
    %116 = memref.load %arg3[%c8_26] : memref<9xf32, #tpu.memory_space<smem>>
    %117 = vector.broadcast %116 : f32 to vector<8x128xf32>
    %118 = arith.mulf %117, %86 : vector<8x128xf32>
    %119 = arith.addf %115, %118 : vector<8x128xf32>
    %cst_27 = arith.constant 1.000000e+00 : f32
    %120 = vector.broadcast %cst_27 : f32 to vector<8x128xf32>
    %121 = arith.divf %120, %119 : vector<8x128xf32>
    %122 = arith.mulf %97, %121 : vector<8x128xf32>
    %123 = arith.fptosi %122 : vector<8x128xf32> to vector<8x128xi32>
    %124 = arith.mulf %108, %121 : vector<8x128xf32>
    %125 = arith.fptosi %124 : vector<8x128xf32> to vector<8x128xi32>
    %c0_i32 = arith.constant 0 : i32
    %126 = vector.broadcast %c0_i32 : i32 to vector<8x128xi32>
    %127 = arith.cmpi sge, %123, %126 : vector<8x128xi32>
    %c16_i32 = arith.constant 16 : i32
    %128 = vector.broadcast %c16_i32 : i32 to vector<8x128xi32>
    %129 = arith.cmpi slt, %123, %128 : vector<8x128xi32>
    %130 = arith.andi %127, %129 : vector<8x128xi1>
    %c0_i32_28 = arith.constant 0 : i32
    %131 = vector.broadcast %c0_i32_28 : i32 to vector<8x128xi32>
    %132 = arith.cmpi sge, %125, %131 : vector<8x128xi32>
    %133 = arith.andi %130, %132 : vector<8x128xi1>
    %c16_i32_29 = arith.constant 16 : i32
    %134 = vector.broadcast %c16_i32_29 : i32 to vector<8x128xi32>
    %135 = arith.cmpi slt, %125, %134 : vector<8x128xi32>
    %136 = arith.andi %133, %135 : vector<8x128xi1>
    %cst_30 = arith.constant 0.000000e+00 : f32
    %137 = vector.broadcast %cst_30 : f32 to vector<8x128xf32>
    %138 = arith.cmpf ogt, %7, %137 : vector<8x128xf32>
    %cst_31 = arith.constant 1.500000e+00 : f32
    %139 = vector.broadcast %cst_31 : f32 to vector<8x128xf32>
    %140 = arith.cmpf ogt, %9, %139 : vector<8x128xf32>
    %141 = arith.andi %138, %140 : vector<8x128xi1>
    %142 = arith.andi %141, %136 : vector<8x128xi1>
    %c0_i32_32 = arith.constant 0 : i32
    %c15_i32 = arith.constant 15 : i32
    %143 = vector.broadcast %c0_i32_32 : i32 to vector<8x128xi32>
    %144 = arith.maxsi %143, %123 : vector<8x128xi32>
    %145 = vector.broadcast %c15_i32 : i32 to vector<8x128xi32>
    %146 = arith.minsi %145, %144 : vector<8x128xi32>
    %c0_i32_33 = arith.constant 0 : i32
    %c15_i32_34 = arith.constant 15 : i32
    %147 = vector.broadcast %c0_i32_33 : i32 to vector<8x128xi32>
    %148 = arith.maxsi %147, %125 : vector<8x128xi32>
    %149 = vector.broadcast %c15_i32_34 : i32 to vector<8x128xi32>
    %150 = arith.minsi %149, %148 : vector<8x128xi32>
    %c0_35 = arith.constant 0 : index
    %c0_36 = arith.constant 0 : index
    %151 = vector.load %arg7[%c0_35, %c0_36] : memref<16x128xf32, #tpu.memory_space<vmem>>, vector<16x128xf32>
    %152 = tpu.iota {dimensions = array<i32: 0>} : vector<128x128xi32>
    %153 = tpu.iota {dimensions = array<i32: 0>} : vector<16x128xi32>
    %154 = vector.extract_strided_slice %146 {offsets = [0, 0], sizes = [1, 128], strides = [1, 1]} : vector<8x128xi32> to vector<1x128xi32>
    %155 = vector.broadcast %154 : vector<1x128xi32> to vector<128x128xi32>
    %156 = arith.cmpi eq, %152, %155 : vector<128x128xi32>
    %157 = arith.extui %156 : vector<128x128xi1> to vector<128x128xi32>
    %158 = arith.sitofp %157 : vector<128x128xi32> to vector<128x128xf32>
    %159 = vector.extract_strided_slice %146 {offsets = [1, 0], sizes = [1, 128], strides = [1, 1]} : vector<8x128xi32> to vector<1x128xi32>
    %160 = vector.broadcast %159 : vector<1x128xi32> to vector<128x128xi32>
    %161 = arith.cmpi eq, %152, %160 : vector<128x128xi32>
    %162 = arith.extui %161 : vector<128x128xi1> to vector<128x128xi32>
    %163 = arith.sitofp %162 : vector<128x128xi32> to vector<128x128xf32>
    %164 = vector.extract_strided_slice %146 {offsets = [2, 0], sizes = [1, 128], strides = [1, 1]} : vector<8x128xi32> to vector<1x128xi32>
    %165 = vector.broadcast %164 : vector<1x128xi32> to vector<128x128xi32>
    %166 = arith.cmpi eq, %152, %165 : vector<128x128xi32>
    %167 = arith.extui %166 : vector<128x128xi1> to vector<128x128xi32>
    %168 = arith.sitofp %167 : vector<128x128xi32> to vector<128x128xf32>
    %169 = vector.extract_strided_slice %146 {offsets = [3, 0], sizes = [1, 128], strides = [1, 1]} : vector<8x128xi32> to vector<1x128xi32>
    %170 = vector.broadcast %169 : vector<1x128xi32> to vector<128x128xi32>
    %171 = arith.cmpi eq, %152, %170 : vector<128x128xi32>
    %172 = arith.extui %171 : vector<128x128xi1> to vector<128x128xi32>
    %173 = arith.sitofp %172 : vector<128x128xi32> to vector<128x128xf32>
    %174 = vector.extract_strided_slice %146 {offsets = [4, 0], sizes = [1, 128], strides = [1, 1]} : vector<8x128xi32> to vector<1x128xi32>
    %175 = vector.broadcast %174 : vector<1x128xi32> to vector<128x128xi32>
    %176 = arith.cmpi eq, %152, %175 : vector<128x128xi32>
    %177 = arith.extui %176 : vector<128x128xi1> to vector<128x128xi32>
    %178 = arith.sitofp %177 : vector<128x128xi32> to vector<128x128xf32>
    %179 = vector.extract_strided_slice %146 {offsets = [5, 0], sizes = [1, 128], strides = [1, 1]} : vector<8x128xi32> to vector<1x128xi32>
    %180 = vector.broadcast %179 : vector<1x128xi32> to vector<128x128xi32>
    %181 = arith.cmpi eq, %152, %180 : vector<128x128xi32>
    %182 = arith.extui %181 : vector<128x128xi1> to vector<128x128xi32>
    %183 = arith.sitofp %182 : vector<128x128xi32> to vector<128x128xf32>
    %184 = vector.extract_strided_slice %146 {offsets = [6, 0], sizes = [1, 128], strides = [1, 1]} : vector<8x128xi32> to vector<1x128xi32>
    %185 = vector.broadcast %184 : vector<1x128xi32> to vector<128x128xi32>
    %186 = arith.cmpi eq, %152, %185 : vector<128x128xi32>
    %187 = arith.extui %186 : vector<128x128xi1> to vector<128x128xi32>
    %188 = arith.sitofp %187 : vector<128x128xi32> to vector<128x128xf32>
    %189 = vector.extract_strided_slice %146 {offsets = [7, 0], sizes = [1, 128], strides = [1, 1]} : vector<8x128xi32> to vector<1x128xi32>
    %190 = vector.broadcast %189 : vector<1x128xi32> to vector<128x128xi32>
    %191 = arith.cmpi eq, %152, %190 : vector<128x128xi32>
    %192 = arith.extui %191 : vector<128x128xi1> to vector<128x128xi32>
    %193 = arith.sitofp %192 : vector<128x128xi32> to vector<128x128xf32>
    %194 = tpu.concatenate %158, %163, %168, %173, %178, %183, %188, %193 in 1 : vector<128x128xf32>, vector<128x128xf32>, vector<128x128xf32>, vector<128x128xf32>, vector<128x128xf32>, vector<128x128xf32>, vector<128x128xf32>, vector<128x128xf32> -> vector<128x1024xf32>
    %cst_37 = arith.constant dense<0.000000e+00> : vector<16x1024xf32>
    %195 = tpu.matmul %151, %194, %cst_37 {dimension_numbers = #tpu.dot_dimension_numbers<[1], [0], [0], [1], [0, 0, 1, 1], [], []>, precision = #tpu.contract_precision<fp32>} : vector<16x128xf32>, vector<128x1024xf32>, vector<16x1024xf32> -> vector<16x1024xf32>
    %196 = vector.extract_strided_slice %150 {offsets = [0, 0], sizes = [1, 128], strides = [1, 1]} : vector<8x128xi32> to vector<1x128xi32>
    %197 = vector.broadcast %196 : vector<1x128xi32> to vector<16x128xi32>
    %198 = arith.cmpi eq, %153, %197 : vector<16x128xi32>
    %199 = arith.extui %198 : vector<16x128xi1> to vector<16x128xi32>
    %200 = arith.sitofp %199 : vector<16x128xi32> to vector<16x128xf32>
    %201 = vector.extract_strided_slice %195 {offsets = [0, 0], sizes = [16, 128], strides = [1, 1]} : vector<16x1024xf32> to vector<16x128xf32>
    %202 = arith.mulf %201, %200 : vector<16x128xf32>
    %cst_38 = arith.constant dense<0.000000e+00> : vector<128xf32>
    %203 = vector.multi_reduction <add>, %202, %cst_38 [0] : vector<16x128xf32> to vector<128xf32>
    %204 = vector.shape_cast %203 : vector<128xf32> to vector<1x128xf32>
    %205 = vector.extract_strided_slice %150 {offsets = [1, 0], sizes = [1, 128], strides = [1, 1]} : vector<8x128xi32> to vector<1x128xi32>
    %206 = vector.broadcast %205 : vector<1x128xi32> to vector<16x128xi32>
    %207 = arith.cmpi eq, %153, %206 : vector<16x128xi32>
    %208 = arith.extui %207 : vector<16x128xi1> to vector<16x128xi32>
    %209 = arith.sitofp %208 : vector<16x128xi32> to vector<16x128xf32>
    %210 = vector.extract_strided_slice %195 {offsets = [0, 128], sizes = [16, 128], strides = [1, 1]} : vector<16x1024xf32> to vector<16x128xf32>
    %211 = arith.mulf %210, %209 : vector<16x128xf32>
    %cst_39 = arith.constant dense<0.000000e+00> : vector<128xf32>
    %212 = vector.multi_reduction <add>, %211, %cst_39 [0] : vector<16x128xf32> to vector<128xf32>
    %213 = vector.shape_cast %212 : vector<128xf32> to vector<1x128xf32>
    %214 = vector.extract_strided_slice %150 {offsets = [2, 0], sizes = [1, 128], strides = [1, 1]} : vector<8x128xi32> to vector<1x128xi32>
    %215 = vector.broadcast %214 : vector<1x128xi32> to vector<16x128xi32>
    %216 = arith.cmpi eq, %153, %215 : vector<16x128xi32>
    %217 = arith.extui %216 : vector<16x128xi1> to vector<16x128xi32>
    %218 = arith.sitofp %217 : vector<16x128xi32> to vector<16x128xf32>
    %219 = vector.extract_strided_slice %195 {offsets = [0, 256], sizes = [16, 128], strides = [1, 1]} : vector<16x1024xf32> to vector<16x128xf32>
    %220 = arith.mulf %219, %218 : vector<16x128xf32>
    %cst_40 = arith.constant dense<0.000000e+00> : vector<128xf32>
    %221 = vector.multi_reduction <add>, %220, %cst_40 [0] : vector<16x128xf32> to vector<128xf32>
    %222 = vector.shape_cast %221 : vector<128xf32> to vector<1x128xf32>
    %223 = vector.extract_strided_slice %150 {offsets = [3, 0], sizes = [1, 128], strides = [1, 1]} : vector<8x128xi32> to vector<1x128xi32>
    %224 = vector.broadcast %223 : vector<1x128xi32> to vector<16x128xi32>
    %225 = arith.cmpi eq, %153, %224 : vector<16x128xi32>
    %226 = arith.extui %225 : vector<16x128xi1> to vector<16x128xi32>
    %227 = arith.sitofp %226 : vector<16x128xi32> to vector<16x128xf32>
    %228 = vector.extract_strided_slice %195 {offsets = [0, 384], sizes = [16, 128], strides = [1, 1]} : vector<16x1024xf32> to vector<16x128xf32>
    %229 = arith.mulf %228, %227 : vector<16x128xf32>
    %cst_41 = arith.constant dense<0.000000e+00> : vector<128xf32>
    %230 = vector.multi_reduction <add>, %229, %cst_41 [0] : vector<16x128xf32> to vector<128xf32>
    %231 = vector.shape_cast %230 : vector<128xf32> to vector<1x128xf32>
    %232 = vector.extract_strided_slice %150 {offsets = [4, 0], sizes = [1, 128], strides = [1, 1]} : vector<8x128xi32> to vector<1x128xi32>
    %233 = vector.broadcast %232 : vector<1x128xi32> to vector<16x128xi32>
    %234 = arith.cmpi eq, %153, %233 : vector<16x128xi32>
    %235 = arith.extui %234 : vector<16x128xi1> to vector<16x128xi32>
    %236 = arith.sitofp %235 : vector<16x128xi32> to vector<16x128xf32>
    %237 = vector.extract_strided_slice %195 {offsets = [0, 512], sizes = [16, 128], strides = [1, 1]} : vector<16x1024xf32> to vector<16x128xf32>
    %238 = arith.mulf %237, %236 : vector<16x128xf32>
    %cst_42 = arith.constant dense<0.000000e+00> : vector<128xf32>
    %239 = vector.multi_reduction <add>, %238, %cst_42 [0] : vector<16x128xf32> to vector<128xf32>
    %240 = vector.shape_cast %239 : vector<128xf32> to vector<1x128xf32>
    %241 = vector.extract_strided_slice %150 {offsets = [5, 0], sizes = [1, 128], strides = [1, 1]} : vector<8x128xi32> to vector<1x128xi32>
    %242 = vector.broadcast %241 : vector<1x128xi32> to vector<16x128xi32>
    %243 = arith.cmpi eq, %153, %242 : vector<16x128xi32>
    %244 = arith.extui %243 : vector<16x128xi1> to vector<16x128xi32>
    %245 = arith.sitofp %244 : vector<16x128xi32> to vector<16x128xf32>
    %246 = vector.extract_strided_slice %195 {offsets = [0, 640], sizes = [16, 128], strides = [1, 1]} : vector<16x1024xf32> to vector<16x128xf32>
    %247 = arith.mulf %246, %245 : vector<16x128xf32>
    %cst_43 = arith.constant dense<0.000000e+00> : vector<128xf32>
    %248 = vector.multi_reduction <add>, %247, %cst_43 [0] : vector<16x128xf32> to vector<128xf32>
    %249 = vector.shape_cast %248 : vector<128xf32> to vector<1x128xf32>
    %250 = vector.extract_strided_slice %150 {offsets = [6, 0], sizes = [1, 128], strides = [1, 1]} : vector<8x128xi32> to vector<1x128xi32>
    %251 = vector.broadcast %250 : vector<1x128xi32> to vector<16x128xi32>
    %252 = arith.cmpi eq, %153, %251 : vector<16x128xi32>
    %253 = arith.extui %252 : vector<16x128xi1> to vector<16x128xi32>
    %254 = arith.sitofp %253 : vector<16x128xi32> to vector<16x128xf32>
    %255 = vector.extract_strided_slice %195 {offsets = [0, 768], sizes = [16, 128], strides = [1, 1]} : vector<16x1024xf32> to vector<16x128xf32>
    %256 = arith.mulf %255, %254 : vector<16x128xf32>
    %cst_44 = arith.constant dense<0.000000e+00> : vector<128xf32>
    %257 = vector.multi_reduction <add>, %256, %cst_44 [0] : vector<16x128xf32> to vector<128xf32>
    %258 = vector.shape_cast %257 : vector<128xf32> to vector<1x128xf32>
    %259 = vector.extract_strided_slice %150 {offsets = [7, 0], sizes = [1, 128], strides = [1, 1]} : vector<8x128xi32> to vector<1x128xi32>
    %260 = vector.broadcast %259 : vector<1x128xi32> to vector<16x128xi32>
    %261 = arith.cmpi eq, %153, %260 : vector<16x128xi32>
    %262 = arith.extui %261 : vector<16x128xi1> to vector<16x128xi32>
    %263 = arith.sitofp %262 : vector<16x128xi32> to vector<16x128xf32>
    %264 = vector.extract_strided_slice %195 {offsets = [0, 896], sizes = [16, 128], strides = [1, 1]} : vector<16x1024xf32> to vector<16x128xf32>
    %265 = arith.mulf %264, %263 : vector<16x128xf32>
    %cst_45 = arith.constant dense<0.000000e+00> : vector<128xf32>
    %266 = vector.multi_reduction <add>, %265, %cst_45 [0] : vector<16x128xf32> to vector<128xf32>
    %267 = vector.shape_cast %266 : vector<128xf32> to vector<1x128xf32>
    %268 = tpu.concatenate %204, %213, %222, %231, %240, %249, %258, %267 in 0 : vector<1x128xf32>, vector<1x128xf32>, vector<1x128xf32>, vector<1x128xf32>, vector<1x128xf32>, vector<1x128xf32>, vector<1x128xf32>, vector<1x128xf32> -> vector<8x128xf32>
    %269 = arith.cmpf ogt, %86, %268 : vector<8x128xf32>
    %270 = arith.andi %142, %269 : vector<8x128xi1>
    %271 = arith.extui %270 : vector<8x128xi1> to vector<8x128xi8>
    %c0_46 = arith.constant 0 : index
    %c0_47 = arith.constant 0 : index
    %c0_48 = arith.constant 0 : index
    %272 = vector.load %arg8[%c0_46, %c0_47, %c0_48] : memref<1x8x128xi8, #tpu.memory_space<vmem>>, vector<1x8x128xi8>
    %273 = vector.shape_cast %272 : vector<1x8x128xi8> to vector<8x128xi8>
    %274 = vector.shape_cast %271 : vector<8x128xi8> to vector<1x8x128xi8>
    tpu.vector_store %arg8[%c0_46, %c0_47, %c0_48], %274 {strides = array<i32>} : memref<1x8x128xi8, #tpu.memory_space<vmem>>, vector<1x8x128xi8>,
    return
  }
  func.func @transform_0(%arg0: i32, %arg1: i32) -> (i32, i32) {
    %c0_i32 = arith.constant 0 : i32
    %c0_i32_0 = arith.constant 0 : i32
    %c0_i32_1 = arith.constant 0 : i32
    return %c0_i32, %c0_i32_0 : i32, i32
  }
  func.func @transform_1(%arg0: i32, %arg1: i32) -> i32 {
    %c0_i32 = arith.constant 0 : i32
    %c0_i32_0 = arith.constant 0 : i32
    return %c0_i32 : i32
  }
  func.func @transform_2(%arg0: i32, %arg1: i32) -> (i32, i32, i32, i32) {
    %c0_i32 = arith.constant 0 : i32
    %c0_i32_0 = arith.constant 0 : i32
    %c0_i32_1 = arith.constant 0 : i32
    return %arg0, %c0_i32, %arg1, %c0_i32_0 : i32, i32, i32, i32
  }
  func.func @transform_3(%arg0: i32, %arg1: i32) -> (i32, i32, i32) {
    %c0_i32 = arith.constant 0 : i32
    %c0_i32_0 = arith.constant 0 : i32
    return %arg0, %arg1, %c0_i32 : i32, i32, i32
  }
  func.func @transform_4(%arg0: i32, %arg1: i32) -> (i32, i32, i32) {
    %c0_i32 = arith.constant 0 : i32
    %c0_i32_0 = arith.constant 0 : i32
    return %arg0, %arg1, %c0_i32 : i32, i32, i32
  }
  func.func @transform_5(%arg0: i32, %arg1: i32) -> (i32, i32) {
    %c0_i32 = arith.constant 0 : i32
    %c0_i32_0 = arith.constant 0 : i32
    %c0_i32_1 = arith.constant 0 : i32
    return %c0_i32, %c0_i32_0 : i32, i32
  }
  func.func @transform_6(%arg0: i32, %arg1: i32) -> (i32, i32, i32) {
    %c0_i32 = arith.constant 0 : i32
    %c0_i32_0 = arith.constant 0 : i32
    return %arg0, %arg1, %c0_i32 : i32, i32, i32
  }
}

</mosaic_0001>

<bundles_post_ra>
// kernel: tpu_custom_call.1
= control target key start
LH: loop header
LB: loop body
LE: loop exit
PB: predicated region body
PF: predicated region fallthrough
CT: control target
= control target key end

     0   :  { %s10295_s0 = inlined_call_operand.hbm [shape: f32[2,16], index: 0, kind: input, shape index: {}]   ;;  %s10296_s1 = inlined_call_operand.vmem [shape: f32[9], index: 1, kind: input, shape index: {}]   ;;  %s10297_s2 = inlined_call_operand.hbm [shape: f32[2,3,8,128], index: 2, kind: input, shape index: {}]   ;;  %s10298_s3 = inlined_call_operand.hbm [shape: f32[2,8,128], index: 3, kind: input, shape index: {}]   ;;  %s10299_s4 = inlined_call_operand.hbm [shape: f32[2,8,128], index: 4, kind: input, shape index: {}]   ;;  %s10300_s5 = inlined_call_operand.hbm [shape: f32[16,128], index: 5, kind: input, shape index: {}]   ;;  %s10301_s6 = inlined_call_operand.hbm [shape: u8[2,8,128], index: 6, kind: output, shape index: {}]  }
   0x1   :  { %10548 = sst [smem:[#allocation52_spill]] %s10295_s0 }
   0x2   :  { %10549 = sst [smem:[#allocation53_spill]] %s10296_s1 }
   0x3   :  { %10550 = sst [smem:[#allocation54_spill]] %s10298_s3 }
   0x4   :  { %10551 = sst [smem:[#allocation55_spill]] %s10299_s4 }
   0x5   :  { %10552 = sst [smem:[#allocation56_spill]] %s10301_s6 }
   0x6   :  { %11 = vsyncpa [#allocation5], 0 }
   0x7   :  { %12 = vsyncpa [#allocation6], 0 }
   0x8   :  { %13 = vsyncpa [#allocation3], 0 }
   0x9   :  { %15 = vsyncpa [#allocation3 + $0x1], 0 }
   0xa   :  { %16 = vsyncpa [#allocation10], 0 }
   0xb   :  { %18 = vsyncpa [#allocation10 + $0x1], 0 }
   0xc   :  { %19 = vsyncpa [#allocation13], 0 }
   0xd   :  { %20 = vsyncpa [#allocation4], 0 }
   0xe   :  { %22 = vsyncpa [#allocation4 + $0x1], 0  ;;  %s5908_s21 = smov 0   ;;  %s5910_s22 = smov 0  }
   0xf   :  { %s5912_s23 = smov 0   ;;  %s5914_s24 = smov 0  }
  0x10   :  { %s5916_s25 = smov 0   ;;  %s5918_s26 = smov 0  }
  0x11 LB: > { %10553 = sst [smem:[#allocation21_spill]] %s5839_s21  ;;  %s40_s27 = sadd.s32 1, %s5855_s25  ;;  %s5859_s26 = sphi %s5918_s26, %s28_s26   ;;  %s5855_s25 = sphi %s5916_s25, %s11079_s25   ;;  %s5851_s24 = sphi %s5914_s24, %s11078_s24   ;;  %s5847_s23 = sphi %s5912_s23, %s11074_s23   ;;  %s5843_s22 = sphi %s5910_s22, %s11077_s22   ;;  %s5839_s21 = sphi %s5908_s21, %s11076_s21  }
  0x12   : > { %10554 = sst [smem:[#allocation22_spill]] %s5847_s23  ;;  %s91_s28 = sadd.s32 1, %s5847_s23 }
  0x13   : > { %10555 = sst [smem:[#allocation23_spill]] %s5859_s26  ;;  %p42_p0 = scmp.ge.s32.totalorder %s40_s27, 2 }
  0x14   : > { %p98_p1 = scmp.ne.s32.totalorder %s5847_s23, %s5843_s22  ;;  %p99_p2 = scmp.eq.s32.totalorder %s5859_s26, 0 }
  0x15   : > { %s11081_s27 = smov (%p42_p0, %s40_s27), 0  ;;  %p5562_p5 = scmp.lt.s32.totalorder %s5859_s26, 2 }
  0x16   : > { %10556 = sst [smem:[#allocation24_spill]] %s11081_s27  ;;  %p100_p4 = por %p99_p2, %p98_p1 }
  0x17   : > { %s86_s29 = ssub.s32 %s5855_s25, %s11081_s27  ;;  %s5953_s30 = sand.u32 1, %s5847_s23  }
  0x18   : > { %p89_p6 = scmp.eq.s32.totalorder %s86_s29, 0  ;;  %p5955_p7 = pnand %p5562_p5, %p100_p4 }
  0x19   : > { %s288_s8 = sand.u32 1, %s5859_s26   ;;  %s10302_s9 = sshll.u32 %s5953_s30, 3 }
  0x1a   : > { %s10557_s7 = scalar_select %p5955_p7, 1, 0 }
  0x1b   : > { %s5962_s10 = scalar_select %p89_p6, %s5847_s23, %s91_s28  }
  0x1c   : > { %s4955_s11 = sshll.u32 %s5855_s25, 7  ;;  %s10559_s3 = sld [smem:[#allocation54_spill]] }
  0x1d   : > { %10558 = sst [smem:[#allocation25_spill]] %s5962_s10  ;;  %s292_s15 = scalar_lea.vmem [#allocation9], %s10302_s9 }
  0x1e   : > { %s300_s16 = sshll.u32 %s292_s15, 4  ;;  %s5970_s17 = scalar_lea.sflag [#allocation10], %s288_s8  ;;  %s301_s16 = int_to_ptr.vmem [resolvable:$true] %s300_s16 }
  0x1f   : > { %p10304_p8 = pneg %p5955_p7  ;;  %s5640_s18 = scalar_lea.vmem %s301_s16, 128 }
  0x20   : > { %p5641_p9 = scmp.ne.s32.totalorder %s301_s16, %s5640_s18  ;;  %s5861_s19 = smov [#allocation9]  }
  0x21   : > { %s5645_s20 = sshll.u32 %s5861_s19, 4  ;;  %s5646_s20 = int_to_ptr.vmem [resolvable:$false] %s5645_s20 }
  0x22   : > { %s298_s14 = scalar_lea.hbm %s10559_s3, %s4955_s11  ;;  %p5643_p10 = pnand %p5641_p9, %p10304_p8 }
  0x23   : > { %s5647_s28 = scalar_lea.vmem %s5646_s20, 256  ;;  %p5648_p12 = scmp.lt.s32.totalorder %s301_s16, %s5646_s20 }
  0x24   : > { %p5644_p11 = pneg %p5643_p10  ;;  %p5649_p13 = scmp.lt.s32.totalorder %s5647_s28, %s5640_s18 }
  0x26   : > { %p5650_p0 = por %p5649_p13, %p5648_p12 }
  0x28   : > { %p5651_p2 = pnand %p5650_p0, %p5644_p11 }
  0x2a   : > { %5654 = shalt.err (!%p5651_p2)
}
  0x2b   : > { %5551 = dma.hbm_to_vmem [thread:$0]  (!%p5955_p7), %s298_s14, 128, %s301_s16, %s5970_s17  }
  0x2c   : > { %s10560_s4 = sld [smem:[#allocation55_spill]]  ;;  %s5986_s13 = sadd.s32 4294967295, %s5859_s26  }
  0x2d   : > { %s4947_s15 = sadd.s32 4294967294, %s5859_s26   ;;  %p104_p4 = scmp.ne.s32.totalorder %s5843_s22, %s5839_s21 }
  0x2e   : > { %p10303_p5 = scmp.eq.s32.totalorder %s5986_s13, 0  ;;  %p207_p6 = scmp.eq.s32.totalorder %s5986_s13, 1 }
  0x2f   : > { %p213_p9 = scmp.eq.s32.totalorder %s4947_s15, 1  ;;  %p4948_p10 = scmp.ge.s32.totalorder %s5859_s26, 1 }
  0x30   : > { %p5996_p11 = por %p10303_p5, %p104_p4  ;;  %p6003_p12 = por %p207_p6, %p98_p1 }
  0x31   : > { %p6007_p13 = por %p213_p9, %p104_p4  ;;  %p220_p0 = scmp.lt.s32.totalorder %s5859_s26, 3 }
  0x32   : > { %s5983_s12 = scalar_lea.hbm %s10560_s4, %s4955_s11  ;;  %s10566_s1 = sld [smem:[#allocation53_spill]] }
  0x33   : > { %s10561_s14 = scalar_select %p5996_p11, 1, 0 }
  0x34   : > { %s10562_s11 = scalar_select %p6003_p12, 1, 0 }
  0x35   : > { %s10563_s16 = scalar_select %p6007_p13, 1, 0 }
  0x36   : > { %p6012_p2 = pnand %p4948_p10, %p220_p0  ;;  %s5862_s29 = smov [#allocation12]  }
  0x37   : > { %10564 = sst [smem:[#allocation26_spill]] %s10563_s16  ;;  %s252_s8 = sshll.u32 %s5862_s29, 4  ;;  %s6027_s8 = int_to_ptr.vmem [resolvable:$true] %s252_s8 }
  0x38   : > { %s10565_s18 = scalar_select %p6012_p2, 1, 0 }
  0x39   : > { %s242_s28 = sshll.u32 %s10566_s1, 4  ;;  %p5535_p1 = pneg %p6012_p2  ;;  %s243_s28 = int_to_ptr.vmem [resolvable:$true] %s242_s28 }
  0x3a   : > { %s5508_s9 = smul.u32 24, %s5953_s30  ;;  %s5863_s3 = smov [#allocation2]  }
  0x3b   : > { %p6023_p4 = pnand %p5535_p1, %p10303_p5  ;;  %s10568_s0 = sld [smem:[#allocation52_spill]] }
  0x3c   : > { %s5666_s1 = scalar_lea.vmem %s243_s28, 16  ;;  %p5674_p1 = scmp.lt.s32.totalorder %s243_s28, %s243_s28 }
  0x3d   : > { %p5667_p6 = scmp.ne.s32.totalorder %s243_s28, %s5666_s1  ;;  %p5668_p9 = pneg %p6023_p4 }
  0x3e   : > { %p5675_p3 = scmp.lt.s32.totalorder %s5666_s1, %s5666_s1 }
  0x3f   : > { %p5669_p10 = pnand %p5668_p9, %p5667_p6 }
  0x40   : > { %p5676_p5 = por %p5675_p3, %p5674_p1 }
  0x41   : > { %5538 = dma.hbm_to_smem (!%p6023_p4), %s10568_s0, 32, %s5863_s3, [#allocation5]  }
  0x42   : > { %p5670_p0 = pneg %p5669_p10 }
  0x44   : > { %p5677_p8 = pnand %p5676_p5, %p5670_p0 }
  0x46   : > { %5680 = shalt.err (!%p5677_p8)
}
  0x47   : > { %s5864_s29 = smov [#allocation7]   ;;  %s5692_s19 = scalar_lea.vmem %s6027_s8, 256 }
  0x48   : > { %5541 = dma.vmem_to_smem (!%p6023_p4), %s243_s28, 16, %s5864_s29, [#allocation6]  }
  0x49   : > { %p5693_p13 = scmp.ne.s32.totalorder %s6027_s8, %s5692_s19  ;;  %p5700_p2 = scmp.lt.s32.totalorder %s6027_s8, %s6027_s8 }
  0x4a   : > { %p5701_p6 = scmp.lt.s32.totalorder %s5692_s19, %s5692_s19 }
  0x4b   : > { %p5695_p12 = pnand %p5693_p13, %p5668_p9 }
  0x4c   : > { %p5702_p10 = por %p5701_p6, %p5700_p2 }
  0x4d   : > { %p5696_p11 = pneg %p5695_p12 }
  0x4f   : > { %p5703_p7 = pnand %p5702_p10, %p5696_p11 }
  0x51   : > { %5706 = shalt.err (!%p5703_p7)
}
  0x52   : > { %s5865_s1 = smov 128   ;;  %s5866_s3 = smov 8  }
  0x53   : > { %5544 = dma.hbm_to_vmem [thread:$0]  (!%p6023_p4), %s10300_s5, 256, %s6027_s8, [#allocation13], %s5865_s1, %s5865_s1, %s5866_s3  }
  0x54   : > { %s5509_s29 = smul.u32 384, %s5855_s25  ;;  %s270_s19 = scalar_lea.vmem [#allocation8], %s5508_s9 }
  0x55   : > { %s278_s0 = sshll.u32 %s270_s19, 4  ;;  %s10569_s4 = sshll.u32 %s5953_s30, 3  ;;  %s279_s0 = int_to_ptr.vmem [resolvable:$true] %s278_s0 }
  0x56   : > { %s311_s27 = scalar_lea.vmem [#allocation11], %s10569_s4  ;;  %s277_s16 = scalar_lea.hbm %s10297_s2, %s5509_s29 }
  0x57   : > { %s319_s10 = sshll.u32 %s311_s27, 4  ;;  %s267_s21 = scalar_lea.sflag [#allocation3], %s5953_s30  ;;  %s320_s10 = int_to_ptr.vmem [resolvable:$true] %s319_s10 }
  0x58   : > { %s5720_s6 = scalar_lea.vmem %s279_s0, 384  ;;  %p10570_p7 = scmp.ne.s32.totalorder %s10557_s7, 0 }
  0x59   : > { %p5721_p3 = scmp.ne.s32.totalorder %s279_s0, %s5720_s6  ;;  %s5867_s8 = smov [#allocation8]  }
  0x5a   : > { %p10571_p8 = pneg %p10570_p7  ;;  %s5725_s15 = sshll.u32 %s5867_s8, 4  ;;  %s5726_s15 = int_to_ptr.vmem [resolvable:$false] %s5725_s15 }
  0x5b   : > { %s5727_s9 = scalar_lea.vmem %s5726_s15, 768  ;;  %p5728_p12 = scmp.lt.s32.totalorder %s279_s0, %s5726_s15 }
  0x5c   : > { %p5723_p5 = pnand %p5721_p3, %p10571_p8  ;;  %p5729_p13 = scmp.lt.s32.totalorder %s5727_s9, %s5720_s6 }
  0x5e   : > { %p5724_p11 = pneg %p5723_p5  ;;  %p5730_p2 = por %p5729_p13, %p5728_p12 }
  0x60   : > { %p5731_p4 = pnand %p5730_p2, %p5724_p11 }
  0x62   : > { %5734 = shalt.err (!%p5731_p4)
}
  0x63   : > { %5548 = dma.hbm_to_vmem [thread:$0]  (!%p10570_p7), %s277_s16, 384, %s279_s0, %s267_s21, %s5865_s1, %s5865_s1, %s5866_s3  }
  0x64   : > { %s5748_s4 = scalar_lea.vmem %s320_s10, 128  ;;  %p10572_p0 = pmov %p10571_p8 }
  0x65   : > { %p5749_p9 = scmp.ne.s32.totalorder %s320_s10, %s5748_s4  ;;  %s5868_s23 = smov [#allocation11]  }
  0x66   : > { %s5753_s26 = sshll.u32 %s5868_s23, 4  ;;  %s5754_s26 = int_to_ptr.vmem [resolvable:$false] %s5753_s26 }
  0x67   : > { %p5751_p1 = pnand %p5749_p9, %p10572_p0  ;;  %s5755_s27 = scalar_lea.vmem %s5754_s26, 256 }
  0x68   : > { %p5756_p10 = scmp.lt.s32.totalorder %s320_s10, %s5754_s26  ;;  %p5757_p3 = scmp.lt.s32.totalorder %s5755_s27, %s5748_s4 }
  0x69   : > { %p5752_p6 = pneg %p5751_p1 }
  0x6a   : > { %p5758_p8 = por %p5757_p3, %p5756_p10 }
  0x6c   : > { %p5759_p5 = pnand %p5758_p8, %p5752_p6 }
  0x6e   : > { %5762 = shalt.err (!%p5759_p5)
}
  0x6f   : > { %5554 = dma.hbm_to_vmem [thread:$0]  (!%p10570_p7), %s5983_s12, 128, %s320_s10, %s5970_s17  }
  0x70   : > { %p10573_p11 = scmp.ne.s32.totalorder %s10565_s18, 0 }
  0x72   : > { %328 = sbr.rel (%p10573_p11) target bundleno = 900 (0x384), region = 44 }
  0x77   : > { %p10574_p12 = scmp.eq.s32.totalorder %s5986_s13, 0 }
  0x79   : > { %5814 = dma.done.wait (%p10574_p12), [#allocation5], 32   ;;  %p10575_p13 = pmov %p10574_p12 }
  0x7a   : > { %p10576_p2 = pmov %p10574_p12 }
  0x7b   : > { %5816 = vsyncadd (%p10575_p13), [#allocation5], 4294967264 }
  0x7c   : > { %5818 = dma.done.wait (%p10576_p2), [#allocation6], 16   ;;  %p10577_p4 = pmov %p10576_p2 }
  0x7d   : > { %s6081_s0 = sand.u32 1, %s5843_s22   ;;  %p10578_p7 = scmp.ne.s32.totalorder %s10561_s14, 0 }
  0x7e   : > { %5820 = vsyncadd (%p10577_p4), [#allocation6], 4294967280  ;;  %s5510_s6 = smul.u32 24, %s6081_s0  ;;  %s339_s21 = scalar_lea.sflag [#allocation3], %s6081_s0 }
  0x80   : > { %s6085_s30 = scalar_lea.vmem [#allocation8], %s5510_s6 }
  0x81   : > { %5822 = dma.done.wait (%p10578_p7), %s339_s21, 384  }
  0x82   : > { %5824 = vsyncadd (%p10578_p7), %s339_s21, 4294966912  ;;  %s347_s7 = sand.u32 1, %s5986_s13   ;;  %s4961_s10 = sshll.u32 %s6081_s0, 3 }
  0x83   : > { %s348_s17 = scalar_lea.sflag [#allocation10], %s347_s7  ;;  %s6093_s12 = scalar_lea.vmem [#allocation9], %s4961_s10 }
  0x84   : > { %5826 = dma.done.wait (%p10578_p7), %s348_s17, 256  }
  0x85   : > { %5828 = vsyncadd (%p10578_p7), %s348_s17, 4294967040  ;;  %s6099_s16 = scalar_lea.vmem [#allocation11], %s4961_s10  ;;  %p10579_p9 = pmov %p10576_p2 }
  0x86   : > { %p10580_p0 = pmov %p10576_p2 }
  0x87   : > { %5830 = dma.done.wait (%p10579_p9), [#allocation13], 256  }
  0x88   : > { %5832 = vsyncadd (%p10580_p0), [#allocation13], 4294967040 }
  0x89   : > { %369 = sfence }
  0x8a   : > { %v10346_v0 = vmov 0.0   ;;  %s6108_s18 = sshll.u32 %s5851_s24, 7  ;;  %v406_v1 = vld [vmem:[%s6085_s30] sm:$0xff]  ;;  %v4965_v2 = vld [vmem:[%s6085_s30 + $0x8] sm:$0xff]  ;;  %v4966_v3 = vld [vmem:[%s6085_s30 + $0x10] sm:$0xff]  ;;  %p11067_p6 = scmp.ne.s32.totalorder %s10562_s11, 0 }
  0x8b   : > { %1079 = vmatprep.mubr.f32.mxu0 %v10346_v0  ;;  %1326 = vmatprep.mubr.f32.mxu1 %v10346_v0  ;;  %s417_s13 = sadd.s32 1, %s6108_s18  ;;  %s431_s14 = sadd.s32 4, %s6108_s18  ;;  %v548_v63 = vld [vmem:[#allocation12] sm:$0xff] }
  0x8c   : > { %s6113_s1 = sld [smem:[#allocation2 + %s6108_s18]]  ;;  %s435_s3 = sadd.s32 5, %s6108_s18 }
  0x8d   : > { %s6116_s28 = sld [smem:[#allocation2 + %s417_s13]]  ;;  %s449_s20 = sadd.s32 8, %s6108_s18 }
  0x8e   : > { %s6119_s29 = sld [smem:[#allocation2 + %s431_s14]]  ;;  %s453_s19 = sadd.s32 9, %s6108_s18 }
  0x8f   : > { %s6122_s8 = sld [smem:[#allocation2 + %s435_s3]]  ;;  %s422_s15 = sadd.s32 2, %s6108_s18 }
  0x90   : > { %s6125_s9 = sld [smem:[#allocation2 + %s449_s20]]  ;;  %s467_s23 = sadd.s32 12, %s6108_s18 }
  0x91   : > { %s6127_s4 = sld [smem:[#allocation2 + %s453_s19]]  ;;  %s471_s27 = sadd.s32 13, %s6108_s18 }
  0x92   : > { %s468_s26 = sld [smem:[#allocation2 + %s467_s23]]  ;;  %s476_s21 = sadd.s32 14, %s6108_s18  ;;  %v415_v10 = vstv %s6113_s1 }
  0x93   : > { %s472_s6 = sld [smem:[#allocation2 + %s471_s27]]  ;;  %s481_s10 = sadd.s32 15, %s6108_s18  ;;  %v419_v11 = vstv %s6116_s28  ;;  %v416_v19 = vmul.f32 %v415_v10, %v406_v1 }
  0x94   : > { %s477_s7 = sld [smem:[#allocation2 + %s476_s21]]  ;;  %s440_s17 = sadd.s32 6, %s6108_s18  ;;  %v433_v12 = vstv %s6119_s29  ;;  %v420_v20 = vmul.f32 %v4965_v2, %v419_v11 }
  0x95   : > { %s6134_s13 = sld [smem:[#allocation2 + %s481_s10]]  ;;  %s458_s14 = sadd.s32 10, %s6108_s18  ;;  %v437_v14 = vstv %s6122_s8  ;;  %v434_v22 = vmul.f32 %v433_v12, %v406_v1 }
  0x96   : > { %s6139_s3 = sld [smem:[#allocation2 + %s422_s15]]  ;;  %s427_s15 = sadd.s32 3, %s6108_s18  ;;  %v451_v15 = vstv %s6125_s9  ;;  %v438_v23 = vmul.f32 %v4965_v2, %v437_v14  ;;  %v421_v29 = vadd.f32 %v420_v20, %v416_v19 }
  0x97   : > { %s6142_s20 = sld [smem:[#allocation2 + %s440_s17]]  ;;  %s445_s30 = sadd.s32 7, %s6108_s18  ;;  %v455_v16 = vstv %s6127_s4  ;;  %v452_v24 = vmul.f32 %v451_v15, %v406_v1 }
  0x98   : > { %v469_v4 = vstv %s468_s26  ;;  %s6144_s19 = sld [smem:[#allocation2 + %s458_s14]]  ;;  %s463_s23 = sadd.s32 11, %s6108_s18  ;;  %v456_v25 = vmul.f32 %v4965_v2, %v455_v16  ;;  %v439_v31 = vadd.f32 %v438_v23, %v434_v22 }
  0x99   : > { %v470_v5 = vmul.f32 %v469_v4, %v406_v1  ;;  %v473_v6 = vstv %s472_s6  ;;  %s428_s26 = sld [smem:[#allocation2 + %s427_s15]]  ;;  %v6171_v1 = vand.u32 4294901760, %v548_v63  ;;  %s4964_s10 = sshll.u32 %s6081_s0, 1 }
  0x9a   : > { %v474_v7 = vmul.f32 %v4965_v2, %v473_v6  ;;  %v478_v8 = vstv %s477_s7  ;;  %s446_s1 = sld [smem:[#allocation2 + %s445_s30]]  ;;  %v457_v33 = vadd.f32 %v456_v25, %v452_v24  ;;  %s5872_s15 = smov [#allocation14]  }
  0x9b   : > { %v479_v9 = vmul.f32 %v4966_v3, %v478_v8  ;;  %v483_v17 = vstv %s6134_s13  ;;  %s464_s28 = sld [smem:[#allocation2 + %s463_s23]]  ;;  %s5767_s30 = sshll.u32 %s5872_s15, 4  ;;  %s5768_s30 = int_to_ptr.vmem [resolvable:$false] %s5767_s30 }
  0x9c   : > { %v475_v13 = vadd.f32 %v474_v7, %v470_v5  ;;  %v424_v21 = vstv %s6139_s3  ;;  %s4973_s18 = sld [smem:[#allocation7 + $0x6]]  ;;  %v6176_v5 = vsub.f32 %v548_v63, %v6171_v1  ;;  %s5769_s23 = scalar_lea.vmem %s5768_s30, 64 }
  0x9d   : > { %v442_v27 = vstv %s6142_s20  ;;  %v425_v30 = vmul.f32 %v4966_v3, %v424_v21  ;;  %s4974_s29 = sld [smem:[#allocation7 + $0x7]] }
  0x9e   : > { %v480_v18 = vadd.f32 %v479_v9, %v475_v13  ;;  %v460_v28 = vstv %s6144_s19  ;;  %v443_v32 = vmul.f32 %v4966_v3, %v442_v27  ;;  %s4975_s8 = sld [smem:[#allocation7 + $0x8]]  ;;  %10585 = vst [vmem:[#allocation31_spill] sm:$0xff] %v6176_v5  ;;  %v6182_v9 = vand.u32 4294901760, %v6176_v5  ;;  %s4772_s19 = scalar_lea.sflag [#allocation4], %s6081_s0 }
  0x9f   : > { %v461_v34 = vmul.f32 %v4966_v3, %v460_v28  ;;  %v426_v35 = vadd.f32 %v425_v30, %v421_v29  ;;  %v429_v38 = vstv %s428_s26  ;;  %s490_s9 = sld [smem:[#allocation7]]  ;;  %v550_v3 = vlaneseq }
  0xa0   : > { %v484_v26 = vadd.f32 %v483_v17, %v480_v18  ;;  %v444_v36 = vadd.f32 %v443_v32, %v439_v31  ;;  %v447_v39 = vstv %s446_s1  ;;  %s4968_s4 = sld [smem:[#allocation7 + $0x1]]  ;;  %10587 = vst [vmem:[#allocation33_spill] sm:$0xff] %v6182_v9  ;;  %v1083_v18 = vsub.f32 %v6176_v5, %v6182_v9 }
  0xa1   : > { %v462_v37 = vadd.f32 %v461_v34, %v457_v33  ;;  %v465_v40 = vstv %s464_s28  ;;  %v430_v41 = vadd.f32 %v429_v38, %v426_v35  ;;  %s4969_s27 = sld [smem:[#allocation7 + $0x2]]  ;;  %v6179_v8 = vshrl.u32 %v550_v3, 7 }
  0xa2   : > { %5623 = vrcp.f32 %v484_v26  ;;  %v448_v42 = vadd.f32 %v447_v39, %v444_v36  ;;  %v513_v45 = vstv %s4973_s18  ;;  %v6249_v33 = vand.u32 4294901760, %v1083_v18  ;;  %s8715_s6 = sld [smem:[#allocation7 + $0x3]] }
  0xa3   : > { %v466_v43 = vadd.f32 %v465_v40, %v462_v37  ;;  %v516_v46 = vstv %s4974_s29  ;;  %10586 = vst [vmem:[#allocation32_spill] sm:$0xff] %v6179_v8  ;;  %v6187_v11 = vadd.s32 120, %v6179_v8  ;;  %v10318_v12 = vsub.s32 1, %v6179_v8  ;;  %s8719_s21 = sld [smem:[#allocation7 + $0x4]] }
  0xa4   : > { %v520_v50 = vstv %s4975_s8  ;;  %v10321_v13 = vsub.s32 0, %v6179_v8  ;;  %v6193_v14 = vadd.s32 112, %v6179_v8  ;;  %v6197_v16 = vadd.s32 104, %v6179_v8  ;;  %10599 = vst [vmem:[#allocation45_spill] sm:$0xff] %v6249_v33  ;;  %s8740_s7 = sld [smem:[#allocation7 + $0x5]] }
  0xa5   : > { %v491_v56 = vstv %s490_s9  ;;  %v6200_v17 = vadd.s32 96, %v6179_v8  ;;  %v6205_v19 = vadd.s32 88, %v6179_v8  ;;  %v6208_v20 = vadd.s32 80, %v6179_v8  ;;  %s11066_s3 = sld [smem:[#allocation56_spill]] }
  0xa6   : > { %v494_v57 = vstv %s4968_s4  ;;  %v6211_v21 = vadd.s32 72, %v6179_v8  ;;  %v6216_v23 = vadd.s32 64, %v6179_v8  ;;  %v6219_v24 = vadd.s32 56, %v6179_v8 }
  0xa7   : > { %v498_v60 = vstv %s4969_s27  ;;  %10589 = vst [vmem:[#allocation35_spill] sm:$0xff] %v6208_v20  ;;  %v6222_v25 = vadd.s32 48, %v6179_v8  ;;  %v6235_v28 = vadd.s32 40, %v6179_v8  ;;  %v6238_v29 = vadd.s32 32, %v6179_v8 }
  0xa8   : > { %10590 = vst [vmem:[#allocation36_spill] sm:$0xff] %v6211_v21  ;;  %10592 = vst [vmem:[#allocation38_spill] sm:$0xff] %v6216_v23  ;;  %v6241_v30 = vadd.s32 24, %v6179_v8  ;;  %v6244_v31 = vadd.s32 16, %v6179_v8  ;;  %v6247_v32 = vadd.s32 8, %v6179_v8  ;;  %v10350_v34 = vmov 1.0  }
  0xa9   : > { %10593 = vst [vmem:[#allocation39_spill] sm:$0xff] %v6219_v24  ;;  %10594 = vst [vmem:[#allocation40_spill] sm:$0xff] %v6222_v25 }
  0xaa   : > { %10595 = vst [vmem:[#allocation41_spill] sm:$0xff] %v6235_v28  ;;  %10596 = vst [vmem:[#allocation42_spill] sm:$0xff] %v6238_v29 }
  0xab   : > { %10597 = vst [vmem:[#allocation43_spill] sm:$0xff] %v6244_v31  ;;  %10598 = vst [vmem:[#allocation44_spill] sm:$0xff] %v6247_v32 }
  0xaf   : > { %v5624_v44 = vpop.eup %5623 }
  0xb0   : > { %v6159_v47 = vmul.f32 %v5624_v44, %v430_v41  ;;  %v6161_v48 = vmul.f32 %v5624_v44, %v448_v42  ;;  %v6163_v49 = vmul.f32 %v5624_v44, %v466_v43 }
  0xb2   : > { %10581 = vst [vmem:[#allocation27_spill] sm:$0xff] %v6159_v47  ;;  %10582 = vst [vmem:[#allocation28_spill] sm:$0xff] %v6161_v48  ;;  %v514_v51 = vmul.f32 %v513_v45, %v6159_v47  ;;  %v517_v52 = vmul.f32 %v516_v46, %v6161_v48  ;;  %v521_v53 = vmul.f32 %v520_v50, %v6163_v49 }
  0xb3   : > { %10583 = vst [vmem:[#allocation29_spill] sm:$0xff] %v6163_v49  ;;  %v492_v58 = vmul.f32 %v491_v56, %v6159_v47  ;;  %v495_v59 = vmul.f32 %v494_v57, %v6161_v48  ;;  %v499_v62 = vmul.f32 %v498_v60, %v6163_v49 }
  0xb4   : > { %v518_v54 = vadd.f32 %v517_v52, %v514_v51 }
  0xb5   : > { %v496_v61 = vadd.f32 %v495_v59, %v492_v58 }
  0xb6   : > { %v522_v55 = vadd.f32 %v521_v53, %v518_v54 }
  0xb7   : > { %v500_v2 = vadd.f32 %v499_v62, %v496_v61 }
  0xb8   : > { %5625 = vrcp.f32 %v522_v55 }
  0xc5   : > { %v6173_v4 = vpop.eup %5625 }
  0xc6   : > { %10584 = vst [vmem:[#allocation30_spill] sm:$0xff] %v6173_v4  ;;  %v525_v6 = vmul.f32 %v6173_v4, %v500_v2  ;;  %v10603_v4 = vmov 1.0  }
  0xc8   : > { %v5511_v7 = vtrunc.f32 %v525_v6 }
  0xca   : > { %v6184_v10 = vcvt.f32.s32 %v5511_v7 }
  0xcc   : > { %10588 = vst [vmem:[#allocation34_spill] sm:$0xff] %v6184_v10  ;;  %vm540_vm0 = vcmp.gt.s32.totalorder %v6184_v10, 0 }
  0xcd   : > { %v541_v15 = vsel %vm540_vm0, %v6184_v10, 0  ;;  %v10602_v10 = vmov 0.0  }
  0xce   : > { %vm542_vm1 = vcmp.lt.s32.totalorder %v541_v15, 15 }
  0xcf   : > { %v6213_v22 = vsel %vm542_vm1, %v541_v15, 15 }
  0xd0   : > { %10591 = vst [vmem:[#allocation37_spill] sm:$0xff] %v6213_v22  ;;  %v6227_v26 = vrot.slane %v6213_v22, %v10318_v12  ;;  %v6232_v27 = vrot.slane %v6213_v22, %v10321_v13 }
  0xd2   : > { %vm638_vm2 = vcmp.eq.s32.totalorder %v6187_v11, %v6227_v26  ;;  %vm586_vm3 = vcmp.eq.s32.totalorder %v6187_v11, %v6232_v27  ;;  %vm637_vm4 = vcmp.eq.s32.totalorder %v6193_v14, %v6227_v26  ;;  %vm585_vm5 = vcmp.eq.s32.totalorder %v6193_v14, %v6232_v27 }
  0xd3   : > { %5104 = vmatprep.subr.msk.mxu0 %vm638_vm2, %v10350_v34  ;;  %v5006_v35 = vsel %vm637_vm4, 1.0, %v10346_v0  ;;  %v4990_v36 = vsel %vm585_vm5, 1.0, %v10346_v0  ;;  %vm636_vm6 = vcmp.eq.s32.totalorder %v6197_v16, %v6227_v26  ;;  %vm584_vm7 = vcmp.eq.s32.totalorder %v6197_v16, %v6232_v27 }
  0xd4   : > { %5105 = vmatpush1.msk.msra.mxu0 %vm586_vm3, %v10350_v34  ;;  %v6279_v37 = vsub.f32 %v5006_v35, %v5006_v35  ;;  %v6281_v38 = vsub.f32 %v4990_v36, %v4990_v36  ;;  %v5005_v39 = vsel %vm636_vm6, 1.0, %v10346_v0  ;;  %v4989_v40 = vsel %vm584_vm7, 1.0, %v10346_v0 }
  0xd5   : > { %5106 = vmatprep.subr.msk.mxu0 %vm637_vm4, %v10350_v34  ;;  %v6295_v41 = vsub.f32 %v5005_v39, %v5005_v39  ;;  %v6297_v42 = vsub.f32 %v4989_v40, %v4989_v40  ;;  %vm635_vm8 = vcmp.eq.s32.totalorder %v6200_v17, %v6227_v26  ;;  %vm583_vm9 = vcmp.eq.s32.totalorder %v6200_v17, %v6232_v27 }
  0xd6   : > { %10600 = vst [vmem:[#allocation46_spill] sm:$0xff] %v6279_v37  ;;  %5107 = vmatpush1.msk.msra.mxu0 %vm585_vm5, %v10350_v34  ;;  %v5004_v43 = vsel %vm635_vm8, 1.0, %v10346_v0  ;;  %v4988_v44 = vsel %vm583_vm9, 1.0, %v10346_v0  ;;  %vm634_vm10 = vcmp.eq.s32.totalorder %v6205_v19, %v6227_v26  ;;  %vm582_vm11 = vcmp.eq.s32.totalorder %v6205_v19, %v6232_v27 }
  0xd7   : > { %5108 = vmatprep.subr.msk.mxu0 %vm636_vm6, %v10350_v34  ;;  %v6323_v45 = vsub.f32 %v5004_v43, %v5004_v43  ;;  %v6325_v46 = vsub.f32 %v4988_v44, %v4988_v44  ;;  %v5003_v50 = vsel %vm634_vm10, 1.0, %v10346_v0  ;;  %v4987_v51 = vsel %vm582_vm11, 1.0, %v10346_v0 }
  0xd8   : > { %5109 = vmatpush1.msk.msra.mxu0 %vm584_vm7, %v10350_v34  ;;  %v6339_v52 = vsub.f32 %v5003_v50, %v5003_v50  ;;  %v6341_v53 = vsub.f32 %v4987_v51, %v4987_v51  ;;  %v5007_v54 = vsel %vm638_vm2, 1.0, %v10346_v0  ;;  %vm633_vm12 = vcmp.eq.s32.totalorder %v6208_v20, %v6227_v26 }
  0xd9   : > { %5110 = vmatprep.subr.msk.mxu0 %vm635_vm8, %v10350_v34  ;;  %v6353_v55 = vsub.f32 %v5007_v54, %v5007_v54  ;;  %v5002_v56 = vsel %vm633_vm12, 1.0, %v10346_v0  ;;  %v4991_v57 = vsel %vm586_vm3, 1.0, %v10346_v0  ;;  %vm10389_vm13 = vcmp.eq.s32.totalorder %v6208_v20, %v6232_v27 }
  0xda   : > { %5111 = vmatpush1.msk.msra.mxu0 %vm583_vm9, %v10350_v34  ;;  %v6369_v58 = vsub.f32 %v5002_v56, %v5002_v56  ;;  %v6371_v59 = vsub.f32 %v4991_v57, %v4991_v57  ;;  %v4986_v60 = vsel %vm10389_vm13, 1.0, %v10346_v0  ;;  %v10335_v61 = vand.u32 4294901760, %v6279_v37 }
  0xdb   : > { %5112 = vmatprep.subr.msk.mxu0 %vm634_vm10, %v10350_v34  ;;  %v10341_v62 = vand.u32 4294901760, %v6353_v55  ;;  %v6383_v63 = vsub.f32 %v4986_v60, %v4986_v60  ;;  %vm10390_vm14 = vcmp.eq.s32.totalorder %v6211_v21, %v6227_v26  ;;  %v10334_v2 = vand.u32 4294901760, %v6281_v38 }
  0xdc   : > { %10601 = vst [vmem:[#allocation47_spill] sm:$0xff] %v6371_v59  ;;  %5113 = vmatpush1.msk.msra.mxu0 %vm582_vm11, %v10350_v34  ;;  %v10340_v3 = vand.u32 4294901760, %v6371_v59  ;;  %v1117_v6 = vsub.f32 %v6279_v37, %v10335_v61  ;;  %v5001_v7 = vsel %vm10390_vm14, 1.0, %v10346_v0  ;;  %vm10391_vm15 = vcmp.eq.s32.totalorder %v6211_v21, %v6232_v27 }
  0xdd   : > { %v1105_v15 = vsub.f32 %v6353_v55, %v10341_v62  ;;  %5114 = vmatprep.subr.msk.mxu0 %vm633_vm12, %v10350_v34  ;;  %v6409_v18 = vsub.f32 %v5001_v7, %v5001_v7  ;;  %v1123_v35 = vsub.f32 %v6281_v38, %v10334_v2  ;;  %v4985_v36 = vsel %vm10391_vm15, 1.0, %v10346_v0 }
  0xde   : > { %v1111_v39 = vsub.f32 %v6371_v59, %v10340_v3  ;;  %5115 = vmatpush1.msk.msra.mxu0 %vm10389_vm13, %v10350_v34  ;;  %v1118_v40 = vand.u32 4294901760, %v1117_v6  ;;  %v6425_v43 = vsub.f32 %v4985_v36, %v4985_v36  ;;  %v10329_v44 = vand.u32 4294901760, %v6295_v41 }
  0xdf   : > { %v1106_v50 = vand.u32 4294901760, %v1105_v15  ;;  %5116 = vmatprep.subr.msk.mxu0 %vm10390_vm14, %v10350_v34  ;;  %v1124_v51 = vand.u32 4294901760, %v1123_v35  ;;  %vm10317_vm0 = vcmp.eq.s32.totalorder %v6216_v23, %v6227_v26  ;;  %v10324_v54 = vand.u32 4294901760, %v6297_v42 }
  0xe0   : > { %v1112_v56 = vand.u32 4294901760, %v1111_v39  ;;  %5117 = vmatpush1.msk.msra.mxu0 %vm10391_vm15, %v10350_v34  ;;  %v1129_v57 = vsub.f32 %v6295_v41, %v10329_v44  ;;  %v5000_v60 = vsel %vm10317_vm0, 1.0, %v10346_v0  ;;  %vm10319_vm1 = vcmp.eq.s32.totalorder %v6216_v23, %v6232_v27 }
  0xe1   : > { %1107 = vmatprep.subr.mxu1 %v1106_v50  ;;  %5118 = vmatprep.subr.msk.mxu0 %vm10317_vm0, %v10350_v34  ;;  %v6452_v6 = vsub.f32 %v5000_v60, %v5000_v60  ;;  %v1135_v7 = vsub.f32 %v6297_v42, %v10324_v54  ;;  %v4984_v15 = vsel %vm10319_vm1, 1.0, %v10346_v0  ;;  %v10323_v35 = vand.u32 4294901760, %v6323_v45 }
  0xe2   : > { %1113 = vmatpush1.msra.mxu1 %v1112_v56  ;;  %v1130_v36 = vand.u32 4294901760, %v1129_v57  ;;  %5119 = vmatpush1.msk.msra.mxu0 %vm10319_vm1, %v10350_v34  ;;  %v6466_v39 = vsub.f32 %v4984_v15, %v4984_v15  ;;  %vm10320_vm0 = vcmp.eq.s32.totalorder %v6219_v24, %v6227_v26  ;;  %v10322_v50 = vand.u32 4294901760, %v6325_v46 }
  0xe3   : > { %1119 = vmatprep.subr.mxu1 %v1118_v40  ;;  %v1136_v60 = vand.u32 4294901760, %v1135_v7  ;;  %v1141_v12 = vsub.f32 %v6323_v45, %v10323_v35  ;;  %v4999_v56 = vsel %vm10320_vm0, 1.0, %v10346_v0  ;;  %5120 = vmatprep.subr.msk.mxu0 %vm10320_vm0, %v10350_v34  ;;  %vm10325_vm1 = vcmp.eq.s32.totalorder %v6219_v24, %v6232_v27 }
  0xe4   : > { %1125 = vmatpush1.msra.mxu1 %v1124_v51  ;;  %v6484_v40 = vsub.f32 %v4999_v56, %v4999_v56  ;;  %v1147_v57 = vsub.f32 %v6325_v46, %v10322_v50  ;;  %v4983_v7 = vsel %vm10325_vm1, 1.0, %v10346_v0  ;;  %5121 = vmatpush1.msk.msra.mxu0 %vm10325_vm1, %v10350_v34  ;;  %v10328_v15 = vand.u32 4294901760, %v6339_v52 }
  0xe5   : > { %1131 = vmatprep.subr.mxu1 %v1130_v36  ;;  %v1142_v51 = vand.u32 4294901760, %v1141_v12  ;;  %v6498_v56 = vsub.f32 %v4983_v7, %v4983_v7  ;;  %vm10326_vm0 = vcmp.eq.s32.totalorder %v6222_v25, %v6227_v26  ;;  %v10327_v13 = vand.u32 4294901760, %v6341_v53 }
  0xe6   : > { %1137 = vmatpush1.msra.mxu1 %v1136_v60  ;;  %v1148_v50 = vand.u32 4294901760, %v1147_v57  ;;  %v1153_v35 = vsub.f32 %v6339_v52, %v10328_v15  ;;  %v4998_v54 = vsel %vm10326_vm0, 1.0, %v10346_v0  ;;  %5122 = vmatprep.subr.msk.mxu0 %vm10326_vm0, %v10350_v34  ;;  %vm10330_vm1 = vcmp.eq.s32.totalorder %v6222_v25, %v6232_v27 }
  0xe7   : > { %1143 = vmatprep.subr.mxu1 %v1142_v51  ;;  %v6516_v12 = vsub.f32 %v4998_v54, %v4998_v54  ;;  %v1159_v36 = vsub.f32 %v6341_v53, %v10327_v13  ;;  %v4982_v60 = vsel %vm10330_vm1, 1.0, %v10346_v0  ;;  %5123 = vmatpush1.msk.msra.mxu0 %vm10330_vm1, %v10350_v34  ;;  %v10333_v57 = vand.u32 4294901760, %v6369_v58 }
  0xe8   : > { %1149 = vmatpush1.msra.mxu1 %v1148_v50  ;;  %v1154_v7 = vand.u32 4294901760, %v1153_v35  ;;  %v6530_v54 = vsub.f32 %v4982_v60, %v4982_v60  ;;  %vm10331_vm0 = vcmp.eq.s32.totalorder %v6235_v28, %v6227_v26  ;;  %v10332_v51 = vand.u32 4294901760, %v6383_v63 }
  0xe9   : > { %v1160_v13 = vand.u32 4294901760, %v1159_v36  ;;  %v1165_v15 = vsub.f32 %v6369_v58, %v10333_v57  ;;  %v4997_v44 = vsel %vm10331_vm0, 1.0, %v10346_v0  ;;  %5124 = vmatprep.subr.msk.mxu0 %vm10331_vm0, %v10350_v34  ;;  %vm10336_vm1 = vcmp.eq.s32.totalorder %v6235_v28, %v6232_v27 }
  0xea   : > { %1155 = vmatprep.subr.mxu1 %v1154_v7  ;;  %v6548_v35 = vsub.f32 %v4997_v44, %v4997_v44  ;;  %v1171_v50 = vsub.f32 %v6383_v63, %v10332_v51  ;;  %v4981_v36 = vsel %vm10336_vm1, 1.0, %v10346_v0  ;;  %5125 = vmatpush1.msk.msra.mxu0 %vm10336_vm1, %v10350_v34  ;;  %v10339_v60 = vand.u32 4294901760, %v6409_v18 }
  0xeb   : > { %1161 = vmatpush1.msra.mxu1 %v1160_v13  ;;  %v1166_v7 = vand.u32 4294901760, %v1165_v15  ;;  %v6562_v44 = vsub.f32 %v4981_v36, %v4981_v36  ;;  %vm10337_vm0 = vcmp.eq.s32.totalorder %v6238_v29, %v6227_v26  ;;  %v10338_v51 = vand.u32 4294901760, %v6425_v43 }
  0xec   : > { %v1172_v57 = vand.u32 4294901760, %v1171_v50  ;;  %v1177_v2 = vsub.f32 %v6409_v18, %v10339_v60  ;;  %v4996_v61 = vsel %vm10337_vm0, 1.0, %v10346_v0  ;;  %5126 = vmatprep.subr.msk.mxu0 %vm10337_vm0, %v10350_v34  ;;  %vm10342_vm1 = vcmp.eq.s32.totalorder %v6238_v29, %v6232_v27 }
  0xed   : > { %1167 = vmatprep.subr.mxu1 %v1166_v7  ;;  %v6580_v13 = vsub.f32 %v4996_v61, %v4996_v61  ;;  %v1183_v15 = vsub.f32 %v6425_v43, %v10338_v51  ;;  %v4980_v50 = vsel %vm10342_vm1, 1.0, %v10346_v0  ;;  %5127 = vmatpush1.msk.msra.mxu0 %vm10342_vm1, %v10350_v34  ;;  %v10345_v36 = vand.u32 4294901760, %v6452_v6 }
  0xee   : > { %1173 = vmatpush1.msra.mxu1 %v1172_v57  ;;  %v1178_v7 = vand.u32 4294901760, %v1177_v2  ;;  %v6594_v61 = vsub.f32 %v4980_v50, %v4980_v50  ;;  %vm10343_vm0 = vcmp.eq.s32.totalorder %v6241_v30, %v6227_v26  ;;  %v10344_v51 = vand.u32 4294901760, %v6466_v39 }
  0xef   : > { %v1184_v60 = vand.u32 4294901760, %v1183_v15  ;;  %v1189_v3 = vsub.f32 %v6452_v6, %v10345_v36  ;;  %v4995_v62 = vsel %vm10343_vm0, 1.0, %v10346_v0  ;;  %5128 = vmatprep.subr.msk.mxu0 %vm10343_vm0, %v10350_v34  ;;  %vm10353_vm1 = vcmp.eq.s32.totalorder %v6241_v30, %v6232_v27 }
  0xf0   : > { %1179 = vmatprep.subr.mxu1 %v1178_v7  ;;  %v6612_v2 = vsub.f32 %v4995_v62, %v4995_v62  ;;  %v1195_v57 = vsub.f32 %v6466_v39, %v10344_v51  ;;  %v4979_v15 = vsel %vm10353_vm1, 1.0, %v10346_v0  ;;  %5129 = vmatpush1.msk.msra.mxu0 %vm10353_vm1, %v10350_v34  ;;  %v10356_v50 = vand.u32 4294901760, %v6484_v40 }
  0xf1   : > { %1185 = vmatpush1.msra.mxu1 %v1184_v60  ;;  %v1190_v7 = vand.u32 4294901760, %v1189_v3  ;;  %v6626_v62 = vsub.f32 %v4979_v15, %v4979_v15  ;;  %vm10354_vm0 = vcmp.eq.s32.totalorder %v6244_v31, %v6227_v26  ;;  %v10355_v51 = vand.u32 4294901760, %v6498_v56 }
  0xf2   : > { %v1196_v36 = vand.u32 4294901760, %v1195_v57  ;;  %v1201_v0 = vsub.f32 %v6484_v40, %v10356_v50  ;;  %v4994_v34 = vsel %vm10354_vm0, 1.0, %v10602_v10  ;;  %5130 = vmatprep.subr.msk.mxu0 %vm10354_vm0, %v10603_v4  ;;  %vm10360_vm1 = vcmp.eq.s32.totalorder %v6244_v31, %v6232_v27 }
  0xf3   : > { %1191 = vmatprep.subr.mxu1 %v1190_v7  ;;  %v6644_v3 = vsub.f32 %v4994_v34, %v4994_v34  ;;  %v1207_v60 = vsub.f32 %v6498_v56, %v10355_v51  ;;  %v4978_v57 = vsel %vm10360_vm1, 1.0, %v10602_v10  ;;  %5131 = vmatpush1.msk.msra.mxu0 %vm10360_vm1, %v10603_v4  ;;  %v10363_v15 = vand.u32 4294901760, %v6516_v12 }
  0xf4   : > { %1197 = vmatpush1.msra.mxu1 %v1196_v36  ;;  %v1202_v7 = vand.u32 4294901760, %v1201_v0  ;;  %v6658_v34 = vsub.f32 %v4978_v57, %v4978_v57  ;;  %vm10361_vm0 = vcmp.eq.s32.totalorder %v6247_v32, %v6227_v26  ;;  %v10362_v51 = vand.u32 4294901760, %v6530_v54 }
  0xf5   : > { %v1208_v50 = vand.u32 4294901760, %v1207_v60  ;;  %v1213_v49 = vsub.f32 %v6516_v12, %v10363_v15  ;;  %v4993_v48 = vsel %vm10361_vm0, 1.0, %v10602_v10  ;;  %5132 = vmatprep.subr.msk.mxu0 %vm10361_vm0, %v10603_v4  ;;  %vm10367_vm1 = vcmp.eq.s32.totalorder %v6247_v32, %v6232_v27 }
  0xf6   : > { %1203 = vmatprep.subr.mxu1 %v1202_v7  ;;  %v6676_v0 = vsub.f32 %v4993_v48, %v4993_v48  ;;  %v1219_v36 = vsub.f32 %v6530_v54, %v10362_v51  ;;  %v4977_v60 = vsel %vm10367_vm1, 1.0, %v10602_v10  ;;  %5133 = vmatpush1.msk.msra.mxu0 %vm10367_vm1, %v10603_v4  ;;  %v10368_v57 = vand.u32 4294901760, %v6548_v35 }
  0xf7   : > { %1209 = vmatpush1.msra.mxu1 %v1208_v50  ;;  %v1214_v7 = vand.u32 4294901760, %v1213_v49  ;;  %v6690_v48 = vsub.f32 %v4977_v60, %v4977_v60  ;;  %vm623_vm0 = vcmp.eq.s32.totalorder %v6179_v8, %v6227_v26  ;;  %v10369_v51 = vand.u32 4294901760, %v6562_v44 }
  0xf8   : > { %v1220_v15 = vand.u32 4294901760, %v1219_v36  ;;  %v1225_v47 = vsub.f32 %v6548_v35, %v10368_v57  ;;  %v4992_v22 = vsel %vm623_vm0, 1.0, %v10602_v10  ;;  %5134 = vmatprep.subr.msk.mxu0 %vm623_vm0, %v10603_v4  ;;  %vm571_vm1 = vcmp.eq.s32.totalorder %v6179_v8, %v6232_v27 }
  0xf9   : > { %1215 = vmatprep.subr.mxu1 %v1214_v7  ;;  %v6708_v49 = vsub.f32 %v4992_v22, %v4992_v22  ;;  %v1231_v50 = vsub.f32 %v6562_v44, %v10369_v51  ;;  %v4976_v36 = vsel %vm571_vm1, 1.0, %v10602_v10  ;;  %5135 = vmatpush1.msk.msra.mxu0 %vm571_vm1, %v10603_v4  ;;  %v10376_v60 = vand.u32 4294901760, %v6580_v13 }
  0xfa   : > { %1221 = vmatpush1.msra.mxu1 %v1220_v15  ;;  %v1226_v7 = vand.u32 4294901760, %v1225_v47  ;;  %v6722_v22 = vsub.f32 %v4976_v36, %v4976_v36  ;;  %v10379_v57 = vand.u32 4294901760, %v6594_v61  ;;  %1343 = vmatprep.subr.mxu0 %v6353_v55  ;;  %v10380_v51 = vand.u32 4294901760, %v6612_v2 }
  0xfb   : > { %v1232_v9 = vand.u32 4294901760, %v1231_v50  ;;  %v1237_v32 = vsub.f32 %v6580_v13, %v10376_v60  ;;  %1085 = vmatmul.mubr.f32.vlgmr.msra.gmra.mxu0 %v6249_v33  ;;  %v10384_v8 = vand.u32 4294901760, %v6626_v62  ;;  %v10386_v15 = vand.u32 4294901760, %v6644_v3 }
  0xfc   : > { %1227 = vmatprep.subr.mxu1 %v1226_v7  ;;  %v1243_v47 = vsub.f32 %v6594_v61, %v10379_v57  ;;  %v1249_v36 = vsub.f32 %v6612_v2, %v10380_v51  ;;  %1346 = vmatpush1.msra.mxu0 %v6371_v59  ;;  %v10387_v50 = vand.u32 4294901760, %v6658_v34  ;;  %v10388_v60 = vand.u32 4294901760, %v6676_v0 }
  0xfd   : > { %1233 = vmatpush1.msra.mxu1 %v1232_v9  ;;  %v1238_v33 = vand.u32 4294901760, %v1237_v32  ;;  %v1255_v7 = vsub.f32 %v6626_v62, %v10384_v8  ;;  %1349 = vmatprep.subr.mxu0 %v6279_v37  ;;  %v1261_v57 = vsub.f32 %v6644_v3, %v10386_v15  ;;  %v1278_v51 = vand.u32 4294901760, %v6690_v48 }
  0xfe   : > { %v1244_v31 = vand.u32 4294901760, %v1243_v47  ;;  %v1250_v59 = vand.u32 4294901760, %v1249_v36  ;;  %1352 = vmatpush1.msra.mxu0 %v6281_v38  ;;  %v1267_v9 = vsub.f32 %v6658_v34, %v10387_v50  ;;  %v1273_v32 = vsub.f32 %v6676_v0, %v10388_v60  ;;  %1090 = vmatprep.mubr.f32.mxu0 %v10602_v10 }
  0xff   : > { %1239 = vmatprep.subr.mxu1 %v1238_v33  ;;  %v1256_v8 = vand.u32 4294901760, %v1255_v7  ;;  %v1262_v37 = vand.u32 4294901760, %v1261_v57  ;;  %1355 = vmatprep.subr.mxu0 %v6295_v41  ;;  %v1279_v47 = vsub.f32 %v6690_v48, %v1278_v51  ;;  %v1284_v36 = vand.u32 4294901760, %v6708_v49  ;;  %v549_v57 = vld [vmem:[#allocation12 + $0x8] sm:$0xff] }
 0x100   : > { %1245 = vmatpush1.msra.mxu1 %v1244_v31  ;;  %v1268_v15 = vand.u32 4294901760, %v1267_v9  ;;  %1358 = vmatpush1.msra.mxu0 %v6297_v42  ;;  %v1290_v50 = vand.u32 4294901760, %v6722_v22  ;;  %v1274_v60 = vand.u32 4294901760, %v1273_v32  ;;  %v6775_v32 = vand.u32 4294901760, %v549_v57 }
 0x101   : > { %1251 = vmatprep.subr.mxu1 %v1250_v59  ;;  %1361 = vmatprep.subr.mxu0 %v6323_v45  ;;  %v1285_v33 = vsub.f32 %v6708_v49, %v1284_v36  ;;  %v1280_v7 = vand.u32 4294901760, %v1279_v47  ;;  %v10617_v47 = vand.u32 4294901760, %v6353_v55 }
 0x102   : > { %1257 = vmatpush1.msra.mxu1 %v1256_v8  ;;  %1364 = vmatpush1.msra.mxu0 %v6325_v46  ;;  %v1291_v31 = vsub.f32 %v6722_v22, %v1290_v50  ;;  %10604 = vst [vmem:[#allocation48_spill] sm:$0xff] %v6775_v32  ;;  %v6782_v8 = vsub.f32 %v549_v57, %v6775_v32 }
 0x103   : > { %1263 = vmatprep.subr.mxu1 %v1262_v37  ;;  %v1286_v9 = vand.u32 4294901760, %v1285_v33  ;;  %1367 = vmatprep.subr.mxu0 %v6339_v52  ;;  %v10620_v33 = vld [vmem:[#allocation47_spill] sm:$0xff] }
 0x104   : > { %1269 = vmatpush1.msra.mxu1 %v1268_v15  ;;  %v1292_v59 = vand.u32 4294901760, %v1291_v31  ;;  %1370 = vmatpush1.msra.mxu0 %v6341_v53  ;;  %10605 = vst [vmem:[#allocation49_spill] sm:$0xff] %v6782_v8  ;;  %v6805_v37 = vand.u32 4294901760, %v6782_v8  ;;  %v10621_v57 = vand.u32 4294901760, %v10620_v33  ;;  %v10625_v31 = vld [vmem:[#allocation43_spill] sm:$0xff]  ;;  %v10635_v33 = vld [vmem:[#allocation32_spill] sm:$0xff] }
 0x105   : > { %1275 = vmatprep.subr.mxu1 %v1274_v60  ;;  %1373 = vmatprep.subr.mxu0 %v6369_v58 }
 0x106   : > { %1281 = vmatpush1.msra.mxu1 %v1280_v7  ;;  %1376 = vmatpush1.msra.mxu0 %v6383_v63  ;;  %10606 = vst [vmem:[#allocation50_spill] sm:$0xff] %v6805_v37  ;;  %v1094_v60 = vsub.f32 %v6782_v8, %v6805_v37  ;;  %v10622_v7 = vld [vmem:[#allocation46_spill] sm:$0xff] }
 0x107   : > { %1287 = vmatprep.subr.mxu1 %v1286_v9  ;;  %1379 = vmatprep.subr.mxu0 %v6409_v18  ;;  %v10623_v55 = vand.u32 4294901760, %v10622_v7  ;;  %v10627_v9 = vand.u32 4294901760, %v6281_v38  ;;  %v10634_v38 = vand.u32 4294901760, %v6323_v45  ;;  %v10398_v45 = vsub.s32 2, %v10635_v33  ;;  %v10638_v7 = vld [vmem:[#allocation33_spill] sm:$0xff] }
 0x108   : > { %1293 = vmatpush1.msra.mxu1 %v1292_v59  ;;  %1382 = vmatpush1.msra.mxu0 %v6425_v43  ;;  %v6849_v15 = vand.u32 4294901760, %v1094_v60  ;;  %v10629_v59 = vand.u32 4294901760, %v6295_v41  ;;  %v10630_v60 = vld [vmem:[#allocation44_spill] sm:$0xff]  ;;  %v10397_v41 = vsub.s32 3, %v10635_v33 }
 0x109   : > { %1328 = vmatmul.mubr.f32.vlgmr.msra.gmra.mxu1 %v6171_v1  ;;  %5136 = vmatprep.subr.msk.mxu1 %vm638_vm2, %v10603_v4 }
 0x10a   : > { %5137 = vmatpush1.msk.msra.mxu1 %vm586_vm3, %v10603_v4  ;;  %1385 = vmatprep.subr.mxu0 %v6452_v6  ;;  %10607 = vst [vmem:[#allocation51_spill] sm:$0xff] %v6849_v15 }
 0x10b   : > { %5138 = vmatprep.subr.msk.mxu1 %vm637_vm4, %v10603_v4  ;;  %1388 = vmatpush1.msra.mxu0 %v6466_v39 }
 0x10c   : > { %5139 = vmatpush1.msk.msra.mxu1 %vm585_vm5, %v10603_v4  ;;  %1391 = vmatprep.subr.mxu0 %v6484_v40 }
 0x10d   : > { %5140 = vmatprep.subr.msk.mxu1 %vm636_vm6, %v10603_v4  ;;  %1394 = vmatpush1.msra.mxu0 %v6498_v56 }
 0x10e   : > { %5141 = vmatpush1.msk.msra.mxu1 %vm584_vm7, %v10603_v4  ;;  %1397 = vmatprep.subr.mxu0 %v6516_v12 }
 0x10f   : > { %5142 = vmatprep.subr.msk.mxu1 %vm635_vm8, %v10603_v4  ;;  %1400 = vmatpush1.msra.mxu0 %v6530_v54 }
 0x110   : > { %5143 = vmatpush1.msk.msra.mxu1 %vm583_vm9, %v10603_v4  ;;  %1403 = vmatprep.subr.mxu0 %v6548_v35 }
 0x111   : > { %5144 = vmatprep.subr.msk.mxu1 %vm634_vm10, %v10603_v4  ;;  %1406 = vmatpush1.msra.mxu0 %v6562_v44 }
 0x112   : > { %5145 = vmatpush1.msk.msra.mxu1 %vm582_vm11, %v10603_v4  ;;  %1409 = vmatprep.subr.mxu0 %v6580_v13 }
 0x113   : > { %5146 = vmatprep.subr.msk.mxu1 %vm633_vm12, %v10603_v4  ;;  %1412 = vmatpush1.msra.mxu0 %v6594_v61 }
 0x114   : > { %5147 = vmatpush1.msk.msra.mxu1 %vm10389_vm13, %v10603_v4  ;;  %1415 = vmatprep.subr.mxu0 %v6612_v2  ;;  %vm10608_vm13 = vcmp.eq.s32.totalorder %v6216_v23, %v6227_v26 }
 0x115   : > { %5148 = vmatprep.subr.msk.mxu1 %vm10390_vm14, %v10603_v4  ;;  %1418 = vmatpush1.msra.mxu0 %v6626_v62  ;;  %vm10609_vm14 = vcmp.eq.s32.totalorder %v6216_v23, %v6232_v27 }
 0x116   : > { %5149 = vmatpush1.msk.msra.mxu1 %vm10391_vm15, %v10603_v4  ;;  %1421 = vmatprep.subr.mxu0 %v6644_v3  ;;  %vm10610_vm15 = vcmp.eq.s32.totalorder %v6219_v24, %v6227_v26 }
 0x117   : > { %5150 = vmatprep.subr.msk.mxu1 %vm10608_vm13, %v10603_v4  ;;  %1424 = vmatpush1.msra.mxu0 %v6658_v34  ;;  %vm10611_vm13 = vcmp.eq.s32.totalorder %v6219_v24, %v6232_v27 }
 0x118   : > { %5151 = vmatpush1.msk.msra.mxu1 %vm10609_vm14, %v10603_v4  ;;  %1096 = vmatmul.mubr.f32.gmra.mxu0 %v6849_v15  ;;  %vm10612_vm14 = vcmp.eq.s32.totalorder %v6222_v25, %v6227_v26 }
 0x119   : > { %5152 = vmatprep.subr.msk.mxu1 %vm10610_vm15, %v10603_v4  ;;  %1427 = vmatprep.subr.mxu0 %v6676_v0  ;;  %vm10613_vm15 = vcmp.eq.s32.totalorder %v6222_v25, %v6232_v27 }
 0x11a   : > { %5153 = vmatpush1.msk.msra.mxu1 %vm10611_vm13, %v10603_v4  ;;  %1430 = vmatpush1.msra.mxu0 %v6690_v48  ;;  %vm10614_vm13 = vcmp.eq.s32.totalorder %v6235_v28, %v6227_v26 }
 0x11b   : > { %5154 = vmatprep.subr.msk.mxu1 %vm10612_vm14, %v10603_v4  ;;  %1433 = vmatprep.subr.mxu0 %v6708_v49  ;;  %vm10615_vm14 = vcmp.eq.s32.totalorder %v6235_v28, %v6232_v27 }
 0x11c   : > { %5155 = vmatpush1.msk.msra.mxu1 %vm10613_vm15, %v10603_v4  ;;  %1436 = vmatpush1.msra.mxu0 %v6722_v22  ;;  %vm10616_vm15 = vcmp.eq.s32.totalorder %v6238_v29, %v6227_v26 }
 0x11d   : > { %5156 = vmatprep.subr.msk.mxu1 %vm10614_vm13, %v10603_v4  ;;  %1469 = vmatprep.mubr.f32.mxu0 %v10602_v10  ;;  %vm10618_vm13 = vcmp.eq.s32.totalorder %v6238_v29, %v6232_v27 }
 0x11e   : > { %5157 = vmatpush1.msk.msra.mxu1 %vm10615_vm14, %v10603_v4  ;;  %1472 = vmatmul.mubr.f32.vlgmr.msra.gmra.mxu0 %v6176_v5  ;;  %vm10619_vm14 = vcmp.eq.s32.totalorder %v6241_v30, %v6227_v26 }
 0x11f   : > { %5158 = vmatprep.subr.msk.mxu1 %vm10616_vm15, %v10603_v4  ;;  %1604 = vmatprep.subr.mxu0 %v10617_v47  ;;  %vm10624_vm15 = vcmp.eq.s32.totalorder %v6241_v30, %v6232_v27  ;;  %v10632_v47 = vand.u32 4294901760, %v6297_v42  ;;  %v10637_v42 = vand.u32 4294901760, %v6339_v52 }
 0x120   : > { %5159 = vmatpush1.msk.msra.mxu1 %vm10618_vm13, %v10603_v4  ;;  %1333 = vmatprep.mubr.f32.mxu1 %v10602_v10  ;;  %vm10626_vm13 = vcmp.eq.s32.totalorder %v10625_v31, %v6227_v26 }
 0x121   : > { %5160 = vmatprep.subr.msk.mxu1 %vm10619_vm14, %v10603_v4  ;;  %1608 = vmatpush1.msra.mxu0 %v10621_v57  ;;  %vm10628_vm14 = vcmp.eq.s32.totalorder %v10625_v31, %v6232_v27  ;;  %v10636_v57 = vand.u32 4294901760, %v6325_v46  ;;  %v10640_v46 = vand.u32 4294901760, %v6369_v58 }
 0x122   : > { %1335 = vmatmul.mubr.f32.gmra.mxu1 %v6775_v32  ;;  %1612 = vmatprep.subr.mxu0 %v10623_v55  ;;  %v10639_v55 = vand.u32 4294901760, %v6341_v53  ;;  %v10642_v53 = vand.u32 4294901760, %v6383_v63  ;;  %v10644_v63 = vand.u32 4294901760, %v6425_v43  ;;  %v10647_v43 = vand.u32 4294901760, %v6484_v40 }
 0x123   : > { %5161 = vmatpush1.msk.msra.mxu1 %vm10624_vm15, %v10603_v4  ;;  %1477 = vmatprep.mubr.f32.mxu0 %v10602_v10  ;;  %vm10631_vm15 = vcmp.eq.s32.totalorder %v10630_v60, %v6227_v26  ;;  %v10649_v40 = vand.u32 4294901760, %v6516_v12 }
 0x124   : > { %5162 = vmatprep.subr.msk.mxu1 %vm10626_vm13, %v10603_v4  ;;  %1616 = vmatpush1.msra.mxu0 %v10627_v9  ;;  %vm10633_vm13 = vcmp.eq.s32.totalorder %v10630_v60, %v6232_v27  ;;  %v10641_v9 = vld [vmem:[#allocation37_spill] sm:$0xff] }
 0x125   : > { %1480 = vmatmul.mubr.f32.gmra.mxu0 %v6782_v8  ;;  %5163 = vmatpush1.msk.msra.mxu1 %vm10628_vm14, %v10603_v4  ;;  %v6978_v52 = vrot.slane %v10641_v9, %v10397_v41  ;;  %v6994_v58 = vrot.slane %v10641_v9, %v10398_v45 }
 0x126   : > { %1620 = vmatprep.subr.mxu0 %v10629_v59  ;;  %5164 = vmatprep.subr.msk.mxu1 %vm10631_vm15, %v10603_v4  ;;  %v10643_v59 = vand.u32 4294901760, %v6409_v18  ;;  %v10645_v18 = vand.u32 4294901760, %v6452_v6  ;;  %vm10658_vm15 = vcmp.eq.s32.totalorder %v6216_v23, %v6227_v26 }
 0x127   : > { %1624 = vmatpush1.msra.mxu0 %v10632_v47  ;;  %5165 = vmatpush1.msk.msra.mxu1 %vm10633_vm13, %v10603_v4  ;;  %v10646_v47 = vand.u32 4294901760, %v6466_v39  ;;  %v10648_v39 = vand.u32 4294901760, %v6498_v56  ;;  %v10650_v56 = vand.u32 4294901760, %v6530_v54  ;;  %v10653_v54 = vand.u32 4294901760, %v6562_v44 }
 0x128   : > { %1628 = vmatprep.subr.mxu0 %v10634_v38  ;;  %5166 = vmatprep.subr.msk.mxu1 %vm623_vm0, %v10603_v4  ;;  %vm10414_vm14 = vcmp.eq.s32.totalorder %v6205_v19, %v6978_v52  ;;  %vm10396_vm13 = vcmp.eq.s32.totalorder %v6205_v19, %v6994_v58 }
 0x129   : > { %1632 = vmatpush1.msra.mxu0 %v10636_v57  ;;  %5167 = vmatpush1.msk.msra.mxu1 %vm571_vm1, %v10603_v4 }
 0x12a   : > { %1582 = vmatprep.mubr.f32.mxu1 %v10602_v10  ;;  %1636 = vmatprep.subr.mxu0 %v10637_v42  ;;  %v10651_v42 = vand.u32 4294901760, %v6548_v35  ;;  %v10655_v35 = vand.u32 4294901760, %v6580_v13 }
 0x12b   : > { %1586 = vmatmul.mubr.f32.vlgmr.msra.gmra.mxu1 %v10638_v7  ;;  %1640 = vmatpush1.msra.mxu0 %v10639_v55 }
 0x12c   : > { %5168 = vmatprep.subr.msk.mxu1 %vm638_vm2, %v10603_v4  ;;  %1644 = vmatprep.subr.mxu0 %v10640_v46  ;;  %vm10443_vm2 = vcmp.eq.s32.totalorder %v6187_v11, %v6978_v52 }
 0x12d   : > { %5169 = vmatpush1.msk.msra.mxu1 %vm586_vm3, %v10603_v4  ;;  %1648 = vmatpush1.msra.mxu0 %v10642_v53  ;;  %vm10444_vm3 = vcmp.eq.s32.totalorder %v6187_v11, %v6994_v58  ;;  %v5039_v6 = vsel %vm10443_vm2, 1.0, %v10602_v10  ;;  %v10657_v53 = vand.u32 4294901760, %v6594_v61  ;;  %v10659_v61 = vand.u32 4294901760, %v6612_v2 }
 0x12e   : > { %5170 = vmatprep.subr.msk.mxu1 %vm637_vm4, %v10603_v4  ;;  %1591 = vmatprep.mubr.f32.mxu1 %v10602_v10  ;;  %vm10400_vm4 = vcmp.eq.s32.totalorder %v6193_v14, %v6978_v52  ;;  %v5023_v38 = vsel %vm10444_vm3, 1.0, %v10602_v10  ;;  %v7057_v57 = vsub.f32 %v5039_v6, %v5039_v6 }
 0x12f   : > { %1652 = vmatprep.subr.mxu0 %v10643_v59  ;;  %5171 = vmatpush1.msk.msra.mxu1 %vm585_vm5, %v10603_v4  ;;  %vm10407_vm5 = vcmp.eq.s32.totalorder %v6193_v14, %v6994_v58  ;;  %v5038_v12 = vsel %vm10400_vm4, 1.0, %v10602_v10  ;;  %v7077_v55 = vsub.f32 %v5023_v38, %v5023_v38  ;;  %v5019_v38 = vsel %vm10396_vm13, 1.0, %v10602_v10 }
 0x130   : > { %1595 = vmatmul.mubr.f32.gmra.mxu1 %v6805_v37  ;;  %1656 = vmatpush1.msra.mxu0 %v10644_v63  ;;  %v5022_v46 = vsel %vm10407_vm5, 1.0, %v10602_v10  ;;  %v7091_v44 = vsub.f32 %v5038_v12, %v5038_v12  ;;  %v10406_v13 = vand.u32 4294901760, %v7057_v57  ;;  %v7215_v48 = vsub.f32 %v5019_v38, %v5019_v38 }
 0x131   : > { %5172 = vmatprep.subr.msk.mxu1 %vm636_vm6, %v10603_v4  ;;  %1660 = vmatprep.subr.mxu0 %v10645_v18  ;;  %vm10420_vm6 = vcmp.eq.s32.totalorder %v6197_v16, %v6978_v52  ;;  %v7116_v63 = vsub.f32 %v5022_v46, %v5022_v46  ;;  %vm10429_vm13 = vcmp.eq.s32.totalorder %v6219_v24, %v6994_v58 }
 0x132   : > { %5173 = vmatpush1.msk.msra.mxu1 %vm584_vm7, %v10603_v4  ;;  %1664 = vmatpush1.msra.mxu0 %v10646_v47  ;;  %vm10652_vm7 = vcmp.eq.s32.totalorder %v6208_v20, %v6232_v27  ;;  %v5037_v59 = vsel %vm10420_vm6, 1.0, %v10602_v10  ;;  %v10661_v47 = vand.u32 4294901760, %v6626_v62  ;;  %v10663_v62 = vand.u32 4294901760, %v6644_v3 }
 0x133   : > { %5174 = vmatprep.subr.msk.mxu1 %vm635_vm8, %v10603_v4  ;;  %1668 = vmatprep.subr.mxu0 %v10647_v43  ;;  %vm10416_vm8 = vcmp.eq.s32.totalorder %v6197_v16, %v6994_v58  ;;  %v10405_v43 = vand.u32 4294901760, %v7077_v55  ;;  %v7145_v6 = vsub.f32 %v5037_v59, %v5037_v59  ;;  %v10665_v3 = vand.u32 4294901760, %v6658_v34 }
 0x134   : > { %5175 = vmatpush1.msk.msra.mxu1 %vm583_vm9, %v10603_v4  ;;  %1672 = vmatpush1.msra.mxu0 %v10648_v39  ;;  %vm10654_vm9 = vcmp.eq.s32.totalorder %v6211_v21, %v6227_v26  ;;  %v5021_v18 = vsel %vm10416_vm8, 1.0, %v10602_v10  ;;  %v10404_v12 = vand.u32 4294901760, %v7091_v44  ;;  %v10667_v34 = vand.u32 4294901760, %v6676_v0 }
 0x135   : > { %5176 = vmatprep.subr.msk.mxu1 %vm634_vm10, %v10603_v4  ;;  %1676 = vmatprep.subr.mxu0 %v10649_v40  ;;  %vm10415_vm10 = vcmp.eq.s32.totalorder %v6200_v17, %v6978_v52  ;;  %v5035_v40 = vsel %vm10414_vm14, 1.0, %v10602_v10  ;;  %v10403_v59 = vand.u32 4294901760, %v7116_v63 }
 0x136   : > { %5177 = vmatpush1.msk.msra.mxu1 %vm582_vm11, %v10603_v4  ;;  %1680 = vmatpush1.msra.mxu0 %v10650_v56  ;;  %vm10656_vm11 = vcmp.eq.s32.totalorder %v6211_v21, %v6232_v27  ;;  %v5036_v2 = vsel %vm10415_vm10, 1.0, %v10602_v10  ;;  %v7168_v56 = vsub.f32 %v7057_v57, %v10406_v13 }
 0x137   : > { %5178 = vmatprep.subr.msk.mxu1 %vm633_vm12, %v10603_v4  ;;  %1684 = vmatprep.subr.mxu0 %v10651_v42  ;;  %vm10413_vm12 = vcmp.eq.s32.totalorder %v6200_v17, %v6994_v58  ;;  %v7179_v42 = vsub.f32 %v5021_v18, %v5021_v18  ;;  %v10399_v18 = vand.u32 4294901760, %v7145_v6 }
 0x138   : > { %5179 = vmatpush1.msk.msra.mxu1 %vm10652_vm7, %v10603_v4  ;;  %1688 = vmatpush1.msra.mxu0 %v10653_v54  ;;  %vm10660_vm7 = vcmp.eq.s32.totalorder %v6216_v23, %v6232_v27  ;;  %v5020_v39 = vsel %vm10413_vm12, 1.0, %v10602_v10  ;;  %v7181_v54 = vsub.f32 %v5036_v2, %v5036_v2  ;;  %v7236_v2 = vsub.f32 %v7091_v44, %v10404_v12 }
 0x139   : > { %5180 = vmatprep.subr.msk.mxu1 %vm10654_vm9, %v10603_v4  ;;  %1692 = vmatprep.subr.mxu0 %v10655_v35  ;;  %vm10393_vm9 = vcmp.eq.s32.totalorder %v6208_v20, %v6978_v52  ;;  %v7197_v0 = vsub.f32 %v5020_v39, %v5020_v39  ;;  %v7277_v38 = vsub.f32 %v7145_v6, %v10399_v18  ;;  %v10410_v12 = vand.u32 4294901760, %v7215_v48 }
 0x13a   : > { %5181 = vmatpush1.msk.msra.mxu1 %vm10656_vm11, %v10603_v4  ;;  %1696 = vmatpush1.msra.mxu0 %v10657_v53  ;;  %vm10392_vm11 = vcmp.eq.s32.totalorder %v6208_v20, %v6994_v58  ;;  %v5034_v46 = vsel %vm10393_vm9, 1.0, %v10602_v10  ;;  %v7202_v53 = vsub.f32 %v7077_v55, %v10405_v43  ;;  %vm10669_vm9 = vcmp.eq.s32.totalorder %v6235_v28, %v6227_v26 }
 0x13b   : > { %5182 = vmatprep.subr.msk.mxu1 %vm10658_vm15, %v10603_v4  ;;  %1700 = vmatprep.subr.mxu0 %v10659_v61  ;;  %vm10662_vm15 = vcmp.eq.s32.totalorder %v6219_v24, %v6227_v26  ;;  %v5018_v35 = vsel %vm10392_vm11, 1.0, %v10602_v10  ;;  %vm10395_vm11 = vcmp.eq.s32.totalorder %v6211_v21, %v6994_v58  ;;  %v10688_v9 = vand.u32 4294901760, %v7236_v2 }
 0x13c   : > { %5183 = vmatpush1.msk.msra.mxu1 %vm10660_vm7, %v10603_v4  ;;  %1704 = vmatpush1.msra.mxu0 %v10661_v47  ;;  %vm10664_vm7 = vcmp.eq.s32.totalorder %v6219_v24, %v6232_v27  ;;  %v7231_v47 = vsub.f32 %v5018_v35, %v5018_v35  ;;  %v5017_v22 = vsel %vm10395_vm11, 1.0, %v10602_v10  ;;  %vm10428_vm11 = vcmp.eq.s32.totalorder %v6219_v24, %v6978_v52 }
 0x13d   : > { %5184 = vmatprep.subr.msk.mxu1 %vm10662_vm15, %v10603_v4  ;;  %1708 = vmatprep.subr.mxu0 %v10663_v62  ;;  %vm10394_vm15 = vcmp.eq.s32.totalorder %v6211_v21, %v6978_v52  ;;  %v10402_v62 = vand.u32 4294901760, %v7181_v54  ;;  %v7293_v35 = vsub.f32 %v5017_v22, %v5017_v22  ;;  %v10694_v15 = vand.u32 4294901760, %v7277_v38 }
 0x13e   : > { %5185 = vmatpush1.msk.msra.mxu1 %vm10664_vm7, %v10603_v4  ;;  %1712 = vmatpush1.msra.mxu0 %v10665_v3  ;;  %vm10666_vm7 = vcmp.eq.s32.totalorder %v6222_v25, %v6227_v26  ;;  %v5033_v61 = vsel %vm10394_vm15, 1.0, %v10602_v10  ;;  %vm10672_vm15 = vcmp.eq.s32.totalorder %v6238_v29, %v6232_v27  ;;  %v7262_v3 = vsub.f32 %v7116_v63, %v10403_v59 }
 0x13f   : > { %5186 = vmatprep.subr.msk.mxu1 %vm10666_vm7, %v10603_v4  ;;  %1716 = vmatprep.subr.mxu0 %v10667_v34  ;;  %vm10668_vm7 = vcmp.eq.s32.totalorder %v6222_v25, %v6232_v27  ;;  %v10408_v34 = vand.u32 4294901760, %v7197_v0  ;;  %v7317_v18 = vsub.f32 %v7181_v54, %v10402_v62  ;;  %v5031_v62 = vsel %vm10428_vm11, 1.0, %v10602_v10 }
 0x140   : > { %5187 = vmatpush1.msk.msra.mxu1 %vm10668_vm7, %v10603_v4  ;;  %1720 = vmatpush1.msra.mxu0 %v1278_v51  ;;  %v7213_v51 = vsub.f32 %v5035_v40, %v5035_v40  ;;  %vm10670_vm7 = vcmp.eq.s32.totalorder %v6235_v28, %v6232_v27  ;;  %v7257_v40 = vsub.f32 %v5033_v61, %v5033_v61  ;;  %v5015_v59 = vsel %vm10429_vm13, 1.0, %v10602_v10 }
 0x141   : > { %5188 = vmatprep.subr.msk.mxu1 %vm10669_vm9, %v10603_v4  ;;  %1724 = vmatprep.subr.mxu0 %v1284_v36  ;;  %v7229_v36 = vsub.f32 %v5034_v46, %v5034_v46  ;;  %vm10671_vm9 = vcmp.eq.s32.totalorder %v6238_v29, %v6227_v26  ;;  %v7384_v39 = vsub.f32 %v5031_v62, %v5031_v62  ;;  %v10683_v46 = vand.u32 4294901760, %v7231_v47 }
 0x142   : > { %5189 = vmatpush1.msk.msra.mxu1 %vm10670_vm7, %v10603_v4  ;;  %1728 = vmatpush1.msra.mxu0 %v1290_v50  ;;  %vm735_vm7 = vcmp.eq.s32.totalorder %v6216_v23, %v6978_v52  ;;  %v10401_v50 = vand.u32 4294901760, %v7179_v42  ;;  %v10409_v41 = vand.u32 4294901760, %v7213_v51  ;;  %v7386_v49 = vsub.f32 %v5015_v59, %v5015_v59 }
 0x143   : > { %1761 = vmatprep.mubr.f32.mxu0 %v10602_v10  ;;  %5190 = vmatprep.subr.msk.mxu1 %vm10671_vm9, %v10603_v4  ;;  %vm10427_vm9 = vcmp.eq.s32.totalorder %v6216_v23, %v6994_v58  ;;  %v5032_v61 = vsel %vm735_vm7, 1.0, %v10602_v10 }
 0x144   : > { %1763 = vmatmul.mubr.f32.vlgmr.msra.gmra.mxu0 %v6171_v1  ;;  %5191 = vmatpush1.msk.msra.mxu1 %vm10672_vm15, %v10603_v4  ;;  %vm10673_vm15 = vcmp.eq.s32.totalorder %v6241_v30, %v6227_v26  ;;  %v7308_v45 = vsub.f32 %v7179_v42, %v10401_v50  ;;  %v5016_v22 = vsel %vm10427_vm9, 1.0, %v10602_v10  ;;  %v7345_v13 = vsub.f32 %v5032_v61, %v5032_v61 }
 0x145   : > { %5200 = vmatprep.subr.msk.mxu0 %vm10443_vm2, %v10603_v4  ;;  %5192 = vmatprep.subr.msk.mxu1 %vm10673_vm15, %v10603_v4  ;;  %vm10674_vm15 = vcmp.eq.s32.totalorder %v6241_v30, %v6232_v27  ;;  %v7350_v50 = vsub.f32 %v7197_v0, %v10408_v34  ;;  %v7362_v61 = vsub.f32 %v5016_v22, %v5016_v22 }
 0x146   : > { %5201 = vmatpush1.msk.msra.mxu0 %vm10444_vm3, %v10603_v4  ;;  %5193 = vmatpush1.msk.msra.mxu1 %vm10674_vm15, %v10603_v4  ;;  %vm10430_vm15 = vcmp.eq.s32.totalorder %v6222_v25, %v6978_v52  ;;  %v7367_v34 = vsub.f32 %v7213_v51, %v10409_v41  ;;  %v7399_v22 = vsub.f32 %v7215_v48, %v10410_v12 }
 0x147   : > { %5202 = vmatprep.subr.msk.mxu0 %vm10400_vm4, %v10603_v4  ;;  %1768 = vmatprep.mubr.f32.mxu0 %v10602_v10  ;;  %vm10675_vm4 = vcmp.eq.s32.totalorder %v10625_v31, %v6227_v26  ;;  %v5030_v43 = vsel %vm10430_vm15, 1.0, %v10602_v10  ;;  %v7460_v41 = vsub.f32 %v7231_v47, %v10683_v46  ;;  %v10686_v46 = vand.u32 4294901760, %v7257_v40 }
 0x148   : > { %5194 = vmatprep.subr.msk.mxu1 %vm10675_vm4, %v10603_v4  ;;  %5203 = vmatpush1.msk.msra.mxu0 %vm10407_vm5, %v10603_v4  ;;  %vm10676_vm4 = vcmp.eq.s32.totalorder %v10625_v31, %v6232_v27  ;;  %vm681_vm5 = vcmp.eq.s32.totalorder %v6222_v25, %v6994_v58  ;;  %v7417_v12 = vsub.f32 %v5030_v43, %v5030_v43  ;;  %v10693_v5 = vand.u32 4294901760, %v7362_v61 }
 0x149   : > { %1770 = vmatmul.mubr.f32.gmra.mxu0 %v6775_v32  ;;  %5195 = vmatpush1.msk.msra.mxu1 %vm10676_vm4, %v10603_v4  ;;  %vm10677_vm4 = vcmp.eq.s32.totalorder %v10630_v60, %v6227_v26  ;;  %v5014_v59 = vsel %vm681_vm5, 1.0, %v10602_v10  ;;  %v10681_v26 = vand.u32 4294901760, %v7168_v56  ;;  %v10684_v56 = vand.u32 4294901760, %v7202_v53 }
 0x14a   : > { %5204 = vmatprep.subr.msk.mxu0 %vm10420_vm6, %v10603_v4  ;;  %5196 = vmatprep.subr.msk.mxu1 %vm10677_vm4, %v10603_v4  ;;  %vm10678_vm4 = vcmp.eq.s32.totalorder %v10630_v60, %v6232_v27  ;;  %v10679_v27 = vand.u32 4294901760, %v7229_v36  ;;  %v7441_v43 = vsub.f32 %v5014_v59, %v5014_v59  ;;  %v2064_v59 = vand.u32 4294901760, %v7399_v22 }
 0x14b   : > { %5205 = vmatpush1.msk.msra.mxu0 %vm10416_vm8, %v10603_v4  ;;  %5197 = vmatpush1.msk.msra.mxu1 %vm10678_vm4, %v10603_v4  ;;  %vm732_vm4 = vcmp.eq.s32.totalorder %v6235_v28, %v6978_v52  ;;  %vm10685_vm8 = vcmp.eq.s32.totalorder %v6208_v20, %v6994_v58  ;;  %vm10449_vm6 = vcmp.eq.s32.totalorder %v10625_v31, %v6978_v52 }
 0x14c   : > { %5206 = vmatprep.subr.msk.mxu0 %vm10415_vm10, %v10603_v4  ;;  %5198 = vmatprep.subr.msk.mxu1 %vm623_vm0, %v10603_v4  ;;  %v7430_v37 = vsub.f32 %v7229_v36, %v10679_v27  ;;  %vm680_vm0 = vcmp.eq.s32.totalorder %v6235_v28, %v6994_v58  ;;  %v5029_v27 = vsel %vm732_vm4, 1.0, %v10602_v10  ;;  %vm10682_vm10 = vcmp.eq.s32.totalorder %v6208_v20, %v6978_v52 }
 0x14d   : > { %5207 = vmatpush1.msk.msra.mxu0 %vm10413_vm12, %v10603_v4  ;;  %5199 = vmatpush1.msk.msra.mxu1 %vm571_vm1, %v10603_v4  ;;  %vm731_vm1 = vcmp.eq.s32.totalorder %v6238_v29, %v6978_v52  ;;  %vm10680_vm12 = vcmp.eq.s32.totalorder %v6205_v19, %v6994_v58  ;;  %v5013_v22 = vsel %vm680_vm0, 1.0, %v10602_v10  ;;  %v7493_v8 = vsub.f32 %v5029_v27, %v5029_v27 }
 0x14e   : > { %1872 = vmatprep.mubr.f32.mxu1 %v10602_v10  ;;  %5208 = vmatprep.subr.msk.mxu0 %vm10414_vm14, %v10603_v4  ;;  %vm679_vm14 = vcmp.eq.s32.totalorder %v6238_v29, %v6994_v58  ;;  %v5028_v53 = vsel %vm731_vm1, 1.0, %v10602_v10  ;;  %v2070_v7 = vand.u32 4294901760, %v7430_v37  ;;  %v10691_v37 = vand.u32 4294901760, %v7345_v13 }
 0x14f   : > { %1874 = vmatmul.mubr.f32.vlgmr.msra.gmra.mxu1 %v6171_v1  ;;  %5209 = vmatpush1.msk.msra.mxu0 %vm10680_vm12, %v10603_v4  ;;  %vm730_vm12 = vcmp.eq.s32.totalorder %v6241_v30, %v6978_v52  ;;  %v5026_v38 = vsel %vm10449_vm6, 1.0, %v10602_v10 }
 0x150   : > { %2011 = vmatprep.subr.mxu1 %v10681_v26  ;;  %5210 = vmatprep.subr.msk.mxu0 %vm10682_vm10, %v10603_v4  ;;  %v7478_v26 = vsub.f32 %v7257_v40, %v10686_v46  ;;  %v5012_v46 = vsel %vm679_vm14, 1.0, %v10602_v10  ;;  %vm10689_vm10 = vcmp.eq.s32.totalorder %v6211_v21, %v6978_v52  ;;  %v7510_v2 = vsub.f32 %v7345_v13, %v10691_v37 }
 0x151   : > { %2017 = vmatpush1.msra.mxu1 %v10684_v56  ;;  %5211 = vmatpush1.msk.msra.mxu0 %vm10685_vm8, %v10603_v4  ;;  %v10687_v56 = vand.u32 4294901760, %v7293_v35  ;;  %vm678_vm8 = vcmp.eq.s32.totalorder %v6241_v30, %v6994_v58  ;;  %v5027_v27 = vsel %vm730_vm12, 1.0, %v10602_v10  ;;  %v7527_v37 = vsub.f32 %v5028_v53, %v5028_v53 }
 0x152   : > { %2023 = vmatprep.subr.mxu1 %v10688_v9  ;;  %1879 = vmatprep.mubr.f32.mxu1 %v10602_v10  ;;  %v10690_v9 = vand.u32 4294901760, %v7262_v3  ;;  %v2076_v3 = vand.u32 4294901760, %v7460_v41  ;;  %v10695_v53 = vand.u32 4294901760, %v7308_v45  ;;  %v10696_v45 = vand.u32 4294901760, %v7317_v18 }
 0x153   : > { %v7487_v62 = vsub.f32 %v7293_v35, %v10687_v56  ;;  %5212 = vmatprep.subr.msk.mxu0 %vm10689_vm10, %v10603_v4  ;;  %1881 = vmatmul.mubr.f32.gmra.mxu1 %v6775_v32  ;;  %vm10692_vm10 = vcmp.eq.s32.totalorder %v6211_v21, %v6994_v58  ;;  %v7532_v56 = vsub.f32 %v7362_v61, %v10693_v5  ;;  %v2082_v32 = vand.u32 4294901760, %v7478_v26 }
 0x154   : > { %2029 = vmatpush1.msra.mxu1 %v10690_v9  ;;  %5213 = vmatpush1.msk.msra.mxu0 %vm10692_vm10, %v10603_v4  ;;  %v7525_v9 = vsub.f32 %v5013_v22, %v5013_v22  ;;  %v7542_v22 = vsub.f32 %v5012_v46, %v5012_v46  ;;  %v5011_v5 = vsel %vm678_vm8, 1.0, %v10602_v10  ;;  %vm10448_vm10 = vcmp.eq.s32.totalorder %v10625_v31, %v6994_v58 }
 0x155   : > { %2035 = vmatprep.subr.mxu1 %v10694_v15  ;;  %5214 = vmatprep.subr.msk.mxu0 %vm735_vm7, %v10603_v4  ;;  %v2088_v41 = vand.u32 4294901760, %v7487_v62  ;;  %v7554_v15 = vsub.f32 %v5027_v27, %v5027_v27  ;;  %v2094_v26 = vand.u32 4294901760, %v7510_v2  ;;  %v10697_v46 = vand.u32 4294901760, %v7384_v39 }
 0x156   : > { %2041 = vmatpush1.msra.mxu1 %v10695_v53  ;;  %5215 = vmatpush1.msk.msra.mxu0 %vm10427_vm9, %v10603_v4  ;;  %v10431_v53 = vand.u32 4294901760, %v7417_v12  ;;  %vm10447_vm9 = vcmp.eq.s32.totalorder %v10630_v60, %v6978_v52  ;;  %v10698_v62 = vand.u32 4294901760, %v7350_v50  ;;  %v2100_v18 = vand.u32 4294901760, %v7532_v56 }
 0x157   : > { %2047 = vmatprep.subr.mxu1 %v10696_v45  ;;  %5216 = vmatprep.subr.msk.mxu0 %vm10428_vm11, %v10603_v4  ;;  %v2105_v27 = vsub.f32 %v7384_v39, %v10697_v46  ;;  %v7583_v2 = vsub.f32 %v5011_v5, %v5011_v5  ;;  %v10434_v45 = vand.u32 4294901760, %v7441_v43  ;;  %vm10446_vm11 = vcmp.eq.s32.totalorder %v10630_v60, %v6994_v58 }
 0x158   : > { %2053 = vmatpush1.msra.mxu1 %v10698_v62  ;;  %5217 = vmatpush1.msk.msra.mxu0 %vm10429_vm13, %v10603_v4  ;;  %v10699_v46 = vand.u32 4294901760, %v7367_v34  ;;  %v7594_v50 = vsub.f32 %v5026_v38, %v5026_v38  ;;  %v5010_v56 = vsel %vm10448_vm10, 1.0, %v10602_v10  ;;  %vm10445_vm13 = vcmp.eq.s32.totalorder %v10635_v33, %v6978_v52 }
 0x159   : > { %5218 = vmatprep.subr.msk.mxu0 %vm10430_vm15, %v10603_v4  ;;  %v10700_v34 = vand.u32 4294901760, %v7386_v49  ;;  %v5025_v62 = vsel %vm10447_vm9, 1.0, %v10602_v10  ;;  %vm10442_vm15 = vcmp.eq.s32.totalorder %v10635_v33, %v6994_v58  ;;  %v5009_v5 = vsel %vm10446_vm11, 1.0, %v10602_v10  ;;  %1983 = vmatprep.mubr.f32.mxu0 %v10602_v10  ;;  %v10712_v33 = vld [vmem:[#allocation45_spill] sm:$0xff] }
 0x15a   : > { %2059 = vmatprep.subr.mxu1 %v10699_v46  ;;  %5219 = vmatpush1.msk.msra.mxu0 %vm681_vm5, %v10603_v4  ;;  %v10702_v25 = vand.u32 4294901760, %v7525_v9  ;;  %v10703_v29 = vand.u32 4294901760, %v7527_v37  ;;  %v10704_v24 = vand.u32 4294901760, %v7542_v22 }
 0x15b   : > { %2065 = vmatpush1.msra.mxu1 %v2064_v59  ;;  %v2111_v38 = vsub.f32 %v7386_v49, %v10700_v34  ;;  %5220 = vmatprep.subr.msk.mxu0 %vm732_vm4, %v10603_v4  ;;  %v2106_v59 = vand.u32 4294901760, %v2105_v27  ;;  %v2117_v34 = vsub.f32 %v7417_v12, %v10431_v53  ;;  %v2123_v27 = vsub.f32 %v7441_v43, %v10434_v45 }
 0x15c   : > { %2071 = vmatprep.subr.mxu1 %v2070_v7  ;;  %5221 = vmatpush1.msk.msra.mxu0 %vm680_vm0, %v10603_v4  ;;  %v7633_v7 = vsub.f32 %v5010_v56, %v5010_v56  ;;  %v5024_v53 = vsel %vm10445_vm13, 1.0, %v10602_v10  ;;  %v10701_v56 = vand.u32 4294901760, %v7493_v8  ;;  %v5008_v45 = vsel %vm10442_vm15, 1.0, %v10602_v10 }
 0x15d   : > { %2077 = vmatpush1.msra.mxu1 %v2076_v3  ;;  %5222 = vmatprep.subr.msk.mxu0 %vm731_vm1, %v10603_v4  ;;  %v7647_v3 = vsub.f32 %v5025_v62, %v5025_v62  ;;  %v7661_v62 = vsub.f32 %v5009_v5, %v5009_v5  ;;  %v7671_v28 = vsub.f32 %v5024_v53, %v5024_v53 }
 0x15e   : > { %2083 = vmatprep.subr.mxu1 %v2082_v32  ;;  %v2129_v46 = vsub.f32 %v7493_v8, %v10701_v56  ;;  %5223 = vmatpush1.msk.msra.mxu0 %vm679_vm14, %v10603_v4  ;;  %v2112_v32 = vand.u32 4294901760, %v2111_v38  ;;  %v2135_v56 = vsub.f32 %v7525_v9, %v10702_v25  ;;  %v2141_v5 = vsub.f32 %v7527_v37, %v10703_v29 }
 0x15f   : > { %2089 = vmatpush1.msra.mxu1 %v2088_v41  ;;  %5224 = vmatprep.subr.msk.mxu0 %vm730_vm12, %v10603_v4  ;;  %v2118_v41 = vand.u32 4294901760, %v2117_v34  ;;  %v2124_v25 = vand.u32 4294901760, %v2123_v27  ;;  %v2147_v53 = vsub.f32 %v7542_v22, %v10704_v24 }
 0x160   : > { %2095 = vmatprep.subr.mxu1 %v2094_v26  ;;  %5225 = vmatpush1.msk.msra.mxu0 %vm678_vm8, %v10603_v4  ;;  %v7681_v26 = vsub.f32 %v5008_v45, %v5008_v45  ;;  %v2130_v29 = vand.u32 4294901760, %v2129_v46  ;;  %v2136_v24 = vand.u32 4294901760, %v2135_v56  ;;  %v2142_v46 = vand.u32 4294901760, %v2141_v5 }
 0x161   : > { %2101 = vmatpush1.msra.mxu1 %v2100_v18  ;;  %5226 = vmatprep.subr.msk.mxu0 %vm10449_vm6, %v10603_v4  ;;  %v10705_v18 = vand.u32 4294901760, %v7554_v15  ;;  %v2188_v45 = vand.u32 4294901760, %v7671_v28  ;;  %v2148_v56 = vand.u32 4294901760, %v2147_v53 }
 0x162   : > { %2107 = vmatprep.subr.mxu1 %v2106_v59  ;;  %5227 = vmatpush1.msk.msra.mxu0 %vm10448_vm10, %v10603_v4  ;;  %v10706_v59 = vand.u32 4294901760, %v7583_v2 }
 0x163   : > { %v2153_v38 = vsub.f32 %v7554_v15, %v10705_v18  ;;  %2113 = vmatpush1.msra.mxu1 %v2112_v32  ;;  %5228 = vmatprep.subr.msk.mxu0 %vm10447_vm9, %v10603_v4  ;;  %v10707_v32 = vand.u32 4294901760, %v7594_v50 }
 0x164   : > { %v2159_v27 = vsub.f32 %v7583_v2, %v10706_v59  ;;  %2119 = vmatprep.subr.mxu1 %v2118_v41  ;;  %5229 = vmatpush1.msk.msra.mxu0 %vm10446_vm11, %v10603_v4  ;;  %v10708_v41 = vand.u32 4294901760, %v7633_v7 }
 0x165   : > { %v2165_v18 = vsub.f32 %v7594_v50, %v10707_v32  ;;  %2125 = vmatpush1.msra.mxu1 %v2124_v25  ;;  %5230 = vmatprep.subr.msk.mxu0 %vm10445_vm13, %v10603_v4  ;;  %v2154_v5 = vand.u32 4294901760, %v2153_v38  ;;  %v10709_v25 = vand.u32 4294901760, %v7647_v3  ;;  %v2189_v38 = vsub.f32 %v7671_v28, %v2188_v45 }
 0x166   : > { %v2171_v59 = vsub.f32 %v7633_v7, %v10708_v41  ;;  %2131 = vmatprep.subr.mxu1 %v2130_v29  ;;  %5231 = vmatpush1.msk.msra.mxu0 %vm10442_vm15, %v10603_v4  ;;  %v2160_v53 = vand.u32 4294901760, %v2159_v27  ;;  %v10710_v41 = vand.u32 4294901760, %v7661_v62  ;;  %vm10713_vm15 = vcmp.eq.s32.totalorder %v6193_v14, %v6978_v52 }
 0x167   : > { %v2177_v32 = vsub.f32 %v7647_v3, %v10709_v25  ;;  %2137 = vmatpush1.msra.mxu1 %v2136_v24  ;;  %v2166_v34 = vand.u32 4294901760, %v2165_v18  ;;  %2247 = vmatprep.subr.mxu0 %v7057_v57  ;;  %v10711_v25 = vand.u32 4294901760, %v7681_v26  ;;  %v2190_v18 = vand.u32 4294901760, %v2189_v38 }
 0x168   : > { %v2183_v29 = vsub.f32 %v7661_v62, %v10710_v41  ;;  %2143 = vmatprep.subr.mxu1 %v2142_v46  ;;  %v2172_v24 = vand.u32 4294901760, %v2171_v59  ;;  %1989 = vmatmul.mubr.f32.vlgmr.msra.gmra.mxu0 %v10712_v33  ;;  %v10729_v59 = vld [vmem:[#allocation40_spill] sm:$0xff]  ;;  %v10735_v38 = vand.u32 4294901760, %v7057_v57  ;;  %v10739_v57 = vand.u32 4294901760, %v7116_v63 }
 0x169   : > { %2149 = vmatpush1.msra.mxu1 %v2148_v56  ;;  %v2195_v27 = vsub.f32 %v7681_v26, %v10711_v25  ;;  %v2178_v41 = vand.u32 4294901760, %v2177_v32  ;;  %2250 = vmatpush1.msra.mxu0 %v7077_v55  ;;  %v10732_v32 = vld [vmem:[#allocation41_spill] sm:$0xff]  ;;  %v10737_v25 = vld [vmem:[#allocation48_spill] sm:$0xff] }
 0x16a   : > { %2155 = vmatprep.subr.mxu1 %v2154_v5  ;;  %v2184_v46 = vand.u32 4294901760, %v2183_v29  ;;  %2253 = vmatprep.subr.mxu0 %v7091_v44  ;;  %v10731_v5 = vld [vmem:[#allocation51_spill] sm:$0xff] }
 0x16b   : > { %2161 = vmatpush1.msra.mxu1 %v2160_v53  ;;  %2256 = vmatpush1.msra.mxu0 %v7116_v63  ;;  %v2196_v56 = vand.u32 4294901760, %v2195_v27  ;;  %v10733_v53 = vld [vmem:[#allocation42_spill] sm:$0xff]  ;;  %v10734_v29 = vld [vmem:[#allocation31_spill] sm:$0xff]  ;;  %v10738_v27 = vand.u32 4294901760, %v7091_v44  ;;  %v10741_v44 = vand.u32 4294901760, %v7145_v6  ;;  %v10743_v63 = vand.u32 4294901760, %v7181_v54 }
 0x16c   : > { %2167 = vmatprep.subr.mxu1 %v2166_v34  ;;  %2259 = vmatprep.subr.mxu0 %v7145_v6  ;;  %v10726_v34 = vld [vmem:[#allocation39_spill] sm:$0xff]  ;;  %v10745_v6 = vand.u32 4294901760, %v7197_v0 }
 0x16d   : > { %2173 = vmatpush1.msra.mxu1 %v2172_v24  ;;  %2262 = vmatpush1.msra.mxu0 %v7179_v42  ;;  %v10736_v24 = vand.u32 4294901760, %v7077_v55  ;;  %v10740_v55 = vld [vmem:[#allocation49_spill] sm:$0xff] }
 0x16e   : > { %2179 = vmatprep.subr.mxu1 %v2178_v41  ;;  %2265 = vmatprep.subr.mxu0 %v7181_v54  ;;  %v10742_v41 = vand.u32 4294901760, %v7179_v42  ;;  %v10747_v54 = vand.u32 4294901760, %v7213_v51 }
 0x16f   : > { %2185 = vmatpush1.msra.mxu1 %v2184_v46  ;;  %2268 = vmatpush1.msra.mxu0 %v7197_v0  ;;  %v10744_v46 = vld [vmem:[#allocation32_spill] sm:$0xff]  ;;  %v10751_v0 = vand.u32 4294901760, %v7229_v36 }
 0x170   : > { %2191 = vmatprep.subr.mxu1 %v2190_v18  ;;  %2230 = vmatprep.mubr.f32.mxu1 %v10602_v10  ;;  %v10456_v42 = vsub.s32 5, %v10744_v46  ;;  %v10457_v18 = vsub.s32 4, %v10744_v46 }
 0x171   : > { %2197 = vmatpush1.msra.mxu1 %v2196_v56  ;;  %2271 = vmatprep.subr.mxu0 %v7213_v51  ;;  %v10748_v56 = vld [vmem:[#allocation33_spill] sm:$0xff]  ;;  %v10753_v51 = vand.u32 4294901760, %v7231_v47 }
 0x172   : > { %2232 = vmatmul.mubr.f32.vlgmr.msra.gmra.mxu1 %v6171_v1  ;;  %2274 = vmatpush1.msra.mxu0 %v7215_v48 }
 0x173   : > { %5232 = vmatprep.subr.msk.mxu1 %vm10443_vm2, %v10603_v4  ;;  %2277 = vmatprep.subr.mxu0 %v7229_v36  ;;  %vm10714_vm2 = vcmp.eq.s32.totalorder %v6193_v14, %v6994_v58  ;;  %v10756_v36 = vand.u32 4294901760, %v7257_v40 }
 0x174   : > { %5233 = vmatpush1.msk.msra.mxu1 %vm10444_vm3, %v10603_v4  ;;  %2280 = vmatpush1.msra.mxu0 %v7231_v47  ;;  %vm10715_vm3 = vcmp.eq.s32.totalorder %v6197_v16, %v6978_v52  ;;  %v10758_v47 = vld [vmem:[#allocation50_spill] sm:$0xff] }
 0x175   : > { %5234 = vmatprep.subr.msk.mxu1 %vm10713_vm15, %v10603_v4  ;;  %2283 = vmatprep.subr.mxu0 %v7257_v40  ;;  %vm10716_vm15 = vcmp.eq.s32.totalorder %v6197_v16, %v6994_v58  ;;  %v10763_v40 = vand.u32 4294901760, %v7362_v61 }
 0x176   : > { %5235 = vmatpush1.msk.msra.mxu1 %vm10714_vm2, %v10603_v4  ;;  %2286 = vmatpush1.msra.mxu0 %v7293_v35  ;;  %vm10717_vm2 = vcmp.eq.s32.totalorder %v6200_v17, %v6978_v52 }
 0x177   : > { %5236 = vmatprep.subr.msk.mxu1 %vm10715_vm3, %v10603_v4  ;;  %2289 = vmatprep.subr.mxu0 %v7345_v13  ;;  %vm10718_vm3 = vcmp.eq.s32.totalorder %v6200_v17, %v6994_v58 }
 0x178   : > { %5237 = vmatpush1.msk.msra.mxu1 %vm10716_vm15, %v10603_v4  ;;  %2292 = vmatpush1.msra.mxu0 %v7362_v61  ;;  %vm10719_vm15 = vcmp.eq.s32.totalorder %v6205_v19, %v6978_v52 }
 0x179   : > { %5238 = vmatprep.subr.msk.mxu1 %vm10717_vm2, %v10603_v4  ;;  %2295 = vmatprep.subr.mxu0 %v7384_v39  ;;  %vm10720_vm2 = vcmp.eq.s32.totalorder %v6205_v19, %v6994_v58 }
 0x17a   : > { %5239 = vmatpush1.msk.msra.mxu1 %vm10718_vm3, %v10603_v4  ;;  %2298 = vmatpush1.msra.mxu0 %v7386_v49  ;;  %vm10721_vm3 = vcmp.eq.s32.totalorder %v6208_v20, %v6978_v52 }
 0x17b   : > { %5240 = vmatprep.subr.msk.mxu1 %vm10719_vm15, %v10603_v4  ;;  %2301 = vmatprep.subr.mxu0 %v7417_v12  ;;  %vm10722_vm15 = vcmp.eq.s32.totalorder %v6208_v20, %v6994_v58 }
 0x17c   : > { %5241 = vmatpush1.msk.msra.mxu1 %vm10720_vm2, %v10603_v4  ;;  %2304 = vmatpush1.msra.mxu0 %v7441_v43  ;;  %vm10723_vm2 = vcmp.eq.s32.totalorder %v6211_v21, %v6978_v52 }
 0x17d   : > { %5242 = vmatprep.subr.msk.mxu1 %vm10721_vm3, %v10603_v4  ;;  %2307 = vmatprep.subr.mxu0 %v7493_v8  ;;  %vm10724_vm3 = vcmp.eq.s32.totalorder %v6211_v21, %v6994_v58 }
 0x17e   : > { %5243 = vmatpush1.msk.msra.mxu1 %vm10722_vm15, %v10603_v4  ;;  %2310 = vmatpush1.msra.mxu0 %v7525_v9  ;;  %vm10725_vm15 = vcmp.eq.s32.totalorder %v6216_v23, %v6994_v58 }
 0x17f   : > { %5244 = vmatprep.subr.msk.mxu1 %vm10723_vm2, %v10603_v4  ;;  %2313 = vmatprep.subr.mxu0 %v7527_v37  ;;  %vm10727_vm2 = vcmp.eq.s32.totalorder %v10726_v34, %v6978_v52 }
 0x180   : > { %5245 = vmatpush1.msk.msra.mxu1 %vm10724_vm3, %v10603_v4  ;;  %2316 = vmatpush1.msra.mxu0 %v7542_v22  ;;  %vm10728_vm3 = vcmp.eq.s32.totalorder %v10726_v34, %v6994_v58 }
 0x181   : > { %5246 = vmatprep.subr.msk.mxu1 %vm735_vm7, %v10603_v4  ;;  %2319 = vmatprep.subr.mxu0 %v7554_v15 }
 0x182   : > { %5247 = vmatpush1.msk.msra.mxu1 %vm10725_vm15, %v10603_v4  ;;  %2322 = vmatpush1.msra.mxu0 %v7583_v2  ;;  %vm10730_vm15 = vcmp.eq.s32.totalorder %v10729_v59, %v6978_v52 }
 0x183   : > { %5248 = vmatprep.subr.msk.mxu1 %vm10727_vm2, %v10603_v4  ;;  %2325 = vmatprep.subr.mxu0 %v7594_v50  ;;  %vm10746_vm2 = vcmp.eq.s32.totalorder %v10744_v46, %v6994_v58 }
 0x184   : > { %5249 = vmatpush1.msk.msra.mxu1 %vm10728_vm3, %v10603_v4  ;;  %1994 = vmatprep.mubr.f32.mxu0 %v10602_v10  ;;  %vm10750_vm3 = vcmp.eq.s32.totalorder %v6187_v11, %v6978_v52 }
 0x185   : > { %2328 = vmatpush1.msra.mxu0 %v7633_v7  ;;  %5250 = vmatprep.subr.msk.mxu1 %vm10730_vm15, %v10603_v4  ;;  %vm10752_vm15 = vcmp.eq.s32.totalorder %v6187_v11, %v6994_v58 }
 0x186   : > { %2000 = vmatmul.mubr.f32.gmra.mxu0 %v10731_v5  ;;  %2331 = vmatprep.subr.mxu0 %v7647_v3 }
 0x187   : > { %5251 = vmatpush1.msk.msra.mxu1 %vm681_vm5, %v10603_v4  ;;  %2334 = vmatpush1.msra.mxu0 %v7661_v62 }
 0x188   : > { %5252 = vmatprep.subr.msk.mxu1 %vm732_vm4, %v10603_v4  ;;  %2337 = vmatprep.subr.mxu0 %v7671_v28 }
 0x189   : > { %5253 = vmatpush1.msk.msra.mxu1 %vm680_vm0, %v10603_v4  ;;  %2340 = vmatpush1.msra.mxu0 %v7681_v26 }
 0x18a   : > { %2373 = vmatprep.mubr.f32.mxu0 %v10602_v10  ;;  %5254 = vmatprep.subr.msk.mxu1 %vm731_vm1, %v10603_v4 }
 0x18b   : > { %2376 = vmatmul.mubr.f32.vlgmr.msra.gmra.mxu0 %v10734_v29  ;;  %5255 = vmatpush1.msk.msra.mxu1 %vm679_vm14, %v10603_v4 }
 0x18c   : > { %2508 = vmatprep.subr.mxu0 %v10735_v38  ;;  %2237 = vmatprep.mubr.f32.mxu1 %v10602_v10  ;;  %v10749_v38 = vand.u32 4294901760, %v7215_v48  ;;  %v10754_v48 = vld [vmem:[#allocation37_spill] sm:$0xff] }
 0x18d   : > { %5256 = vmatprep.subr.msk.mxu1 %vm730_vm12, %v10603_v4  ;;  %2512 = vmatpush1.msra.mxu0 %v10736_v24  ;;  %v7950_v24 = vrot.slane %v10754_v48, %v10456_v42 }
 0x18e   : > { %2239 = vmatmul.mubr.f32.gmra.mxu1 %v10737_v25  ;;  %2516 = vmatprep.subr.mxu0 %v10738_v27  ;;  %v7955_v27 = vrot.slane %v10754_v48, %v10457_v18 }
 0x18f   : > { %5257 = vmatpush1.msk.msra.mxu1 %vm678_vm8, %v10603_v4  ;;  %2381 = vmatprep.mubr.f32.mxu0 %v10602_v10 }
 0x190   : > { %5258 = vmatprep.subr.msk.mxu1 %vm10449_vm6, %v10603_v4  ;;  %2520 = vmatpush1.msra.mxu0 %v10739_v57  ;;  %v10759_v57 = vand.u32 4294901760, %v7293_v35  ;;  %v10767_v35 = vand.u32 4294901760, %v7386_v49  ;;  %v10769_v49 = vand.u32 4294901760, %v7417_v12  ;;  %v10773_v12 = vand.u32 4294901760, %v7493_v8 }
 0x191   : > { %2384 = vmatmul.mubr.f32.gmra.mxu0 %v10740_v55  ;;  %5259 = vmatpush1.msk.msra.mxu1 %vm10448_vm10, %v10603_v4  ;;  %vm10465_vm10 = vcmp.eq.s32.totalorder %v6197_v16, %v7950_v24  ;;  %vm10774_vm6 = vcmp.eq.s32.totalorder %v6208_v20, %v6994_v58  ;;  %v10775_v8 = vand.u32 4294901760, %v7525_v9  ;;  %v10779_v9 = vand.u32 4294901760, %v7542_v22 }
 0x192   : > { %2524 = vmatprep.subr.mxu0 %v10741_v44  ;;  %5260 = vmatprep.subr.msk.mxu1 %vm10447_vm9, %v10603_v4  ;;  %v10761_v44 = vand.u32 4294901760, %v7345_v13  ;;  %v10765_v13 = vand.u32 4294901760, %v7384_v39  ;;  %vm10766_vm9 = vcmp.eq.s32.totalorder %v6200_v17, %v6994_v58  ;;  %v10780_v22 = vand.u32 4294901760, %v7554_v15 }
 0x193   : > { %2528 = vmatpush1.msra.mxu0 %v10742_v41  ;;  %5261 = vmatpush1.msk.msra.mxu1 %vm10446_vm11, %v10603_v4  ;;  %vm10764_vm11 = vcmp.eq.s32.totalorder %v6200_v17, %v6978_v52  ;;  %v10782_v15 = vand.u32 4294901760, %v7583_v2 }
 0x194   : > { %2532 = vmatprep.subr.mxu0 %v10743_v63  ;;  %5262 = vmatprep.subr.msk.mxu1 %vm10445_vm13, %v10603_v4  ;;  %vm10468_vm13 = vcmp.eq.s32.totalorder %v6187_v11, %v7955_v27  ;;  %v10771_v63 = vand.u32 4294901760, %v7441_v43 }
 0x195   : > { %2536 = vmatpush1.msra.mxu0 %v10745_v6  ;;  %5263 = vmatpush1.msk.msra.mxu1 %vm10746_vm2, %v10603_v4  ;;  %vm10755_vm2 = vcmp.eq.s32.totalorder %v6193_v14, %v6978_v52  ;;  %v5055_v41 = vsel %vm10468_vm13, 1.0, %v10602_v10 }
 0x196   : > { %2486 = vmatprep.mubr.f32.mxu1 %v10602_v10  ;;  %2540 = vmatprep.subr.mxu0 %v10747_v54  ;;  %v8037_v54 = vsub.f32 %v5055_v41, %v5055_v41 }
 0x197   : > { %2490 = vmatmul.mubr.f32.vlgmr.msra.gmra.mxu1 %v10748_v56  ;;  %2544 = vmatpush1.msra.mxu0 %v10749_v38 }
 0x198   : > { %5264 = vmatprep.subr.msk.mxu1 %vm10750_vm3, %v10603_v4  ;;  %2548 = vmatprep.subr.mxu0 %v10751_v0  ;;  %vm10757_vm3 = vcmp.eq.s32.totalorder %v6193_v14, %v6994_v58  ;;  %v10777_v0 = vand.u32 4294901760, %v7527_v37 }
 0x199   : > { %5265 = vmatpush1.msk.msra.mxu1 %vm10752_vm15, %v10603_v4  ;;  %2552 = vmatpush1.msra.mxu0 %v10753_v51  ;;  %vm10760_vm15 = vcmp.eq.s32.totalorder %v6197_v16, %v6978_v52 }
 0x19a   : > { %5266 = vmatprep.subr.msk.mxu1 %vm10755_vm2, %v10603_v4  ;;  %2495 = vmatprep.mubr.f32.mxu1 %v10602_v10  ;;  %vm10469_vm2 = vcmp.eq.s32.totalorder %v6187_v11, %v7950_v24 }
 0x19b   : > { %2556 = vmatprep.subr.mxu0 %v10756_v36  ;;  %5267 = vmatpush1.msk.msra.mxu1 %vm10757_vm3, %v10603_v4  ;;  %vm10762_vm3 = vcmp.eq.s32.totalorder %v6197_v16, %v6994_v58  ;;  %v5071_v61 = vsel %vm10469_vm2, 1.0, %v10602_v10  ;;  %v5069_v36 = vsel %vm10465_vm10, 1.0, %v10602_v10 }
 0x19c   : > { %2499 = vmatmul.mubr.f32.gmra.mxu1 %v10758_v47  ;;  %2560 = vmatpush1.msra.mxu0 %v10759_v57  ;;  %v8035_v6 = vsub.f32 %v5071_v61, %v5071_v61  ;;  %v10784_v61 = vand.u32 4294901760, %v7594_v50  ;;  %v8114_v41 = vsub.f32 %v5069_v36, %v5069_v36  ;;  %v10786_v50 = vand.u32 4294901760, %v7633_v7 }
 0x19d   : > { %5268 = vmatprep.subr.msk.mxu1 %vm10760_vm15, %v10603_v4  ;;  %2564 = vmatprep.subr.mxu0 %v10761_v44  ;;  %vm10450_vm15 = vcmp.eq.s32.totalorder %v6193_v14, %v7950_v24 }
 0x19e   : > { %5269 = vmatpush1.msk.msra.mxu1 %vm10762_vm3, %v10603_v4  ;;  %2568 = vmatpush1.msra.mxu0 %v10763_v40  ;;  %v5070_v39 = vsel %vm10450_vm15, 1.0, %v10602_v10  ;;  %vm10770_vm3 = vcmp.eq.s32.totalorder %v6205_v19, %v6994_v58  ;;  %vm10453_vm15 = vcmp.eq.s32.totalorder %v6200_v17, %v7955_v27  ;;  %v10464_v40 = vand.u32 4294901760, %v8035_v6 }
 0x19f   : > { %5270 = vmatprep.subr.msk.mxu1 %vm10764_vm11, %v10603_v4  ;;  %2572 = vmatprep.subr.mxu0 %v10765_v13  ;;  %vm10451_vm11 = vcmp.eq.s32.totalorder %v6193_v14, %v7955_v27  ;;  %v8051_v38 = vsub.f32 %v5070_v39, %v5070_v39  ;;  %v5052_v44 = vsel %vm10453_vm15, 1.0, %v10602_v10  ;;  %v10461_v13 = vand.u32 4294901760, %v8037_v54 }
 0x1a0   : > { %5271 = vmatpush1.msk.msra.mxu1 %vm10766_vm9, %v10603_v4  ;;  %2576 = vmatpush1.msra.mxu0 %v10767_v35  ;;  %vm10768_vm9 = vcmp.eq.s32.totalorder %v6205_v19, %v6978_v52  ;;  %v5054_v43 = vsel %vm10451_vm11, 1.0, %v10602_v10  ;;  %vm10776_vm11 = vcmp.eq.s32.totalorder %v6211_v21, %v6978_v52  ;;  %vm10783_vm15 = vcmp.eq.s32.totalorder %v10726_v34, %v6978_v52 }
 0x1a1   : > { %5272 = vmatprep.subr.msk.mxu1 %vm10768_vm9, %v10603_v4  ;;  %2580 = vmatprep.subr.mxu0 %v10769_v49  ;;  %vm10772_vm9 = vcmp.eq.s32.totalorder %v6208_v20, %v6978_v52  ;;  %v8069_v51 = vsub.f32 %v5054_v43, %v5054_v43  ;;  %v10460_v35 = vand.u32 4294901760, %v8051_v38  ;;  %v10788_v43 = vand.u32 4294901760, %v7647_v3 }
 0x1a2   : > { %5273 = vmatpush1.msk.msra.mxu1 %vm10770_vm3, %v10603_v4  ;;  %2584 = vmatpush1.msra.mxu0 %v10771_v63  ;;  %vm10454_vm3 = vcmp.eq.s32.totalorder %v6197_v16, %v7955_v27  ;;  %v8134_v63 = vsub.f32 %v5052_v44, %v5052_v44  ;;  %v8159_v3 = vsub.f32 %v8037_v54, %v10461_v13  ;;  %v10790_v44 = vand.u32 4294901760, %v7681_v26 }
 0x1a3   : > { %5274 = vmatprep.subr.msk.mxu1 %vm10772_vm9, %v10603_v4  ;;  %2588 = vmatprep.subr.mxu0 %v10773_v12  ;;  %vm10452_vm9 = vcmp.eq.s32.totalorder %v6200_v17, %v7950_v24  ;;  %v5053_v37 = vsel %vm10454_vm3, 1.0, %v10602_v10  ;;  %vm840_vm3 = vcmp.eq.s32.totalorder %v6211_v21, %v7950_v24  ;;  %v10459_v12 = vand.u32 4294901760, %v8069_v51 }
 0x1a4   : > { %5275 = vmatpush1.msk.msra.mxu1 %vm10774_vm6, %v10603_v4  ;;  %2592 = vmatpush1.msra.mxu0 %v10775_v8  ;;  %vm10778_vm6 = vcmp.eq.s32.totalorder %v6211_v21, %v6994_v58  ;;  %v5068_v57 = vsel %vm10452_vm9, 1.0, %v10602_v10  ;;  %vm10471_vm9 = vcmp.eq.s32.totalorder %v6208_v20, %v7950_v24  ;;  %v8130_v49 = vsub.f32 %v5053_v37, %v5053_v37 }
 0x1a5   : > { %5276 = vmatprep.subr.msk.mxu1 %vm10776_vm11, %v10603_v4  ;;  %2596 = vmatprep.subr.mxu0 %v10777_v0  ;;  %vm10455_vm11 = vcmp.eq.s32.totalorder %v6205_v19, %v7950_v24  ;;  %v8132_v39 = vsub.f32 %v5068_v57, %v5068_v57  ;;  %v8150_v8 = vsub.f32 %v8035_v6, %v10464_v40  ;;  %v5066_v0 = vsel %vm10471_vm9, 1.0, %v10602_v10 }
 0x1a6   : > { %5277 = vmatpush1.msk.msra.mxu1 %vm10778_vm6, %v10603_v4  ;;  %2600 = vmatpush1.msra.mxu0 %v10779_v9  ;;  %vm790_vm6 = vcmp.eq.s32.totalorder %v6205_v19, %v7955_v27  ;;  %v5067_v2 = vsel %vm10455_vm11, 1.0, %v10602_v10  ;;  %vm10787_vm11 = vcmp.eq.s32.totalorder %v10729_v59, %v6978_v52  ;;  %v10789_v9 = vand.u32 4294901760, %v7661_v62 }
 0x1a7   : > { %5278 = vmatprep.subr.msk.mxu1 %vm735_vm7, %v10603_v4  ;;  %2604 = vmatprep.subr.mxu0 %v10780_v22  ;;  %vm10781_vm7 = vcmp.eq.s32.totalorder %v6216_v23, %v6994_v58  ;;  %v5051_v7 = vsel %vm790_vm6, 1.0, %v10602_v10  ;;  %v8167_v36 = vsub.f32 %v5067_v2, %v5067_v2  ;;  %v8176_v22 = vsub.f32 %v8051_v38, %v10460_v35 }
 0x1a8   : > { %5279 = vmatpush1.msk.msra.mxu1 %vm10781_vm7, %v10603_v4  ;;  %2608 = vmatpush1.msra.mxu0 %v10782_v15  ;;  %vm10472_vm7 = vcmp.eq.s32.totalorder %v6208_v20, %v7955_v27  ;;  %v5065_v57 = vsel %vm840_vm3, 1.0, %v10602_v10  ;;  %v10458_v62 = vand.u32 4294901760, %v8114_v41  ;;  %v8201_v28 = vsub.f32 %v5051_v7, %v5051_v7 }
 0x1a9   : > { %5280 = vmatprep.subr.msk.mxu1 %vm10783_vm15, %v10603_v4  ;;  %2612 = vmatprep.subr.mxu0 %v10784_v61  ;;  %vm10785_vm15 = vcmp.eq.s32.totalorder %v10726_v34, %v6994_v58  ;;  %v5050_v37 = vsel %vm10472_vm7, 1.0, %v10602_v10  ;;  %v8208_v15 = vsub.f32 %v8069_v51, %v10459_v12  ;;  %v10462_v61 = vand.u32 4294901760, %v8130_v49 }
 0x1aa   : > { %5281 = vmatpush1.msk.msra.mxu1 %vm10785_vm15, %v10603_v4  ;;  %2616 = vmatpush1.msra.mxu0 %v10786_v50  ;;  %vm10480_vm15 = vcmp.eq.s32.totalorder %v6216_v23, %v7955_v27  ;;  %v8218_v50 = vsub.f32 %v5050_v37, %v5050_v37  ;;  %v10463_v37 = vand.u32 4294901760, %v8132_v39 }
 0x1ab   : > { %5282 = vmatprep.subr.msk.mxu1 %vm10787_vm11, %v10603_v4  ;;  %2620 = vmatprep.subr.mxu0 %v10788_v43  ;;  %vm10479_vm11 = vcmp.eq.s32.totalorder %v6216_v23, %v7950_v24  ;;  %v8220_v43 = vsub.f32 %v5065_v57, %v5065_v57  ;;  %v8270_v18 = vsub.f32 %v8130_v49, %v10462_v61  ;;  %v10467_v61 = vand.u32 4294901760, %v8167_v36 }
 0x1ac   : > { %5283 = vmatpush1.msk.msra.mxu1 %vm681_vm5, %v10603_v4  ;;  %2624 = vmatpush1.msra.mxu0 %v10789_v9  ;;  %vm10476_vm5 = vcmp.eq.s32.totalorder %v6211_v21, %v7955_v27  ;;  %v5048_v9 = vsel %vm10480_vm15, 1.0, %v10602_v10  ;;  %v10805_v56 = vand.u32 4294901760, %v8218_v50 }
 0x1ad   : > { %5284 = vmatprep.subr.msk.mxu1 %vm732_vm4, %v10603_v4  ;;  %2628 = vmatprep.subr.mxu0 %v2188_v45  ;;  %v8203_v45 = vsub.f32 %v5066_v0, %v5066_v0  ;;  %v5049_v7 = vsel %vm10476_vm5, 1.0, %v10602_v10  ;;  %v5064_v0 = vsel %vm10479_vm11, 1.0, %v10602_v10  ;;  %vm10481_vm4 = vcmp.eq.s32.totalorder %v10726_v34, %v7955_v27 }
 0x1ae   : > { %5285 = vmatpush1.msk.msra.mxu1 %vm680_vm0, %v10603_v4  ;;  %2632 = vmatpush1.msra.mxu0 %v10790_v44  ;;  %v8252_v44 = vsub.f32 %v8114_v41, %v10458_v62  ;;  %v10466_v62 = vand.u32 4294901760, %v8134_v63  ;;  %vm10483_vm0 = vcmp.eq.s32.totalorder %v10729_v59, %v7950_v24  ;;  %v8280_v12 = vsub.f32 %v5049_v7, %v5049_v7 }
 0x1af   : > { %2665 = vmatprep.mubr.f32.mxu0 %v10602_v10  ;;  %5286 = vmatprep.subr.msk.mxu1 %vm731_vm1, %v10603_v4  ;;  %vm10791_vm1 = vcmp.eq.s32.totalorder %v6193_v14, %v7950_v24  ;;  %v8282_v35 = vsub.f32 %v5064_v0, %v5064_v0  ;;  %v8284_v13 = vsub.f32 %v5048_v9, %v5048_v9  ;;  %v5047_v9 = vsel %vm10481_vm4, 1.0, %v10602_v10 }
 0x1b0   : > { %2667 = vmatmul.mubr.f32.vlgmr.msra.gmra.mxu0 %v6171_v1  ;;  %5287 = vmatpush1.msk.msra.mxu1 %vm679_vm14, %v10603_v4  ;;  %vm838_vm14 = vcmp.eq.s32.totalorder %v10726_v34, %v7950_v24  ;;  %v8298_v7 = vsub.f32 %v8132_v39, %v10463_v37  ;;  %v5062_v40 = vsel %vm10483_vm0, 1.0, %v10602_v10  ;;  %v8335_v57 = vsub.f32 %v8134_v63, %v10466_v62 }
 0x1b1   : > { %5296 = vmatprep.subr.msk.mxu0 %vm10469_vm2, %v10603_v4  ;;  %5288 = vmatprep.subr.msk.mxu1 %vm730_vm12, %v10603_v4  ;;  %vm10792_vm12 = vcmp.eq.s32.totalorder %v10625_v31, %v6978_v52  ;;  %v5063_v0 = vsel %vm838_vm14, 1.0, %v10602_v10  ;;  %v8349_v42 = vsub.f32 %v5047_v9, %v5047_v9  ;;  %v8354_v62 = vsub.f32 %v8167_v36, %v10467_v61 }
 0x1b2   : > { %5297 = vmatpush1.msk.msra.mxu0 %vm10468_vm13, %v10603_v4  ;;  %5289 = vmatpush1.msk.msra.mxu1 %vm678_vm8, %v10603_v4  ;;  %vm10793_vm8 = vcmp.eq.s32.totalorder %v6193_v14, %v7955_v27  ;;  %v8347_v37 = vsub.f32 %v5063_v0, %v5063_v0  ;;  %v8369_v9 = vsub.f32 %v5062_v40, %v5062_v40  ;;  %v10809_v48 = vand.u32 4294901760, %v8220_v43 }
 0x1b3   : > { %5298 = vmatprep.subr.msk.mxu0 %vm10791_vm1, %v10603_v4  ;;  %2672 = vmatprep.mubr.f32.mxu0 %v10602_v10  ;;  %vm785_vm1 = vcmp.eq.s32.totalorder %v10729_v59, %v7955_v27  ;;  %vm784_vm13 = vcmp.eq.s32.totalorder %v10732_v32, %v7955_v27  ;;  %vm835_vm2 = vcmp.eq.s32.totalorder %v10733_v53, %v7950_v24  ;;  %v10817_v20 = vand.u32 4294901760, %v8270_v18 }
 0x1b4   : > { %5290 = vmatprep.subr.msk.mxu1 %vm10792_vm12, %v10603_v4  ;;  %5299 = vmatpush1.msk.msra.mxu0 %vm10793_vm8, %v10603_v4  ;;  %vm10794_vm12 = vcmp.eq.s32.totalorder %v10625_v31, %v6994_v58  ;;  %vm836_vm8 = vcmp.eq.s32.totalorder %v10732_v32, %v7950_v24  ;;  %v5046_v26 = vsel %vm785_vm1, 1.0, %v10602_v10  ;;  %v8410_v2 = vsub.f32 %v8218_v50, %v10805_v56 }
 0x1b5   : > { %2674 = vmatmul.mubr.f32.gmra.mxu0 %v10737_v25  ;;  %5291 = vmatpush1.msk.msra.mxu1 %vm10794_vm12, %v10603_v4  ;;  %vm10795_vm12 = vcmp.eq.s32.totalorder %v10630_v60, %v6978_v52  ;;  %v5061_v61 = vsel %vm836_vm8, 1.0, %v10602_v10  ;;  %v8400_v47 = vsub.f32 %v5046_v26, %v5046_v26  ;;  %v2962_v26 = vand.u32 4294901760, %v8354_v62 }
 0x1b6   : > { %5300 = vmatprep.subr.msk.mxu0 %vm10465_vm10, %v10603_v4  ;;  %5292 = vmatprep.subr.msk.mxu1 %vm10795_vm12, %v10603_v4  ;;  %vm10796_vm10 = vcmp.eq.s32.totalorder %v6197_v16, %v7955_v27  ;;  %vm10797_vm12 = vcmp.eq.s32.totalorder %v10630_v60, %v6994_v58  ;;  %v10807_v56 = vand.u32 4294901760, %v8150_v8  ;;  %v5060_v62 = vsel %vm835_vm2, 1.0, %v10602_v10 }
 0x1b7   : > { %5301 = vmatpush1.msk.msra.mxu0 %vm10796_vm10, %v10603_v4  ;;  %5293 = vmatpush1.msk.msra.mxu1 %vm10797_vm12, %v10603_v4  ;;  %vm10798_vm10 = vcmp.eq.s32.totalorder %v6200_v17, %v7950_v24  ;;  %vm10799_vm12 = vcmp.eq.s32.totalorder %v10744_v46, %v6978_v52  ;;  %v10802_v52 = vand.u32 4294901760, %v8201_v28  ;;  %v10808_v8 = vand.u32 4294901760, %v8159_v3 }
 0x1b8   : > { %5302 = vmatprep.subr.msk.mxu0 %vm10798_vm10, %v10603_v4  ;;  %5294 = vmatprep.subr.msk.mxu1 %vm10799_vm12, %v10603_v4  ;;  %vm10800_vm10 = vcmp.eq.s32.totalorder %v6200_v17, %v7955_v27  ;;  %vm10801_vm12 = vcmp.eq.s32.totalorder %v10744_v46, %v6994_v58  ;;  %v2956_v58 = vand.u32 4294901760, %v8335_v57  ;;  %v8418_v57 = vsub.f32 %v5061_v61, %v5061_v61 }
 0x1b9   : > { %5303 = vmatpush1.msk.msra.mxu0 %vm10800_vm10, %v10603_v4  ;;  %5295 = vmatpush1.msk.msra.mxu1 %vm10801_vm12, %v10603_v4  ;;  %v8388_v40 = vsub.f32 %v8201_v28, %v10802_v52  ;;  %vm10803_vm10 = vcmp.eq.s32.totalorder %v6205_v19, %v7950_v24  ;;  %v10804_v52 = vand.u32 4294901760, %v8203_v45  ;;  %vm783_vm12 = vcmp.eq.s32.totalorder %v10733_v53, %v7955_v27 }
 0x1ba   : > { %2776 = vmatprep.mubr.f32.mxu1 %v10602_v10  ;;  %5304 = vmatprep.subr.msk.mxu0 %vm10803_vm10, %v10603_v4  ;;  %10806 = vst [vmem:[#allocation47_spill] sm:$0xff] %v8418_v57  ;;  %vm10512_vm10 = vcmp.eq.s32.totalorder %v6241_v30, %v7950_v24  ;;  %v8450_v29 = vsub.f32 %v8220_v43, %v10809_v48  ;;  %v10810_v61 = vand.u32 4294901760, %v8280_v12  ;;  %v10811_v3 = vand.u32 4294901760, %v8176_v22 }
 0x1bb   : > { %v8405_v0 = vsub.f32 %v8203_v45, %v10804_v52  ;;  %2778 = vmatmul.mubr.f32.vlgmr.msra.gmra.mxu1 %v6171_v1  ;;  %5305 = vmatpush1.msk.msra.mxu0 %vm790_vm6, %v10603_v4  ;;  %v5045_v52 = vsel %vm784_vm13, 1.0, %v10602_v10  ;;  %v5044_v48 = vsel %vm783_vm12, 1.0, %v10602_v10  ;;  %v10813_v22 = vand.u32 4294901760, %v8208_v15  ;;  %v1086_v34 = vpop.f32.mrf.mxu0 }
 0x1bc   : > { %2915 = vmatprep.subr.mxu1 %v10807_v56  ;;  %5306 = vmatprep.subr.msk.mxu0 %vm10471_vm9, %v10603_v4  ;;  %v2968_v56 = vand.u32 4294901760, %v8388_v40  ;;  %v8455_v5 = vsub.f32 %v8280_v12, %v10810_v61  ;;  %vm10509_vm9 = vcmp.eq.s32.totalorder %v6241_v30, %v7955_v27  ;;  %v8464_v55 = vsub.f32 %v5045_v52, %v5045_v52 }
 0x1bd   : > { %2921 = vmatpush1.msra.mxu1 %v10808_v8  ;;  %5307 = vmatpush1.msk.msra.mxu0 %vm10472_vm7, %v10603_v4  ;;  %v2974_v40 = vand.u32 4294901760, %v8405_v0  ;;  %v2980_v8 = vand.u32 4294901760, %v8410_v2  ;;  %v8476_v61 = vsub.f32 %v5060_v62, %v5060_v62  ;;  %v5059_v2 = vsel %vm10512_vm10, 1.0, %v10602_v10 }
 0x1be   : > { %2927 = vmatprep.subr.mxu1 %v10811_v3  ;;  %2783 = vmatprep.mubr.f32.mxu1 %v10602_v10  ;;  %10812 = vst [vmem:[#allocation46_spill] sm:$0xff] %v8464_v55  ;;  %vm10508_vm7 = vcmp.eq.s32.totalorder %v10625_v31, %v7950_v24  ;;  %v10814_v15 = vand.u32 4294901760, %v8282_v35  ;;  %v10815_v62 = vand.u32 4294901760, %v8284_v13  ;;  %v10482_v0 = vand.u32 4294901760, %v8349_v42 }
 0x1bf   : > { %5308 = vmatprep.subr.msk.mxu0 %vm840_vm3, %v10603_v4  ;;  %2933 = vmatpush1.msra.mxu1 %v10813_v22  ;;  %v5043_v22 = vsel %vm10509_vm9, 1.0, %v10602_v10  ;;  %v8513_v21 = vsub.f32 %v5044_v48, %v5044_v48  ;;  %v10818_v18 = vand.u32 4294901760, %v8298_v7  ;;  %v10822_v53 = vand.u32 4294901760, %v8476_v61 }
 0x1c0   : > { %2785 = vmatmul.mubr.f32.gmra.mxu1 %v10737_v25  ;;  %5309 = vmatpush1.msk.msra.mxu0 %vm10476_vm5, %v10603_v4  ;;  %v8493_v52 = vsub.f32 %v8282_v35, %v10814_v15  ;;  %v8498_v3 = vsub.f32 %v8284_v13, %v10815_v62  ;;  %v10816_v25 = vand.u32 4294901760, %v8252_v44  ;;  %v2986_v15 = vand.u32 4294901760, %v8450_v29 }
 0x1c1   : > { %5310 = vmatprep.subr.msk.mxu0 %vm10479_vm11, %v10603_v4  ;;  %v2992_v62 = vand.u32 4294901760, %v8455_v5  ;;  %vm10507_vm5 = vcmp.eq.s32.totalorder %v10625_v31, %v7955_v27  ;;  %v5058_v5 = vsel %vm10508_vm7, 1.0, %v10602_v10  ;;  %v10484_v29 = vand.u32 4294901760, %v8369_v9  ;;  %2887 = vmatprep.mubr.f32.mxu0 %v10602_v10 }
 0x1c2   : > { %2939 = vmatprep.subr.mxu1 %v10816_v25  ;;  %5311 = vmatpush1.msk.msra.mxu0 %vm10480_vm15, %v10603_v4  ;;  %v8523_v25 = vsub.f32 %v5059_v2, %v5059_v2  ;;  %vm10506_vm11 = vcmp.eq.s32.totalorder %v10630_v60, %v7950_v24  ;;  %v10819_v44 = vand.u32 4294901760, %v8347_v37  ;;  %v10487_v2 = vand.u32 4294901760, %v8400_v47 }
 0x1c3   : > { %2945 = vmatpush1.msra.mxu1 %v10817_v20  ;;  %5312 = vmatprep.subr.msk.mxu0 %vm838_vm14, %v10603_v4  ;;  %v8538_v20 = vsub.f32 %v5043_v22, %v5043_v22  ;;  %vm10500_vm15 = vcmp.eq.s32.totalorder %v10630_v60, %v7955_v27  ;;  %v2998_v7 = vand.u32 4294901760, %v8493_v52  ;;  %v3004_v22 = vand.u32 4294901760, %v8498_v3 }
 0x1c4   : > { %2951 = vmatprep.subr.mxu1 %v10818_v18  ;;  %v3009_v48 = vsub.f32 %v8347_v37, %v10819_v44  ;;  %5313 = vmatpush1.msk.msra.mxu0 %vm10481_vm4, %v10603_v4  ;;  %v3015_v18 = vsub.f32 %v8349_v42, %v10482_v0  ;;  %v5042_v44 = vsel %vm10507_vm5, 1.0, %v10602_v10  ;;  %v5057_v52 = vsel %vm10506_vm11, 1.0, %v10602_v10 }
 0x1c5   : > { %2957 = vmatpush1.msra.mxu1 %v2956_v58  ;;  %5314 = vmatprep.subr.msk.mxu0 %vm10483_vm0, %v10603_v4  ;;  %v8563_v58 = vsub.f32 %v5058_v5, %v5058_v5  ;;  %vm10499_vm4 = vcmp.eq.s32.totalorder %v10744_v46, %v7950_v24  ;;  %v5041_v5 = vsel %vm10500_vm15, 1.0, %v10602_v10  ;;  %vm10498_vm0 = vcmp.eq.s32.totalorder %v10744_v46, %v7955_v27 }
 0x1c6   : > { %2963 = vmatprep.subr.mxu1 %v2962_v26  ;;  %5315 = vmatpush1.msk.msra.mxu0 %vm785_vm1, %v10603_v4  ;;  %v3021_v26 = vsub.f32 %v8369_v9, %v10484_v29  ;;  %v8590_v3 = vsub.f32 %v5042_v44, %v5042_v44  ;;  %v3027_v29 = vsub.f32 %v8400_v47, %v10487_v2  ;;  %v10820_v2 = vand.u32 4294901760, %v8418_v57 }
 0x1c7   : > { %2969 = vmatpush1.msra.mxu1 %v2968_v56  ;;  %5316 = vmatprep.subr.msk.mxu0 %vm836_vm8, %v10603_v4  ;;  %v3010_v56 = vand.u32 4294901760, %v3009_v48  ;;  %v8600_v0 = vsub.f32 %v5057_v52, %v5057_v52  ;;  %v5056_v48 = vsel %vm10499_vm4, 1.0, %v10602_v10  ;;  %v5040_v52 = vsel %vm10498_vm0, 1.0, %v10602_v10 }
 0x1c8   : > { %2975 = vmatprep.subr.mxu1 %v2974_v40  ;;  %5317 = vmatpush1.msk.msra.mxu0 %vm784_vm13, %v10603_v4  ;;  %v3016_v40 = vand.u32 4294901760, %v3015_v18  ;;  %v3033_v18 = vsub.f32 %v8418_v57, %v10820_v2  ;;  %v10496_v2 = vand.u32 4294901760, %v8538_v20  ;;  %v8635_v59 = vsub.f32 %v5056_v48, %v5056_v48 }
 0x1c9   : > { %2981 = vmatpush1.msra.mxu1 %v2980_v8  ;;  %5318 = vmatprep.subr.msk.mxu0 %vm835_vm2, %v10603_v4  ;;  %v8611_v8 = vsub.f32 %v5041_v5, %v5041_v5  ;;  %v1329_v44 = vpop.f32.mrf.mxu1  ;;  %v10821_v5 = vand.u32 4294901760, %v8464_v55  ;;  %v10504_v48 = vand.u32 4294901760, %v8590_v3  ;;  %v10503_v57 = vand.u32 4294901760, %v8600_v0 }
 0x1ca   : > { %2987 = vmatprep.subr.mxu1 %v2986_v15  ;;  %5319 = vmatpush1.msk.msra.mxu0 %vm783_vm12, %v10603_v4  ;;  %v3022_v15 = vand.u32 4294901760, %v3021_v26  ;;  %v8629_v23 = vadd.f32 %v1329_v44, %v1086_v34  ;;  %v3045_v26 = vsub.f32 %v8476_v61, %v10822_v53  ;;  %v8645_v34 = vsub.f32 %v5040_v52, %v5040_v52 }
 0x1cb   : > { %2993 = vmatpush1.msra.mxu1 %v2992_v62  ;;  %v3039_v32 = vsub.f32 %v8464_v55, %v10821_v5  ;;  %5320 = vmatprep.subr.msk.mxu0 %vm10512_vm10, %v10603_v4  ;;  %v3028_v62 = vand.u32 4294901760, %v3027_v29  ;;  %v1088_v5 = vpop.f32.mrf.mxu0  ;;  %v1331_v55 = vpop.f32.mrf.mxu1  ;;  %v10823_v29 = vand.u32 4294901760, %v8513_v21  ;;  %v3034_v53 = vand.u32 4294901760, %v3033_v18 }
 0x1cc   : > { %2999 = vmatprep.subr.mxu1 %v2998_v7  ;;  %5321 = vmatpush1.msk.msra.mxu0 %vm10509_vm9, %v10603_v4  ;;  %v8651_v44 = vadd.f32 %v1331_v55, %v1088_v5  ;;  %v10497_v5 = vand.u32 4294901760, %v8611_v8  ;;  %v3046_v18 = vand.u32 4294901760, %v3045_v26 }
 0x1cd   : > { %3005 = vmatpush1.msra.mxu1 %v3004_v22  ;;  %v3051_v7 = vsub.f32 %v8513_v21, %v10823_v29  ;;  %5322 = vmatprep.subr.msk.mxu0 %vm10508_vm7, %v10603_v4  ;;  %v10824_v22 = vand.u32 4294901760, %v8523_v25  ;;  %v3040_v55 = vand.u32 4294901760, %v3039_v32 }
 0x1ce   : > { %3011 = vmatprep.subr.mxu1 %v3010_v56  ;;  %5323 = vmatpush1.msk.msra.mxu0 %vm10507_vm5, %v10603_v4  ;;  %v3063_v56 = vsub.f32 %v8538_v20, %v10496_v2  ;;  %v10501_v2 = vand.u32 4294901760, %v8645_v34 }
 0x1cf   : > { %v3057_v52 = vsub.f32 %v8523_v25, %v10824_v22  ;;  %3017 = vmatpush1.msra.mxu1 %v3016_v40  ;;  %5324 = vmatprep.subr.msk.mxu0 %vm10506_vm11, %v10603_v4  ;;  %v10825_v40 = vand.u32 4294901760, %v8563_v58  ;;  %v10502_v22 = vand.u32 4294901760, %v8635_v59  ;;  %v3052_v32 = vand.u32 4294901760, %v3051_v7 }
 0x1d0   : > { %3023 = vmatprep.subr.mxu1 %v3022_v15  ;;  %5325 = vmatpush1.msk.msra.mxu0 %vm10500_vm15, %v10603_v4  ;;  %v3075_v15 = vsub.f32 %v8590_v3, %v10504_v48  ;;  %v3064_v7 = vand.u32 4294901760, %v3063_v56  ;;  %v3099_v56 = vsub.f32 %v8645_v34, %v10501_v2  ;;  %vm10828_vm15 = vcmp.eq.s32.totalorder %v6193_v14, %v7950_v24  ;;  %v10841_v2 = vld [vmem:[#allocation46_spill] sm:$0xff] }
 0x1d1   : > { %v3069_v29 = vsub.f32 %v8563_v58, %v10825_v40  ;;  %3029 = vmatpush1.msra.mxu1 %v3028_v62  ;;  %5326 = vmatprep.subr.msk.mxu0 %vm10499_vm4, %v10603_v4  ;;  %v3058_v26 = vand.u32 4294901760, %v3057_v52  ;;  %v3081_v62 = vsub.f32 %v8600_v0, %v10503_v57  ;;  %v3093_v52 = vsub.f32 %v8635_v59, %v10502_v22  ;;  %v10845_v22 = vld [vmem:[#allocation38_spill] sm:$0xff] }
 0x1d2   : > { %3035 = vmatprep.subr.mxu1 %v3034_v53  ;;  %5327 = vmatpush1.msk.msra.mxu0 %vm10498_vm0, %v10603_v4  ;;  %v3087_v53 = vsub.f32 %v8611_v8, %v10497_v5  ;;  %vm10826_vm0 = vcmp.eq.s32.totalorder %v6187_v11, %v7950_v24  ;;  %vm10827_vm4 = vcmp.eq.s32.totalorder %v6187_v11, %v7955_v27 }
 0x1d3   : > { %3041 = vmatpush1.msra.mxu1 %v3040_v55  ;;  %v3070_v40 = vand.u32 4294901760, %v3069_v29  ;;  %3151 = vmatprep.subr.mxu0 %v8035_v6  ;;  %v3076_v55 = vand.u32 4294901760, %v3075_v15  ;;  %v3082_v5 = vand.u32 4294901760, %v3081_v62  ;;  %v3094_v29 = vand.u32 4294901760, %v3093_v52 }
 0x1d4   : > { %3047 = vmatprep.subr.mxu1 %v3046_v18  ;;  %2893 = vmatmul.mubr.f32.vlgmr.msra.gmra.mxu0 %v10712_v33  ;;  %v3088_v18 = vand.u32 4294901760, %v3087_v53  ;;  %v10860_v33 = vand.u32 4294901760, %v8051_v38 }
 0x1d5   : > { %3053 = vmatpush1.msra.mxu1 %v3052_v32  ;;  %3154 = vmatpush1.msra.mxu0 %v8037_v54  ;;  %v3100_v32 = vand.u32 4294901760, %v3099_v56  ;;  %v502_v56 = vstv %s8715_s6 }
 0x1d6   : > { %3059 = vmatprep.subr.mxu1 %v3058_v26  ;;  %3157 = vmatprep.subr.mxu0 %v8051_v38  ;;  %v10865_v38 = vld [vmem:[#allocation49_spill] sm:$0xff] }
 0x1d7   : > { %3065 = vmatpush1.msra.mxu1 %v3064_v7  ;;  %3160 = vmatpush1.msra.mxu0 %v8069_v51 }
 0x1d8   : > { %3071 = vmatprep.subr.mxu1 %v3070_v40  ;;  %v1097_v15 = vpop.f32.mrf.mxu0  ;;  %3163 = vmatprep.subr.mxu0 %v8114_v41 }
 0x1d9   : > { %3077 = vmatpush1.msra.mxu1 %v3076_v55  ;;  %3166 = vmatpush1.msra.mxu0 %v8130_v49 }
 0x1da   : > { %3083 = vmatprep.subr.mxu1 %v3082_v5  ;;  %v1099_v26 = vpop.f32.mrf.mxu0  ;;  %3169 = vmatprep.subr.mxu0 %v8132_v39 }
 0x1db   : > { %3089 = vmatpush1.msra.mxu1 %v3088_v18  ;;  %3172 = vmatpush1.msra.mxu0 %v8134_v63  ;;  %v505_v18 = vstv %s8719_s21 }
 0x1dc   : > { %3095 = vmatprep.subr.mxu1 %v3094_v29  ;;  %3134 = vmatprep.mubr.f32.mxu1 %v10602_v10 }
 0x1dd   : > { %3101 = vmatpush1.msra.mxu1 %v3100_v32  ;;  %3175 = vmatprep.subr.mxu0 %v8167_v36 }
 0x1de   : > { %3136 = vmatmul.mubr.f32.vlgmr.msra.gmra.mxu1 %v6171_v1  ;;  %3178 = vmatpush1.msra.mxu0 %v8201_v28  ;;  %v1473_v5 = vpop.f32.mrf.mxu0 }
 0x1df   : > { %5328 = vmatprep.subr.msk.mxu1 %vm10826_vm0, %v10603_v4  ;;  %3181 = vmatprep.subr.mxu0 %v8203_v45  ;;  %v1474_v62 = vadd.f32 %v1473_v5, %v8629_v23  ;;  %vm10831_vm0 = vcmp.eq.s32.totalorder %v6197_v16, %v7955_v27 }
 0x1e0   : > { %5329 = vmatpush1.msk.msra.mxu1 %vm10827_vm4, %v10603_v4  ;;  %3184 = vmatpush1.msra.mxu0 %v8218_v50  ;;  %v1475_v7 = vpop.f32.mrf.mxu0  ;;  %vm10829_vm4 = vcmp.eq.s32.totalorder %v6193_v14, %v7955_v27 }
 0x1e1   : > { %5330 = vmatprep.subr.msk.mxu1 %vm10828_vm15, %v10603_v4  ;;  %3187 = vmatprep.subr.mxu0 %v8220_v43  ;;  %v1476_v53 = vadd.f32 %v1475_v7, %v8651_v44  ;;  %vm10830_vm15 = vcmp.eq.s32.totalorder %v6197_v16, %v7950_v24  ;;  %v10836_v7 = vld [vmem:[#allocation28_spill] sm:$0xff] }
 0x1e2   : > { %5331 = vmatpush1.msk.msra.mxu1 %vm10829_vm4, %v10603_v4  ;;  %3190 = vmatpush1.msra.mxu0 %v8280_v12  ;;  %v1336_v23 = vpop.f32.mrf.mxu1  ;;  %vm10832_vm4 = vcmp.eq.s32.totalorder %v6200_v17, %v7950_v24 }
 0x1e3   : > { %5332 = vmatprep.subr.msk.mxu1 %vm10830_vm15, %v10603_v4  ;;  %3193 = vmatprep.subr.mxu0 %v8282_v35  ;;  %v1337_v40 = vadd.f32 %v1336_v23, %v1097_v15  ;;  %vm10833_vm15 = vcmp.eq.s32.totalorder %v6200_v17, %v7955_v27  ;;  %v506_v23 = vmul.f32 %v505_v18, %v10836_v7 }
 0x1e4   : > { %5333 = vmatpush1.msk.msra.mxu1 %vm10831_vm0, %v10603_v4  ;;  %3196 = vmatpush1.msra.mxu0 %v8284_v13  ;;  %v1338_v44 = vpop.f32.mrf.mxu1  ;;  %vm10834_vm0 = vcmp.eq.s32.totalorder %v6205_v19, %v7950_v24 }
 0x1e5   : > { %5334 = vmatprep.subr.msk.mxu1 %vm10832_vm4, %v10603_v4  ;;  %3199 = vmatprep.subr.mxu0 %v8347_v37  ;;  %v1339_v52 = vadd.f32 %v1338_v44, %v1099_v26  ;;  %v1481_v55 = vpop.f32.mrf.mxu0  ;;  %v10835_v26 = vld [vmem:[#allocation27_spill] sm:$0xff] }
 0x1e6   : > { %5335 = vmatpush1.msk.msra.mxu1 %vm10833_vm15, %v10603_v4  ;;  %3202 = vmatpush1.msra.mxu0 %v8349_v42  ;;  %v1482_v29 = vadd.f32 %v1481_v55, %v1337_v40  ;;  %v503_v5 = vmul.f32 %v502_v56, %v10835_v26  ;;  %v10837_v40 = vld [vmem:[#allocation35_spill] sm:$0xff]  ;;  %v509_v55 = vstv %s8740_s7  ;;  %v10844_v26 = vld [vmem:[#allocation29_spill] sm:$0xff] }
 0x1e7   : > { %5336 = vmatprep.subr.msk.mxu1 %vm10834_vm0, %v10603_v4  ;;  %3205 = vmatprep.subr.mxu0 %v8369_v9  ;;  %v1483_v32 = vpop.f32.mrf.mxu0  ;;  %vm10838_vm4 = vcmp.eq.s32.totalorder %v10837_v40, %v7950_v24  ;;  %v10839_v44 = vld [vmem:[#allocation47_spill] sm:$0xff]  ;;  %vm10840_vm15 = vcmp.eq.s32.totalorder %v10837_v40, %v7955_v27  ;;  %v510_v7 = vmul.f32 %v509_v55, %v10844_v26 }
 0x1e8   : > { %5337 = vmatpush1.msk.msra.mxu1 %vm790_vm6, %v10603_v4  ;;  %3208 = vmatpush1.msra.mxu0 %v8400_v47  ;;  %v1484_v15 = vadd.f32 %v1483_v32, %v1339_v52  ;;  %v10842_v52 = vld [vmem:[#allocation36_spill] sm:$0xff]  ;;  %v507_v32 = vadd.f32 %v506_v23, %v503_v5  ;;  %v10848_v5 = vld [vmem:[#allocation39_spill] sm:$0xff] }
 0x1e9   : > { %5338 = vmatprep.subr.msk.mxu1 %vm10838_vm4, %v10603_v4  ;;  %3211 = vmatprep.subr.mxu0 %v10839_v44  ;;  %vm10843_vm0 = vcmp.eq.s32.totalorder %v10842_v52, %v7955_v27  ;;  %vm10846_vm4 = vcmp.eq.s32.totalorder %v10845_v22, %v7950_v24 }
 0x1ea   : > { %5339 = vmatpush1.msk.msra.mxu1 %vm10840_vm15, %v10603_v4  ;;  %3214 = vmatpush1.msra.mxu0 %v10841_v2  ;;  %vm10847_vm15 = vcmp.eq.s32.totalorder %v10845_v22, %v7955_v27  ;;  %v511_v55 = vadd.f32 %v510_v7, %v507_v32  ;;  %v10853_v7 = vld [vmem:[#allocation41_spill] sm:$0xff] }
 0x1eb   : > { %5340 = vmatprep.subr.msk.mxu1 %vm840_vm3, %v10603_v4  ;;  %3217 = vmatprep.subr.mxu0 %v8476_v61  ;;  %v1587_v56 = vpop.f32.mrf.mxu1 }
 0x1ec   : > { %5341 = vmatpush1.msk.msra.mxu1 %vm10843_vm0, %v10603_v4  ;;  %3220 = vmatpush1.msra.mxu0 %v8513_v21  ;;  %v8802_v18 = vadd.f32 %v1587_v56, %v1474_v62  ;;  %vm10849_vm0 = vcmp.eq.s32.totalorder %v10848_v5, %v7955_v27  ;;  %v10852_v56 = vld [vmem:[#allocation51_spill] sm:$0xff] }
 0x1ed   : > { %5342 = vmatprep.subr.msk.mxu1 %vm10846_vm4, %v10603_v4  ;;  %3223 = vmatprep.subr.mxu0 %v8523_v25  ;;  %v1589_v57 = vpop.f32.mrf.mxu1 }
 0x1ee   : > { %5343 = vmatpush1.msk.msra.mxu1 %vm10847_vm15, %v10603_v4  ;;  %3226 = vmatpush1.msra.mxu0 %v8538_v20  ;;  %v8815_v62 = vadd.f32 %v1589_v57, %v1476_v53  ;;  %v10850_v57 = vld [vmem:[#allocation40_spill] sm:$0xff]  ;;  %vm10868_vm15 = vcmp.eq.s32.totalorder %v10630_v60, %v7955_v27 }
 0x1ef   : > { %5344 = vmatprep.subr.msk.mxu1 %vm838_vm14, %v10603_v4  ;;  %3229 = vmatprep.subr.mxu0 %v8563_v58  ;;  %vm10851_vm4 = vcmp.eq.s32.totalorder %v10850_v57, %v7950_v24 }
 0x1f0   : > { %5345 = vmatpush1.msk.msra.mxu1 %vm10849_vm0, %v10603_v4  ;;  %2898 = vmatprep.mubr.f32.mxu0 %v10602_v10  ;;  %v1596_v23 = vpop.f32.mrf.mxu1 }
 0x1f1   : > { %3232 = vmatpush1.msra.mxu0 %v8590_v3  ;;  %5346 = vmatprep.subr.msk.mxu1 %vm10851_vm4, %v10603_v4  ;;  %v8832_v53 = vadd.f32 %v1596_v23, %v1482_v29  ;;  %v10854_v29 = vld [vmem:[#allocation30_spill] sm:$0xff]  ;;  %vm10870_vm4 = vcmp.eq.s32.totalorder %v10744_v46, %v7950_v24 }
 0x1f2   : > { %2904 = vmatmul.mubr.f32.gmra.mxu0 %v10852_v56  ;;  %3235 = vmatprep.subr.mxu0 %v8600_v0  ;;  %v1598_v48 = vpop.f32.mrf.mxu1  ;;  %v527_v23 = vmul.f32 %v10854_v29, %v511_v55  ;;  %v10857_v29 = vand.u32 4294901760, %v8035_v6  ;;  %v10859_v56 = vld [vmem:[#allocation48_spill] sm:$0xff]  ;;  %v10515_v55 = vsub.s32 6, %v10744_v46  ;;  %v10861_v6 = vsub.s32 7, %v10744_v46 }
 0x1f3   : > { %5347 = vmatpush1.msk.msra.mxu1 %vm785_vm1, %v10603_v4  ;;  %3238 = vmatpush1.msra.mxu0 %v8611_v8  ;;  %v8841_v32 = vadd.f32 %v1598_v48, %v1484_v15  ;;  %v10855_v48 = vld [vmem:[#allocation42_spill] sm:$0xff]  ;;  %v10856_v15 = vld [vmem:[#allocation31_spill] sm:$0xff] }
 0x1f4   : > { %5348 = vmatprep.subr.msk.mxu1 %vm836_vm8, %v10603_v4  ;;  %3241 = vmatprep.subr.mxu0 %v8635_v59  ;;  %v5513_v26 = vtrunc.f32 %v527_v23  ;;  %v10862_v23 = vld [vmem:[#allocation37_spill] sm:$0xff] }
 0x1f5   : > { %5349 = vmatpush1.msk.msra.mxu1 %vm784_vm13, %v10603_v4  ;;  %3244 = vmatpush1.msra.mxu0 %v8645_v34 }
 0x1f6   : > { %3277 = vmatprep.mubr.f32.mxu0 %v10602_v10  ;;  %5350 = vmatprep.subr.msk.mxu1 %vm835_vm2, %v10603_v4 }
 0x1f7   : > { %3280 = vmatmul.mubr.f32.vlgmr.msra.gmra.mxu0 %v10856_v15  ;;  %5351 = vmatpush1.msk.msra.mxu1 %vm783_vm12, %v10603_v4  ;;  %v10858_v15 = vand.u32 4294901760, %v8037_v54  ;;  %v8894_v54 = vcvt.f32.s32 %v5513_v26  ;;  %v10867_v26 = vand.u32 4294901760, %v8130_v49  ;;  %v10871_v49 = vand.u32 4294901760, %v8134_v63  ;;  %v10874_v63 = vld [vmem:[#allocation33_spill] sm:$0xff] }
 0x1f8   : > { %3412 = vmatprep.subr.mxu0 %v10857_v29  ;;  %3141 = vmatprep.mubr.f32.mxu1 %v10602_v10  ;;  %v8886_v29 = vrot.slane %v10862_v23, %v10861_v6 }
 0x1f9   : > { %5352 = vmatprep.subr.msk.mxu1 %vm10512_vm10, %v10603_v4  ;;  %3416 = vmatpush1.msra.mxu0 %v10858_v15  ;;  %10864 = vst [vmem:[#allocation43_spill] sm:$0xff] %v8894_v54  ;;  %v10866_v15 = vand.u32 4294901760, %v8114_v41  ;;  %v10869_v41 = vand.u32 4294901760, %v8132_v39  ;;  %v10873_v39 = vand.u32 4294901760, %v8167_v36  ;;  %v10877_v36 = vand.u32 4294901760, %v8203_v45 }
 0x1fa   : > { %3143 = vmatmul.mubr.f32.gmra.mxu1 %v10859_v56  ;;  %3420 = vmatprep.subr.mxu0 %v10860_v33  ;;  %v10863_v33 = vand.u32 4294901760, %v8069_v51  ;;  %v8910_v51 = vrot.slane %v10862_v23, %v10515_v55  ;;  %vm10514_vm0 = vcmp.eq.s32.totalorder %v6187_v11, %v8886_v29  ;;  %v10875_v23 = vand.u32 4294901760, %v8201_v28 }
 0x1fb   : > { %5353 = vmatpush1.msk.msra.mxu1 %vm10509_vm9, %v10603_v4  ;;  %3285 = vmatprep.mubr.f32.mxu0 %v10602_v10  ;;  %v5103_v6 = vsel %vm10514_vm0, 1.0, %v10602_v10  ;;  %v10879_v28 = vand.u32 4294901760, %v8218_v50  ;;  %vm10882_vm9 = vcmp.eq.s32.totalorder %v6193_v14, %v7955_v27  ;;  %vm10888_vm0 = vcmp.eq.s32.totalorder %v6197_v16, %v7955_v27 }
 0x1fc   : > { %5354 = vmatprep.subr.msk.mxu1 %vm10508_vm7, %v10603_v4  ;;  %3424 = vmatpush1.msra.mxu0 %v10863_v33  ;;  %vm10878_vm7 = vcmp.eq.s32.totalorder %v6187_v11, %v7955_v27  ;;  %vm10528_vm10 = vcmp.eq.s32.totalorder %v6200_v17, %v8910_v51 }
 0x1fd   : > { %3288 = vmatmul.mubr.f32.gmra.mxu0 %v10865_v38  ;;  %5355 = vmatpush1.msk.msra.mxu1 %vm10507_vm5, %v10603_v4  ;;  %vm10510_vm5 = vcmp.eq.s32.totalorder %v6193_v14, %v8886_v29 }
 0x1fe   : > { %3428 = vmatprep.subr.mxu0 %v10866_v15  ;;  %5356 = vmatprep.subr.msk.mxu1 %vm10506_vm11, %v10603_v4  ;;  %vm544_vm11 = vcmp.gt.s32.totalorder %v8894_v54, 0 }
 0x1ff   : > { %3432 = vmatpush1.msra.mxu0 %v10867_v26  ;;  %5357 = vmatpush1.msk.msra.mxu1 %vm10868_vm15, %v10603_v4  ;;  %vm10872_vm15 = vcmp.eq.s32.totalorder %v10744_v46, %v7955_v27  ;;  %v545_v33 = vsel %vm544_vm11, %v8894_v54, 0  ;;  %vm10513_vm11 = vcmp.eq.s32.totalorder %v6193_v14, %v8910_v51 }
 0x200   : > { %3436 = vmatprep.subr.mxu0 %v10869_v41  ;;  %5358 = vmatprep.subr.msk.mxu1 %vm10870_vm4, %v10603_v4  ;;  %vm10511_vm4 = vcmp.eq.s32.totalorder %v6187_v11, %v8910_v51  ;;  %v8963_v41 = vsub.f32 %v5103_v6, %v5103_v6  ;;  %v10883_v6 = vld [vmem:[#allocation50_spill] sm:$0xff] }
 0x201   : > { %3440 = vmatpush1.msra.mxu0 %v10871_v49  ;;  %5359 = vmatpush1.msk.msra.mxu1 %vm10872_vm15, %v10603_v4  ;;  %vm10876_vm15 = vcmp.eq.s32.totalorder %v6187_v11, %v7950_v24  ;;  %v5087_v45 = vsel %vm10511_vm4, 1.0, %v10602_v10  ;;  %vm10885_vm4 = vcmp.eq.s32.totalorder %v6197_v16, %v7950_v24 }
 0x202   : > { %3390 = vmatprep.mubr.f32.mxu1 %v10602_v10  ;;  %3444 = vmatprep.subr.mxu0 %v10873_v39  ;;  %v5102_v39 = vsel %vm10510_vm5, 1.0, %v10602_v10  ;;  %vm10529_vm5 = vcmp.eq.s32.totalorder %v6200_v17, %v8886_v29 }
 0x203   : > { %3394 = vmatmul.mubr.f32.vlgmr.msra.gmra.mxu1 %v10874_v63  ;;  %3448 = vmatpush1.msra.mxu0 %v10875_v23  ;;  %v8994_v23 = vsub.f32 %v5087_v45, %v5087_v45  ;;  %v9024_v45 = vsub.f32 %v5102_v39, %v5102_v39 }
 0x204   : > { %5360 = vmatprep.subr.msk.mxu1 %vm10876_vm15, %v10603_v4  ;;  %3452 = vmatprep.subr.mxu0 %v10877_v36  ;;  %v1764_v15 = vpop.f32.mrf.mxu0  ;;  %vm546_vm15 = vcmp.lt.s32.totalorder %v545_v33, 15 }
 0x205   : > { %5361 = vmatpush1.msk.msra.mxu1 %vm10878_vm7, %v10603_v4  ;;  %3456 = vmatpush1.msra.mxu0 %v10879_v28  ;;  %v8961_v26 = vadd.f32 %v1764_v15, %v8802_v18  ;;  %vm10880_vm7 = vcmp.eq.s32.totalorder %v6193_v14, %v7950_v24  ;;  %v10881_v18 = vand.u32 4294901760, %v8220_v43  ;;  %v10884_v43 = vand.u32 4294901760, %v8280_v12 }
 0x206   : > { %5362 = vmatprep.subr.msk.mxu1 %vm10880_vm7, %v10603_v4  ;;  %3399 = vmatprep.mubr.f32.mxu1 %v10602_v10  ;;  %v1766_v50 = vpop.f32.mrf.mxu0  ;;  %vm948_vm7 = vcmp.eq.s32.totalorder %v6197_v16, %v8886_v29  ;;  %v10886_v12 = vand.u32 4294901760, %v8282_v35  ;;  %v9015_v15 = vsel %vm546_vm15, %v545_v33, 15  ;;  %v10516_v28 = vand.u32 4294901760, %v8963_v41 }
 0x207   : > { %3460 = vmatprep.subr.mxu0 %v10881_v18  ;;  %5363 = vmatpush1.msk.msra.mxu1 %vm10882_vm9, %v10603_v4  ;;  %v8983_v49 = vadd.f32 %v1766_v50, %v8815_v62  ;;  %v5086_v62 = vsel %vm10513_vm11, 1.0, %v10602_v10  ;;  %vm10530_vm9 = vcmp.eq.s32.totalorder %v6197_v16, %v8910_v51  ;;  %vm10521_vm11 = vcmp.eq.s32.totalorder %v6205_v19, %v8886_v29 }
 0x208   : > { %3403 = vmatmul.mubr.f32.gmra.mxu1 %v10883_v6  ;;  %3464 = vmatpush1.msra.mxu0 %v10884_v43  ;;  %10887 = vst [vmem:[#allocation44_spill] sm:$0xff] %v9015_v15  ;;  %v10889_v35 = vand.u32 4294901760, %v8284_v13  ;;  %v5101_v33 = vsel %vm948_vm7, 1.0, %v10602_v10  ;;  %v10891_v13 = vand.u32 4294901760, %v8347_v37  ;;  %v9041_v18 = vsub.f32 %v5086_v62, %v5086_v62 }
 0x209   : > { %5364 = vmatprep.subr.msk.mxu1 %vm10885_vm4, %v10603_v4  ;;  %3468 = vmatprep.subr.mxu0 %v10886_v12  ;;  %v1771_v36 = vpop.f32.mrf.mxu0  ;;  %vm10520_vm4 = vcmp.eq.s32.totalorder %v6205_v19, %v8910_v51  ;;  %v5100_v43 = vsel %vm10529_vm5, 1.0, %v10602_v10  ;;  %vm10519_vm15 = vcmp.eq.s32.totalorder %v10837_v40, %v8886_v29  ;;  %v10893_v37 = vand.u32 4294901760, %v8349_v42 }
 0x20a   : > { %5365 = vmatpush1.msk.msra.mxu1 %vm10888_vm0, %v10603_v4  ;;  %3472 = vmatpush1.msra.mxu0 %v10889_v35  ;;  %v9027_v50 = vadd.f32 %v1771_v36, %v8832_v53  ;;  %vm10890_vm0 = vcmp.eq.s32.totalorder %v6200_v17, %v7950_v24  ;;  %v5085_v53 = vsel %vm10530_vm9, 1.0, %v10602_v10  ;;  %v5084_v12 = vsel %vm10528_vm10, 1.0, %v10602_v10 }
 0x20b   : > { %5366 = vmatprep.subr.msk.mxu1 %vm10890_vm0, %v10603_v4  ;;  %3476 = vmatprep.subr.mxu0 %v10891_v13  ;;  %v1773_v39 = vpop.f32.mrf.mxu0  ;;  %vm10892_vm0 = vcmp.eq.s32.totalorder %v6200_v17, %v7955_v27  ;;  %v5099_v36 = vsel %vm10521_vm11, 1.0, %v10602_v10  ;;  %v10894_v35 = vsub.s32 0, %v10744_v46  ;;  %v10896_v42 = vand.u32 4294901760, %v8369_v9 }
 0x20c   : > { %5367 = vmatpush1.msk.msra.mxu1 %vm10892_vm0, %v10603_v4  ;;  %3480 = vmatpush1.msra.mxu0 %v10893_v37  ;;  %v9060_v62 = vadd.f32 %v1773_v39, %v8841_v32  ;;  %vm10895_vm0 = vcmp.eq.s32.totalorder %v6205_v19, %v7950_v24  ;;  %v9079_v32 = vsub.f32 %v5101_v33, %v5101_v33  ;;  %v5083_v39 = vsel %vm10520_vm4, 1.0, %v10602_v10 }
 0x20d   : > { %v4602_v13 = vrot.slane %v9015_v15, %v10894_v35  ;;  %5368 = vmatprep.subr.msk.mxu1 %vm10895_vm0, %v10603_v4  ;;  %3484 = vmatprep.subr.mxu0 %v10896_v42  ;;  %v9088_v37 = vsub.f32 %v8963_v41, %v10516_v28  ;;  %v10897_v9 = vand.u32 4294901760, %v8400_v47  ;;  %v9097_v33 = vsub.f32 %v5085_v53, %v5085_v53 }
 0x20e   : > { %5369 = vmatpush1.msk.msra.mxu1 %vm790_vm6, %v10603_v4  ;;  %v9099_v42 = vsub.f32 %v5100_v43, %v5100_v43  ;;  %v5098_v55 = vsel %vm10519_vm15, 1.0, %v10602_v10  ;;  %v10898_v28 = vsub.s32 1, %v10744_v46  ;;  %vm10899_vm6 = vcmp.eq.s32.totalorder %v10837_v40, %v7950_v24  ;;  %3569 = vmatprep.mubr.f32.mxu0 %v10602_v10 }
 0x20f   : > { %3488 = vmatpush1.msra.mxu0 %v10897_v9  ;;  %5370 = vmatprep.subr.msk.mxu1 %vm10899_vm6, %v10603_v4  ;;  %v10900_v47 = vand.u32 4294901760, %v10839_v44  ;;  %v9114_v53 = vsub.f32 %v5084_v12, %v5084_v12  ;;  %v9116_v43 = vsub.f32 %v5099_v36, %v5099_v36  ;;  %v1875_v9 = vpop.f32.mrf.mxu1  ;;  %vm10522_vm0 = vcmp.eq.s32.totalorder %v10837_v40, %v8910_v51 }
 0x210   : > { %v4621_v35 = vrot.slane %v9015_v15, %v10898_v28  ;;  %vm10901_vm15 = vcmp.eq.s32.totalorder %v10837_v40, %v7955_v27  ;;  %v10902_v28 = vand.u32 4294901760, %v10841_v2  ;;  %v1876_v44 = vadd.f32 %v1875_v9, %v8961_v26  ;;  %3680 = vmatprep.mubr.f32.mxu1 %v10602_v10 }
 0x211   : > { %3492 = vmatprep.subr.mxu0 %v10900_v47  ;;  %5371 = vmatpush1.msk.msra.mxu1 %vm10901_vm15, %v10603_v4  ;;  %vm4603_vm6 = vcmp.eq.s32.totalorder %v10744_v46, %v4602_v13  ;;  %v9129_v12 = vsub.f32 %v5083_v39, %v5083_v39  ;;  %v10903_v36 = vand.u32 4294901760, %v8476_v61  ;;  %v9138_v54 = vsub.f32 %v5098_v55, %v5098_v55  ;;  %v1877_v9 = vpop.f32.mrf.mxu1 }
 0x212   : > { %3496 = vmatpush1.msra.mxu0 %v10902_v28  ;;  %5372 = vmatprep.subr.msk.mxu1 %vm840_vm3, %v10603_v4  ;;  %v10904_v2 = vand.u32 4294901760, %v8994_v23  ;;  %vm4604_vm15 = vcmp.eq.s32.totalorder %v10630_v60, %v4602_v13  ;;  %vm10905_vm4 = vcmp.eq.s32.totalorder %v10842_v52, %v7955_v27  ;;  %v10906_v61 = vand.u32 4294901760, %v8513_v21 }
 0x213   : > { %3500 = vmatprep.subr.mxu0 %v10903_v36  ;;  %5373 = vmatpush1.msk.msra.mxu1 %vm10905_vm4, %v10603_v4  ;;  %v1878_v39 = vadd.f32 %v1877_v9, %v8983_v49  ;;  %vm4622_vm3 = vcmp.eq.s32.totalorder %v10744_v46, %v4621_v35  ;;  %v5082_v55 = vsel %vm10522_vm0, 1.0, %v10602_v10  ;;  %v10523_v28 = vand.u32 4294901760, %v9041_v18  ;;  %v1882_v9 = vpop.f32.mrf.mxu1 }
 0x214   : > { %v9143_v26 = vsub.f32 %v8994_v23, %v10904_v2  ;;  %3504 = vmatpush1.msra.mxu0 %v10906_v61  ;;  %vm10907_vm11 = vcmp.eq.s32.totalorder %v10845_v22, %v7950_v24  ;;  %v10908_v36 = vand.u32 4294901760, %v8523_v25  ;;  %v5488_v21 = vsel %vm4603_vm6, 1.0, %v10602_v10 }
 0x215   : > { %5374 = vmatprep.subr.msk.mxu1 %vm10907_vm11, %v10603_v4  ;;  %v10909_v49 = vand.u32 4294901760, %v9024_v45  ;;  %vm944_vm4 = vcmp.eq.s32.totalorder %v10842_v52, %v8886_v29  ;;  %vm4623_vm0 = vcmp.eq.s32.totalorder %v10630_v60, %v4621_v35  ;;  %vm10910_vm11 = vcmp.eq.s32.totalorder %v10845_v22, %v7955_v27 }
 0x216   : > { %3508 = vmatprep.subr.mxu0 %v10908_v36  ;;  %5375 = vmatpush1.msk.msra.mxu1 %vm10910_vm11, %v10603_v4  ;;  %v10911_v25 = vand.u32 4294901760, %v8538_v20  ;;  %v5489_v61 = vsel %vm4604_vm15, 1.0, %v10602_v10  ;;  %vm892_vm6 = vcmp.eq.s32.totalorder %v10842_v52, %v8910_v51  ;;  %v10912_v20 = vand.u32 4294901760, %v8563_v58 }
 0x217   : > { %v9171_v2 = vsub.f32 %v9024_v45, %v10909_v49  ;;  %5376 = vmatprep.subr.msk.mxu1 %vm838_vm14, %v10603_v4  ;;  %v5490_v13 = vsel %vm4622_vm3, 1.0, %v10602_v10  ;;  %v9199_v47 = vsub.f32 %v5082_v55, %v5082_v55  ;;  %v1883_v36 = vadd.f32 %v1882_v9, %v9027_v50  ;;  %v1884_v50 = vpop.f32.mrf.mxu1 }
 0x218   : > { %3512 = vmatpush1.msra.mxu0 %v10911_v25  ;;  %vm10913_vm15 = vcmp.eq.s32.totalorder %v10848_v5, %v7955_v27  ;;  %v10914_v49 = vand.u32 4294901760, %v8590_v3  ;;  %v5097_v58 = vsel %vm944_vm4, 1.0, %v10602_v10  ;;  %v9215_v55 = vsub.f32 %v9041_v18, %v10523_v28 }
 0x219   : > { %3516 = vmatprep.subr.mxu0 %v10912_v20  ;;  %5377 = vmatpush1.msk.msra.mxu1 %vm10913_vm15, %v10603_v4  ;;  %vm10533_vm14 = vcmp.eq.s32.totalorder %v10845_v22, %v8886_v29  ;;  %v5491_v9 = vsel %vm4623_vm0, 1.0, %v10602_v10  ;;  %vm10915_vm3 = vcmp.eq.s32.totalorder %v10850_v57, %v7950_v24  ;;  %v10916_v3 = vand.u32 4294901760, %v8600_v0 }
 0x21a   : > { %3520 = vmatpush1.msra.mxu0 %v10914_v49  ;;  %5378 = vmatprep.subr.msk.mxu1 %vm10915_vm3, %v10603_v4  ;;  %v4609_v49 = vmul.f32 %v5488_v21, %v1876_v44  ;;  %v4610_v20 = vmul.f32 %v5489_v61, %v1883_v36  ;;  %v5081_v28 = vsel %vm892_vm6, 1.0, %v10602_v10  ;;  %v1885_v25 = vadd.f32 %v1884_v50, %v9060_v62 }
 0x21b   : > { %3524 = vmatprep.subr.mxu0 %v10916_v3  ;;  %5379 = vmatpush1.msk.msra.mxu1 %vm785_vm1, %v10603_v4  ;;  %v10917_v35 = vand.u32 4294901760, %v8611_v8  ;;  %v10918_v44 = vand.u32 4294901760, %v9079_v32  ;;  %v10919_v61 = vand.u32 4294901760, %v9097_v33  ;;  %vm10534_vm0 = vcmp.eq.s32.totalorder %v10845_v22, %v8910_v51 }
 0x21c   : > { %5380 = vmatprep.subr.msk.mxu1 %vm836_vm8, %v10603_v4  ;;  %v10920_v8 = vand.u32 4294901760, %v8635_v59  ;;  %v4628_v62 = vmul.f32 %v5490_v13, %v1878_v39  ;;  %v4611_v50 = vadd.f32 %v4610_v20, %v4609_v49  ;;  %v5096_v3 = vsel %vm10533_vm14, 1.0, %v10602_v10 }
 0x21d   : > { %3528 = vmatpush1.msra.mxu0 %v10917_v35  ;;  %v9243_v21 = vsub.f32 %v9079_v32, %v10918_v44  ;;  %v9248_v36 = vsub.f32 %v9097_v33, %v10919_v61  ;;  %v4629_v35 = vmul.f32 %v5491_v9, %v1885_v25  ;;  %5381 = vmatpush1.msk.msra.mxu1 %vm784_vm13, %v10603_v4  ;;  %v10921_v44 = vand.u32 4294901760, %v8645_v34 }
 0x21e   : > { %3532 = vmatprep.subr.mxu0 %v10920_v8  ;;  %v9268_v61 = vsub.f32 %v5097_v58, %v5097_v58  ;;  %v9271_v39 = vsub.f32 %v5081_v28, %v5081_v28  ;;  %v10524_v13 = vand.u32 4294901760, %v9099_v42  ;;  %5382 = vmatprep.subr.msk.mxu1 %vm835_vm2, %v10603_v4  ;;  %v4612_v25 = vrot.slane %v4611_v50, 4 }
 0x21f   : > { %3536 = vmatpush1.msra.mxu0 %v10921_v44  ;;  %v4630_v9 = vadd.f32 %v4629_v35, %v4628_v62  ;;  %v5080_v34 = vsel %vm10534_vm0, 1.0, %v10602_v10  ;;  %vm10535_vm13 = vcmp.eq.s32.totalorder %v10848_v5, %v8886_v29  ;;  %5383 = vmatpush1.msk.msra.mxu1 %vm783_vm12, %v10603_v4  ;;  %v9291_v58 = vsub.f32 %v5096_v3, %v5096_v3 }
 0x220   : > { %3571 = vmatmul.mubr.f32.vlgmr.msra.gmra.mxu0 %v6171_v1  ;;  %v10525_v49 = vand.u32 4294901760, %v9114_v53  ;;  %vm10536_vm2 = vcmp.eq.s32.totalorder %v10848_v5, %v8910_v51  ;;  %vm10922_vm1 = vcmp.eq.s32.totalorder %v6187_v11, %v8886_v29  ;;  %vm10923_vm8 = vcmp.eq.s32.totalorder %v6241_v30, %v7950_v24 }
 0x221   : > { %5392 = vmatprep.subr.msk.mxu0 %vm10922_vm1, %v10603_v4  ;;  %5384 = vmatprep.subr.msk.mxu1 %vm10923_vm8, %v10603_v4  ;;  %v4613_v20 = vadd.f32 %v4612_v25, %v4611_v50  ;;  %v4631_v62 = vrot.slane %v4630_v9, 4  ;;  %vm10537_vm12 = vcmp.eq.s32.totalorder %v10850_v57, %v8886_v29  ;;  %vm10924_vm11 = vcmp.eq.s32.totalorder %v6187_v11, %v8910_v51 }
 0x222   : > { %5393 = vmatpush1.msk.msra.mxu0 %vm10924_vm11, %v10603_v4  ;;  %vm10925_vm15 = vcmp.eq.s32.totalorder %v6241_v30, %v7955_v27  ;;  %vm4751_vm3 = vcmask 1040384   ;;  %v9315_v3 = vsub.f32 %v5080_v34, %v5080_v34  ;;  %v9320_v50 = vsub.f32 %v9099_v42, %v10524_v13  ;;  %3576 = vmatprep.mubr.f32.mxu0 %v10602_v10 }
 0x223   : > { %5385 = vmatpush1.msk.msra.mxu1 %vm10925_vm15, %v10603_v4  ;;  %v5095_v35 = vsel %vm10535_vm13, 1.0, %v10602_v10  ;;  %vm10926_vm1 = vcmp.eq.s32.totalorder %v6193_v14, %v8886_v29  ;;  %v4614_v25 = vrot.slane %v4613_v20, 2  ;;  %v4632_v34 = vadd.f32 %v4631_v62, %v4630_v9 }
 0x224   : > { %5394 = vmatprep.subr.msk.mxu0 %vm10926_vm1, %v10603_v4  ;;  %v5079_v13 = vsel %vm10536_vm2, 1.0, %v10602_v10  ;;  %vm889_vm8 = vcmp.eq.s32.totalorder %v10850_v57, %v8910_v51  ;;  %vm10927_vm11 = vcmp.eq.s32.totalorder %v10625_v31, %v7950_v24  ;;  %vm10928_vm15 = vcmp.eq.s32.totalorder %v6193_v14, %v8910_v51  ;;  %3578 = vmatmul.mubr.f32.gmra.mxu0 %v10859_v56 }
 0x225   : > { %5386 = vmatprep.subr.msk.mxu1 %vm10927_vm11, %v10603_v4  ;;  %5395 = vmatpush1.msk.msra.mxu0 %vm10928_vm15, %v10603_v4  ;;  %v9349_v9 = vsub.f32 %v9114_v53, %v10525_v49  ;;  %v5094_v62 = vsel %vm10537_vm12, 1.0, %v10602_v10  ;;  %vm940_vm1 = vcmp.eq.s32.totalorder %v10853_v7, %v8886_v29  ;;  %vm10929_vm11 = vcmp.eq.s32.totalorder %v10625_v31, %v7955_v27 }
 0x226   : > { %5387 = vmatpush1.msk.msra.mxu1 %vm10929_vm11, %v10603_v4  ;;  %v4615_v28 = vadd.f32 %v4614_v25, %v4613_v20  ;;  %v4633_v49 = vrot.slane %v4632_v34, 2  ;;  %v9363_v59 = vsub.f32 %v5095_v35, %v5095_v35  ;;  %5396 = vmatprep.subr.msk.mxu0 %vm948_vm7, %v10603_v4  ;;  %vm10930_vm15 = vcmp.eq.s32.totalorder %v10630_v60, %v7950_v24 }
 0x227   : > { %5388 = vmatprep.subr.msk.mxu1 %vm10930_vm15, %v10603_v4  ;;  %v9375_v44 = vsub.f32 %v5079_v13, %v5079_v13  ;;  %v10931_v20 = vand.u32 4294901760, %v9116_v43  ;;  %v5078_v25 = vsel %vm889_vm8, 1.0, %v10602_v10  ;;  %5397 = vmatpush1.msk.msra.mxu0 %vm10530_vm9, %v10603_v4  ;;  %vm10932_vm11 = vcmp.eq.s32.totalorder %v10630_v60, %v7955_v27 }
 0x228   : > { %5389 = vmatpush1.msk.msra.mxu1 %vm10932_vm11, %v10603_v4  ;;  %v4616_v13 = vrot.slane %v4615_v28, 1  ;;  %v4634_v8 = vadd.f32 %v4633_v49, %v4632_v34  ;;  %v9394_v0 = vsub.f32 %v5094_v62, %v5094_v62  ;;  %5398 = vmatprep.subr.msk.mxu0 %vm10529_vm5, %v10603_v4  ;;  %vm10933_vm15 = vcmp.eq.s32.totalorder %v10744_v46, %v7950_v24 }
 0x229   : > { %v9380_v35 = vsub.f32 %v9116_v43, %v10931_v20  ;;  %v5093_v20 = vsel %vm940_vm1, 1.0, %v10602_v10  ;;  %5390 = vmatprep.subr.msk.mxu1 %vm10933_vm15, %v10603_v4  ;;  %v10934_v49 = vand.u32 4294901760, %v9129_v12  ;;  %5399 = vmatpush1.msk.msra.mxu0 %vm10528_vm10, %v10603_v4  ;;  %vm10935_vm11 = vcmp.eq.s32.totalorder %v10744_v46, %v7955_v27 }
 0x22a   : > { %5391 = vmatpush1.msk.msra.mxu1 %vm10935_vm11, %v10603_v4  ;;  %v4635_v24 = vrot.slane %v4634_v8, 1  ;;  %v9424_v15 = vsub.f32 %v5078_v25, %v5078_v25  ;;  %vm10937_vm15 = vcmp.eq.s32.totalorder %v6205_v19, %v8886_v29  ;;  %v9438_v62 = vsub.f32 %v5093_v20, %v5093_v20  ;;  %3791 = vmatprep.mubr.f32.mxu0 %v10602_v10 }
 0x22b   : > { %v9412_v34 = vsub.f32 %v9129_v12, %v10934_v49  ;;  %v10936_v49 = vand.u32 4294901760, %v9138_v54  ;;  %5400 = vmatprep.subr.msk.mxu0 %vm10937_vm15, %v10603_v4  ;;  %vm888_vm11 = vcmp.eq.s32.totalorder %v10853_v7, %v8910_v51  ;;  %vm939_vm10 = vcmp.eq.s32.totalorder %v10855_v48, %v8886_v29  ;;  %3682 = vmatmul.mubr.f32.vlgmr.msra.gmra.mxu1 %v6171_v1 }
 0x22c   : > { %vm10938_vm5 = vcmp.eq.s32.totalorder %v6205_v19, %v8910_v51  ;;  %v4617_v25 = vadd.f32 %v4616_v13, %v4615_v28  ;;  %vm887_vm15 = vcmp.eq.s32.totalorder %v10855_v48, %v8910_v51  ;;  %v10531_v20 = vand.u32 4294901760, %v9291_v58  ;;  %3687 = vmatprep.mubr.f32.mxu1 %v10602_v10 }
 0x22d   : > { %v9429_v63 = vsub.f32 %v9138_v54, %v10936_v49  ;;  %5401 = vmatpush1.msk.msra.mxu0 %vm10938_vm5, %v10603_v4  ;;  %v4636_v49 = vadd.f32 %v4635_v24, %v4634_v8  ;;  %v10939_v27 = vand.u32 4294901760, %v9088_v37  ;;  %vm10940_vm9 = vcmp.eq.s32.totalorder %v10837_v40, %v8886_v29 }
 0x22e   : > { %5402 = vmatprep.subr.msk.mxu0 %vm10940_vm9, %v10603_v4  ;;  %v3872_v6 = vand.u32 4294901760, %v9412_v34  ;;  %v10941_v38 = vand.u32 4294901760, %v9199_v47  ;;  %v10942_v8 = vand.u32 4294901760, %v9268_v61  ;;  %vm938_vm5 = vcmp.eq.s32.totalorder %v6241_v30, %v8886_v29 }
 0x22f   : > { %3819 = vmatprep.subr.mxu1 %v10939_v27  ;;  %v10943_v37 = vand.u32 4294901760, %v9143_v26  ;;  %vm10944_vm9 = vcmp.eq.s32.totalorder %v10837_v40, %v8910_v51  ;;  %v9478_v34 = vsel %vm4751_vm3, %v4617_v25, %v4636_v49  ;;  %v5092_v24 = vsel %vm939_vm10, 1.0, %v10602_v10  ;;  %3689 = vmatmul.mubr.f32.gmra.mxu1 %v10859_v56 }
 0x230   : > { %v9462_v28 = vsub.f32 %v9199_v47, %v10941_v38  ;;  %v9467_v13 = vsub.f32 %v9268_v61, %v10942_v8  ;;  %5403 = vmatpush1.msk.msra.mxu0 %vm10944_vm9, %v10603_v4  ;;  %10945 = vst [vmem:[#allocation27_spill] sm:$0xff] %v9478_v34  ;;  %v5077_v38 = vsel %vm888_vm11, 1.0, %v10602_v10  ;;  %v10946_v26 = vand.u32 4294901760, %v9271_v39  ;;  %4038 = vmatprep.mubr.f32.mxu1 %v10602_v10 }
 0x231   : > { %3825 = vmatpush1.msra.mxu1 %v10943_v37  ;;  %v10947_v8 = vand.u32 4294901760, %v9171_v2  ;;  %v5076_v25 = vsel %vm887_vm15, 1.0, %v10602_v10  ;;  %vm886_vm3 = vcmp.eq.s32.totalorder %v6241_v30, %v8910_v51  ;;  %vm937_vm9 = vcmp.eq.s32.totalorder %v10625_v31, %v8886_v29  ;;  %5404 = vmatprep.subr.msk.mxu0 %vm944_vm4, %v10603_v4  ;;  %v1990_v30 = vpop.f32.mrf.mxu0 }
 0x232   : > { %v9491_v27 = vsub.f32 %v9271_v39, %v10946_v26  ;;  %v10948_v2 = vand.u32 4294901760, %v9215_v55  ;;  %v3878_v37 = vand.u32 4294901760, %v9429_v63  ;;  %v9515_v26 = vsub.f32 %v9291_v58, %v10531_v20  ;;  %5405 = vmatpush1.msk.msra.mxu0 %vm892_vm6, %v10603_v4 }
 0x233   : > { %3831 = vmatprep.subr.mxu1 %v10947_v8  ;;  %v5091_v8 = vsel %vm938_vm5, 1.0, %v10602_v10  ;;  %v3884_v63 = vand.u32 4294901760, %v9462_v28  ;;  %v9528_v55 = vsub.f32 %v5077_v38, %v5077_v38  ;;  %v9531_v20 = vsub.f32 %v5092_v24, %v5092_v24  ;;  %5406 = vmatprep.subr.msk.mxu0 %vm10533_vm14, %v10603_v4 }
 0x234   : > { %3837 = vmatpush1.msra.mxu1 %v10948_v2  ;;  %v3890_v2 = vand.u32 4294901760, %v9467_v13  ;;  %v10949_v34 = vand.u32 4294901760, %v9243_v21  ;;  %v9539_v49 = vsub.f32 %v5076_v25, %v5076_v25  ;;  %v5075_v28 = vsel %vm886_vm3, 1.0, %v10602_v10  ;;  %5407 = vmatpush1.msk.msra.mxu0 %vm10534_vm0, %v10603_v4 }
 0x235   : > { %v5090_v13 = vsel %vm937_vm9, 1.0, %v10602_v10  ;;  %v3896_v38 = vand.u32 4294901760, %v9491_v27  ;;  %v9557_v24 = vsub.f32 %v5091_v8, %v5091_v8  ;;  %v10951_v25 = vand.u32 4294901760, %v9315_v3  ;;  %5408 = vmatprep.subr.msk.mxu0 %vm10535_vm13, %v10603_v4 }
 0x236   : > { %3843 = vmatprep.subr.mxu1 %v10949_v34  ;;  %v10950_v34 = vand.u32 4294901760, %v9248_v36  ;;  %vm885_vm14 = vcmp.eq.s32.totalorder %v10625_v31, %v8910_v51  ;;  %v10952_v21 = vand.u32 4294901760, %v9320_v50  ;;  %v3902_v36 = vand.u32 4294901760, %v9515_v26  ;;  %5409 = vmatpush1.msk.msra.mxu0 %vm10536_vm2, %v10603_v4  ;;  %v1992_v31 = vpop.f32.mrf.mxu0 }
 0x237   : > { %v3907_v56 = vsub.f32 %v9315_v3, %v10951_v25  ;;  %v10953_v27 = vand.u32 4294901760, %v9363_v59  ;;  %vm936_vm0 = vcmp.eq.s32.totalorder %v10630_v60, %v8886_v29  ;;  %v10954_v25 = vand.u32 4294901760, %v9349_v9  ;;  %5410 = vmatprep.subr.msk.mxu0 %vm10537_vm12, %v10603_v4 }
 0x238   : > { %3849 = vmatpush1.msra.mxu1 %v10950_v34  ;;  %v10538_v34 = vand.u32 4294901760, %v9394_v0  ;;  %v9583_v50 = vsub.f32 %v5075_v28, %v5075_v28  ;;  %v9585_v26 = vsub.f32 %v5090_v13, %v5090_v13  ;;  %vm10547_vm13 = vcmp.eq.s32.totalorder %v10630_v60, %v8910_v51  ;;  %5411 = vmatpush1.msk.msra.mxu0 %vm889_vm8, %v10603_v4 }
 0x239   : > { %3855 = vmatprep.subr.mxu1 %v10952_v21  ;;  %v3913_v8 = vsub.f32 %v9363_v59, %v10953_v27  ;;  %v10540_v21 = vand.u32 4294901760, %v9424_v15  ;;  %v10955_v27 = vand.u32 4294901760, %v9380_v35  ;;  %v10956_v9 = vand.u32 4294901760, %v9375_v44  ;;  %5412 = vmatprep.subr.msk.mxu0 %vm940_vm1, %v10603_v4 }
 0x23a   : > { %3861 = vmatpush1.msra.mxu1 %v10954_v25  ;;  %v5074_v13 = vsel %vm885_vm14, 1.0, %v10602_v10  ;;  %vm10546_vm2 = vcmp.eq.s32.totalorder %v10744_v46, %v8886_v29  ;;  %v3908_v35 = vand.u32 4294901760, %v3907_v56  ;;  %vm10545_vm12 = vcmp.eq.s32.totalorder %v10744_v46, %v8910_v51  ;;  %5413 = vmatpush1.msk.msra.mxu0 %vm888_vm11, %v10603_v4  ;;  %v10968_v46 = vld [vmem:[#allocation45_spill] sm:$0xff] }
 0x23b   : > { %3867 = vmatprep.subr.mxu1 %v10955_v27  ;;  %v3919_v28 = vsub.f32 %v9375_v44, %v10956_v9  ;;  %v5089_v27 = vsel %vm936_vm0, 1.0, %v10602_v10  ;;  %v3925_v56 = vsub.f32 %v9394_v0, %v10538_v34  ;;  %v5073_v25 = vsel %vm10547_vm13, 1.0, %v10602_v10  ;;  %5414 = vmatprep.subr.msk.mxu0 %vm939_vm10, %v10603_v4 }
 0x23c   : > { %3873 = vmatpush1.msra.mxu1 %v3872_v6  ;;  %v3914_v6 = vand.u32 4294901760, %v3913_v8  ;;  %v3931_v8 = vsub.f32 %v9424_v15, %v10540_v21  ;;  %v5088_v34 = vsel %vm10546_vm2, 1.0, %v10602_v10  ;;  %v5072_v21 = vsel %vm10545_vm12, 1.0, %v10602_v10  ;;  %5415 = vmatpush1.msk.msra.mxu0 %vm887_vm15, %v10603_v4 }
 0x23d   : > { %3879 = vmatprep.subr.mxu1 %v3878_v37  ;;  %v9633_v37 = vsub.f32 %v5074_v13, %v5074_v13  ;;  %v10957_v13 = vand.u32 4294901760, %v9438_v62  ;;  %v10958_v57 = vand.u32 4294901760, %v9528_v55  ;;  %5416 = vmatprep.subr.msk.mxu0 %vm938_vm5, %v10603_v4  ;;  %v9671_v7 = vsub.f32 %v5088_v34, %v5088_v34 }
 0x23e   : > { %3885 = vmatpush1.msra.mxu1 %v3884_v63  ;;  %v9647_v63 = vsub.f32 %v5089_v27, %v5089_v27  ;;  %v9661_v27 = vsub.f32 %v5073_v25, %v5073_v25  ;;  %v10959_v48 = vand.u32 4294901760, %v9531_v20  ;;  %5417 = vmatpush1.msk.msra.mxu0 %vm886_vm3, %v10603_v4  ;;  %v10960_v5 = vand.u32 4294901760, %v9539_v49 }
 0x23f   : > { %3891 = vmatprep.subr.mxu1 %v3890_v2  ;;  %v3937_v9 = vsub.f32 %v9438_v62, %v10957_v13  ;;  %v3920_v2 = vand.u32 4294901760, %v3919_v28  ;;  %v3943_v13 = vsub.f32 %v9528_v55, %v10958_v57  ;;  %v3932_v57 = vand.u32 4294901760, %v3931_v8  ;;  %5418 = vmatprep.subr.msk.mxu0 %vm937_vm9, %v10603_v4 }
 0x240   : > { %3897 = vmatpush1.msra.mxu1 %v3896_v38  ;;  %v3926_v38 = vand.u32 4294901760, %v3925_v56  ;;  %v3949_v28 = vsub.f32 %v9531_v20, %v10959_v48  ;;  %v3955_v34 = vsub.f32 %v9539_v49, %v10960_v5  ;;  %5419 = vmatpush1.msk.msra.mxu0 %vm885_vm14, %v10603_v4  ;;  %v11039_v52 = vand.u32 4294901760, %v9585_v26 }
 0x241   : > { %3903 = vmatprep.subr.mxu1 %v3902_v36  ;;  %v9681_v36 = vsub.f32 %v5072_v21, %v5072_v21  ;;  %v3938_v48 = vand.u32 4294901760, %v3937_v9  ;;  %v3944_v5 = vand.u32 4294901760, %v3943_v13  ;;  %5420 = vmatprep.subr.msk.mxu0 %vm936_vm0, %v10603_v4  ;;  %v3996_v21 = vand.u32 4294901760, %v9671_v7 }
 0x242   : > { %3909 = vmatpush1.msra.mxu1 %v3908_v35  ;;  %v10961_v35 = vand.u32 4294901760, %v9557_v24  ;;  %v3950_v9 = vand.u32 4294901760, %v3949_v28  ;;  %5421 = vmatpush1.msk.msra.mxu0 %vm10547_vm13, %v10603_v4  ;;  %v3956_v13 = vand.u32 4294901760, %v3955_v34  ;;  %vm10971_vm13 = vcmp.eq.s32.totalorder %v6193_v14, %v8886_v29 }
 0x243   : > { %3915 = vmatprep.subr.mxu1 %v3914_v6  ;;  %v10962_v6 = vand.u32 4294901760, %v9583_v50  ;;  %5422 = vmatprep.subr.msk.mxu0 %vm10546_vm2, %v10603_v4  ;;  %vm10970_vm2 = vcmp.eq.s32.totalorder %v6187_v11, %v8910_v51 }
 0x244   : > { %v3961_v25 = vsub.f32 %v9557_v24, %v10961_v35  ;;  %3921 = vmatpush1.msra.mxu1 %v3920_v2  ;;  %v10963_v2 = vand.u32 4294901760, %v9585_v26  ;;  %5423 = vmatpush1.msk.msra.mxu0 %vm10545_vm12, %v10603_v4  ;;  %vm10969_vm12 = vcmp.eq.s32.totalorder %v6187_v11, %v8886_v29 }
 0x245   : > { %v3967_v8 = vsub.f32 %v9583_v50, %v10962_v6  ;;  %3927 = vmatprep.subr.mxu1 %v3926_v38  ;;  %v10964_v38 = vand.u32 4294901760, %v9633_v37  ;;  %4055 = vmatprep.subr.mxu0 %v8963_v41 }
 0x246   : > { %v3973_v35 = vsub.f32 %v9585_v26, %v10963_v2  ;;  %3933 = vmatpush1.msra.mxu1 %v3932_v57  ;;  %v3962_v28 = vand.u32 4294901760, %v3961_v25  ;;  %v10965_v57 = vand.u32 4294901760, %v9647_v63  ;;  %v3997_v25 = vsub.f32 %v9671_v7, %v3996_v21  ;;  %3797 = vmatmul.mubr.f32.vlgmr.msra.gmra.mxu0 %v10968_v46  ;;  %v10982_v46 = vld [vmem:[#allocation39_spill] sm:$0xff] }
 0x247   : > { %v3979_v6 = vsub.f32 %v9633_v37, %v10964_v38  ;;  %3939 = vmatprep.subr.mxu1 %v3938_v48  ;;  %v3968_v34 = vand.u32 4294901760, %v3967_v8  ;;  %v10966_v38 = vand.u32 4294901760, %v9661_v27  ;;  %4058 = vmatpush1.msra.mxu0 %v8994_v23 }
 0x248   : > { %v3985_v2 = vsub.f32 %v9647_v63, %v10965_v57  ;;  %3945 = vmatpush1.msra.mxu1 %v3944_v5  ;;  %v3974_v56 = vand.u32 4294901760, %v3973_v35  ;;  %v10967_v57 = vand.u32 4294901760, %v9681_v36  ;;  %4061 = vmatprep.subr.mxu0 %v9024_v45  ;;  %v3998_v35 = vand.u32 4294901760, %v3997_v25 }
 0x249   : > { %v3991_v48 = vsub.f32 %v9661_v27, %v10966_v38  ;;  %3951 = vmatprep.subr.mxu1 %v3950_v9  ;;  %v3980_v5 = vand.u32 4294901760, %v3979_v6  ;;  %4064 = vmatpush1.msra.mxu0 %v9041_v18  ;;  %v10987_v6 = vld [vmem:[#allocation51_spill] sm:$0xff]  ;;  %v10992_v25 = vand.u32 4294901760, %v8994_v23  ;;  %v10996_v23 = vld [vmem:[#allocation49_spill] sm:$0xff] }
 0x24a   : > { %3957 = vmatpush1.msra.mxu1 %v3956_v13  ;;  %v4003_v8 = vsub.f32 %v9681_v36, %v10967_v57  ;;  %v3986_v38 = vand.u32 4294901760, %v3985_v2  ;;  %4067 = vmatprep.subr.mxu0 %v9079_v32  ;;  %v10994_v57 = vand.u32 4294901760, %v9024_v45  ;;  %v10997_v45 = vand.u32 4294901760, %v9079_v32 }
 0x24b   : > { %3963 = vmatprep.subr.mxu1 %v3962_v28  ;;  %v3992_v9 = vand.u32 4294901760, %v3991_v48  ;;  %4070 = vmatpush1.msra.mxu0 %v9097_v33  ;;  %v10991_v48 = vand.u32 4294901760, %v8963_v41  ;;  %v10995_v41 = vand.u32 4294901760, %v9041_v18  ;;  %v11000_v18 = vand.u32 4294901760, %v9099_v42 }
 0x24c   : > { %3969 = vmatpush1.msra.mxu1 %v3968_v34  ;;  %v4004_v13 = vand.u32 4294901760, %v4003_v8  ;;  %4073 = vmatprep.subr.mxu0 %v9099_v42  ;;  %v10990_v34 = vld [vmem:[#allocation31_spill] sm:$0xff]  ;;  %v10998_v8 = vand.u32 4294901760, %v9097_v33  ;;  %v11003_v32 = vand.u32 4294901760, %v9114_v53  ;;  %v11005_v33 = vand.u32 4294901760, %v9116_v43  ;;  %v11006_v42 = vld [vmem:[#allocation33_spill] sm:$0xff] }
 0x24d   : > { %3975 = vmatprep.subr.mxu1 %v3974_v56  ;;  %4076 = vmatpush1.msra.mxu0 %v9114_v53  ;;  %v10985_v56 = vld [vmem:[#allocation40_spill] sm:$0xff]  ;;  %v11009_v53 = vand.u32 4294901760, %v9138_v54 }
 0x24e   : > { %3981 = vmatpush1.msra.mxu1 %v3980_v5  ;;  %4079 = vmatprep.subr.mxu0 %v9116_v43  ;;  %v10993_v5 = vld [vmem:[#allocation48_spill] sm:$0xff]  ;;  %v11011_v43 = vand.u32 4294901760, %v9199_v47 }
 0x24f   : > { %3987 = vmatprep.subr.mxu1 %v3986_v38  ;;  %4082 = vmatpush1.msra.mxu0 %v9129_v12  ;;  %v11001_v38 = vld [vmem:[#allocation32_spill] sm:$0xff] }
 0x250   : > { %3993 = vmatpush1.msra.mxu1 %v3992_v9  ;;  %4085 = vmatprep.subr.mxu0 %v9138_v54  ;;  %v11007_v9 = vand.u32 4294901760, %v9129_v12  ;;  %v11013_v12 = vand.u32 4294901760, %v9268_v61  ;;  %v11016_v54 = vand.u32 4294901760, %v9271_v39 }
 0x251   : > { %3999 = vmatprep.subr.mxu1 %v3998_v35  ;;  %4088 = vmatpush1.msra.mxu0 %v9199_v47  ;;  %v11017_v47 = vand.u32 4294901760, %v9291_v58 }
 0x252   : > { %4005 = vmatpush1.msra.mxu1 %v4004_v13  ;;  %4091 = vmatprep.subr.mxu0 %v9268_v61  ;;  %v11021_v61 = vand.u32 4294901760, %v9363_v59 }
 0x253   : > { %4040 = vmatmul.mubr.f32.vlgmr.msra.gmra.mxu1 %v6171_v1  ;;  %5424 = vmatprep.subr.msk.mxu1 %vm10969_vm12, %v10603_v4  ;;  %vm10972_vm12 = vcmp.eq.s32.totalorder %v6193_v14, %v8910_v51 }
 0x254   : > { %5425 = vmatpush1.msk.msra.mxu1 %vm10970_vm2, %v10603_v4  ;;  %4094 = vmatpush1.msra.mxu0 %v9271_v39  ;;  %vm10974_vm2 = vcmp.eq.s32.totalorder %v6200_v17, %v8886_v29  ;;  %v11023_v39 = vand.u32 4294901760, %v9375_v44 }
 0x255   : > { %5426 = vmatprep.subr.msk.mxu1 %vm10971_vm13, %v10603_v4  ;;  %4097 = vmatprep.subr.mxu0 %v9291_v58  ;;  %vm10973_vm13 = vcmp.eq.s32.totalorder %v6197_v16, %v8910_v51  ;;  %v11037_v58 = vand.u32 4294901760, %v9583_v50 }
 0x256   : > { %5427 = vmatpush1.msk.msra.mxu1 %vm10972_vm12, %v10603_v4  ;;  %4100 = vmatpush1.msra.mxu0 %v9315_v3  ;;  %vm10975_vm12 = vcmp.eq.s32.totalorder %v6200_v17, %v8910_v51 }
 0x257   : > { %5428 = vmatprep.subr.msk.mxu1 %vm948_vm7, %v10603_v4  ;;  %4103 = vmatprep.subr.mxu0 %v9363_v59  ;;  %v11027_v59 = vand.u32 4294901760, %v9424_v15 }
 0x258   : > { %5429 = vmatpush1.msk.msra.mxu1 %vm10973_vm13, %v10603_v4  ;;  %4106 = vmatpush1.msra.mxu0 %v9375_v44  ;;  %vm10976_vm13 = vcmp.eq.s32.totalorder %v6205_v19, %v8886_v29  ;;  %v11044_v44 = vand.u32 4294901760, %v9661_v27 }
 0x259   : > { %5430 = vmatprep.subr.msk.mxu1 %vm10974_vm2, %v10603_v4  ;;  %4109 = vmatprep.subr.mxu0 %v9394_v0  ;;  %vm10977_vm2 = vcmp.eq.s32.totalorder %v6205_v19, %v8910_v51 }
 0x25a   : > { %5431 = vmatpush1.msk.msra.mxu1 %vm10975_vm12, %v10603_v4  ;;  %4112 = vmatpush1.msra.mxu0 %v9424_v15  ;;  %vm10978_vm12 = vcmp.eq.s32.totalorder %v10837_v40, %v8886_v29  ;;  %v11033_v15 = vand.u32 4294901760, %v9539_v49 }
 0x25b   : > { %5432 = vmatprep.subr.msk.mxu1 %vm10976_vm13, %v10603_v4  ;;  %4115 = vmatprep.subr.mxu0 %v9438_v62  ;;  %vm10979_vm13 = vcmp.eq.s32.totalorder %v10837_v40, %v8910_v51 }
 0x25c   : > { %5433 = vmatpush1.msk.msra.mxu1 %vm10977_vm2, %v10603_v4  ;;  %4118 = vmatpush1.msra.mxu0 %v9528_v55  ;;  %vm10980_vm2 = vcmp.eq.s32.totalorder %v10845_v22, %v8886_v29 }
 0x25d   : > { %5434 = vmatprep.subr.msk.mxu1 %vm10978_vm12, %v10603_v4  ;;  %4121 = vmatprep.subr.mxu0 %v9531_v20  ;;  %vm10981_vm12 = vcmp.eq.s32.totalorder %v10845_v22, %v8910_v51 }
 0x25e   : > { %5435 = vmatpush1.msk.msra.mxu1 %vm10979_vm13, %v10603_v4  ;;  %4124 = vmatpush1.msra.mxu0 %v9539_v49  ;;  %vm10983_vm13 = vcmp.eq.s32.totalorder %v10982_v46, %v8886_v29 }
 0x25f   : > { %5436 = vmatprep.subr.msk.mxu1 %vm944_vm4, %v10603_v4  ;;  %4127 = vmatprep.subr.mxu0 %v9557_v24 }
 0x260   : > { %5437 = vmatpush1.msk.msra.mxu1 %vm892_vm6, %v10603_v4  ;;  %4130 = vmatpush1.msra.mxu0 %v9583_v50 }
 0x261   : > { %5438 = vmatprep.subr.msk.mxu1 %vm10980_vm2, %v10603_v4  ;;  %4133 = vmatprep.subr.mxu0 %v9585_v26  ;;  %vm10984_vm2 = vcmp.eq.s32.totalorder %v10982_v46, %v8910_v51 }
 0x262   : > { %5439 = vmatpush1.msk.msra.mxu1 %vm10981_vm12, %v10603_v4  ;;  %3802 = vmatprep.mubr.f32.mxu0 %v10602_v10  ;;  %vm10986_vm12 = vcmp.eq.s32.totalorder %v10985_v56, %v8886_v29 }
 0x263   : > { %5440 = vmatprep.subr.msk.mxu1 %vm10983_vm13, %v10603_v4  ;;  %4136 = vmatpush1.msra.mxu0 %v9633_v37  ;;  %vm10999_vm13 = vcmp.eq.s32.totalorder %v10630_v60, %v8910_v51 }
 0x264   : > { %5441 = vmatpush1.msk.msra.mxu1 %vm10984_vm2, %v10603_v4  ;;  %3808 = vmatmul.mubr.f32.gmra.mxu0 %v10987_v6  ;;  %vm11002_vm2 = vcmp.eq.s32.totalorder %v11001_v38, %v8886_v29 }
 0x265   : > { %5442 = vmatprep.subr.msk.mxu1 %vm10986_vm12, %v10603_v4  ;;  %4139 = vmatprep.subr.mxu0 %v9647_v63  ;;  %vm11004_vm12 = vcmp.eq.s32.totalorder %v11001_v38, %v8910_v51 }
 0x266   : > { %5443 = vmatpush1.msk.msra.mxu1 %vm889_vm8, %v10603_v4  ;;  %4142 = vmatpush1.msra.mxu0 %v9661_v27 }
 0x267   : > { %5444 = vmatprep.subr.msk.mxu1 %vm940_vm1, %v10603_v4  ;;  %4145 = vmatprep.subr.mxu0 %v9671_v7  ;;  %v2001_v7 = vpop.f32.mrf.mxu0 }
 0x268   : > { %5445 = vmatpush1.msk.msra.mxu1 %vm888_vm11, %v10603_v4  ;;  %4148 = vmatpush1.msra.mxu0 %v9681_v36 }
 0x269   : > { %4181 = vmatprep.mubr.f32.mxu0 %v10602_v10  ;;  %5446 = vmatprep.subr.msk.mxu1 %vm939_vm10, %v10603_v4 }
 0x26a   : > { %4184 = vmatmul.mubr.f32.vlgmr.msra.gmra.mxu0 %v10990_v34  ;;  %5447 = vmatpush1.msk.msra.mxu1 %vm887_vm15, %v10603_v4 }
 0x26b   : > { %4316 = vmatprep.subr.mxu0 %v10991_v48  ;;  %4045 = vmatprep.mubr.f32.mxu1 %v10602_v10 }
 0x26c   : > { %5448 = vmatprep.subr.msk.mxu1 %vm938_vm5, %v10603_v4  ;;  %4320 = vmatpush1.msra.mxu0 %v10992_v25 }
 0x26d   : > { %4047 = vmatmul.mubr.f32.gmra.mxu1 %v10993_v5  ;;  %4324 = vmatprep.subr.mxu0 %v10994_v57 }
 0x26e   : > { %5449 = vmatpush1.msk.msra.mxu1 %vm886_vm3, %v10603_v4  ;;  %4189 = vmatprep.mubr.f32.mxu0 %v10602_v10 }
 0x26f   : > { %5450 = vmatprep.subr.msk.mxu1 %vm937_vm9, %v10603_v4  ;;  %4328 = vmatpush1.msra.mxu0 %v10995_v41 }
 0x270   : > { %4192 = vmatmul.mubr.f32.gmra.mxu0 %v10996_v23  ;;  %5451 = vmatpush1.msk.msra.mxu1 %vm885_vm14, %v10603_v4 }
 0x271   : > { %4332 = vmatprep.subr.mxu0 %v10997_v45  ;;  %5452 = vmatprep.subr.msk.mxu1 %vm936_vm0, %v10603_v4 }
 0x272   : > { %4336 = vmatpush1.msra.mxu0 %v10998_v8  ;;  %5453 = vmatpush1.msk.msra.mxu1 %vm10999_vm13, %v10603_v4  ;;  %vm11008_vm13 = vcmp.eq.s32.totalorder %v6187_v11, %v8886_v29 }
 0x273   : > { %4340 = vmatprep.subr.mxu0 %v11000_v18  ;;  %5454 = vmatprep.subr.msk.mxu1 %vm11002_vm2, %v10603_v4  ;;  %vm11010_vm2 = vcmp.eq.s32.totalorder %v6187_v11, %v8910_v51  ;;  %v11015_v11 = vld [vmem:[#allocation50_spill] sm:$0xff] }
 0x274   : > { %4344 = vmatpush1.msra.mxu0 %v11003_v32  ;;  %5455 = vmatpush1.msk.msra.mxu1 %vm11004_vm12, %v10603_v4  ;;  %vm11012_vm12 = vcmp.eq.s32.totalorder %v6193_v14, %v8886_v29 }
 0x275   : > { %4294 = vmatprep.mubr.f32.mxu1 %v10602_v10  ;;  %4348 = vmatprep.subr.mxu0 %v11005_v33 }
 0x276   : > { %4298 = vmatmul.mubr.f32.vlgmr.msra.gmra.mxu1 %v11006_v42  ;;  %4352 = vmatpush1.msra.mxu0 %v11007_v9 }
 0x277   : > { %5456 = vmatprep.subr.msk.mxu1 %vm11008_vm13, %v10603_v4  ;;  %4356 = vmatprep.subr.mxu0 %v11009_v53  ;;  %vm11014_vm13 = vcmp.eq.s32.totalorder %v6193_v14, %v8910_v51  ;;  %v11019_v14 = vand.u32 4294901760, %v9315_v3  ;;  %v11041_v3 = vand.u32 4294901760, %v9633_v37 }
 0x278   : > { %5457 = vmatpush1.msk.msra.mxu1 %vm11010_vm2, %v10603_v4  ;;  %4360 = vmatpush1.msra.mxu0 %v11011_v43  ;;  %vm11018_vm2 = vcmp.eq.s32.totalorder %v6197_v16, %v8910_v51  ;;  %v11025_v16 = vand.u32 4294901760, %v9394_v0  ;;  %v11031_v0 = vand.u32 4294901760, %v9528_v55  ;;  %v2233_v55 = vpop.f32.mrf.mxu1 }
 0x279   : > { %5458 = vmatprep.subr.msk.mxu1 %vm11012_vm12, %v10603_v4  ;;  %4303 = vmatprep.mubr.f32.mxu1 %v10602_v10  ;;  %vm11020_vm12 = vcmp.eq.s32.totalorder %v6200_v17, %v8886_v29 }
 0x27a   : > { %4364 = vmatprep.subr.mxu0 %v11013_v12  ;;  %5459 = vmatpush1.msk.msra.mxu1 %vm11014_vm13, %v10603_v4  ;;  %vm11024_vm13 = vcmp.eq.s32.totalorder %v6205_v19, %v8886_v29 }
 0x27b   : > { %4307 = vmatmul.mubr.f32.gmra.mxu1 %v11015_v11  ;;  %4368 = vmatpush1.msra.mxu0 %v11016_v54 }
 0x27c   : > { %5460 = vmatprep.subr.msk.mxu1 %vm948_vm7, %v10603_v4  ;;  %4372 = vmatprep.subr.mxu0 %v11017_v47  ;;  %vm11022_vm7 = vcmp.eq.s32.totalorder %v6200_v17, %v8910_v51  ;;  %v11029_v17 = vand.u32 4294901760, %v9438_v62  ;;  %v11045_v62 = vand.u32 4294901760, %v9681_v36 }
 0x27d   : > { %5461 = vmatpush1.msk.msra.mxu1 %vm11018_vm2, %v10603_v4  ;;  %4376 = vmatpush1.msra.mxu0 %v11019_v14  ;;  %vm11026_vm2 = vcmp.eq.s32.totalorder %v6205_v19, %v8910_v51  ;;  %v11032_v19 = vand.u32 4294901760, %v9531_v20  ;;  %v2003_v20 = vpop.f32.mrf.mxu0 }
 0x27e   : > { %5462 = vmatprep.subr.msk.mxu1 %vm11020_vm12, %v10603_v4  ;;  %4380 = vmatprep.subr.mxu0 %v11021_v61  ;;  %vm11028_vm12 = vcmp.eq.s32.totalorder %v10837_v40, %v8886_v29 }
 0x27f   : > { %5463 = vmatpush1.msk.msra.mxu1 %vm11022_vm7, %v10603_v4  ;;  %4384 = vmatpush1.msra.mxu0 %v11023_v39  ;;  %vm11030_vm7 = vcmp.eq.s32.totalorder %v10837_v40, %v8910_v51  ;;  %v11035_v40 = vand.u32 4294901760, %v9557_v24  ;;  %v2377_v49 = vpop.f32.mrf.mxu0 }
 0x280   : > { %5464 = vmatprep.subr.msk.mxu1 %vm11024_vm13, %v10603_v4  ;;  %4388 = vmatprep.subr.mxu0 %v11025_v16  ;;  %vm11034_vm13 = vcmp.eq.s32.totalorder %v10845_v22, %v8886_v29  ;;  %v11050_v16 = vsub.s32 2, %v11001_v38 }
 0x281   : > { %5465 = vmatpush1.msk.msra.mxu1 %vm11026_vm2, %v10603_v4  ;;  %4392 = vmatpush1.msra.mxu0 %v11027_v59  ;;  %vm11040_vm2 = vcmp.eq.s32.totalorder %v10982_v46, %v8910_v51  ;;  %v10115_v24 = vpop.f32.mrf.mxu0  ;;  %v11051_v59 = vld [vmem:[#allocation44_spill] sm:$0xff] }
 0x282   : > { %5466 = vmatprep.subr.msk.mxu1 %vm11028_vm12, %v10603_v4  ;;  %4396 = vmatprep.subr.mxu0 %v11029_v17  ;;  %vm11042_vm12 = vcmp.eq.s32.totalorder %v10985_v56, %v8886_v29  ;;  %v4640_v17 = vrot.slane %v11051_v59, %v11050_v16 }
 0x283   : > { %5467 = vmatpush1.msk.msra.mxu1 %vm11030_vm7, %v10603_v4  ;;  %4400 = vmatpush1.msra.mxu0 %v11031_v0  ;;  %v2385_v26 = vpop.f32.mrf.mxu0 }
 0x284   : > { %5468 = vmatprep.subr.msk.mxu1 %vm944_vm4, %v10603_v4  ;;  %4404 = vmatprep.subr.mxu0 %v11032_v19  ;;  %vm11036_vm4 = vcmp.eq.s32.totalorder %v10845_v22, %v8910_v51  ;;  %v11043_v22 = vand.u32 4294901760, %v9647_v63 }
 0x285   : > { %5469 = vmatpush1.msk.msra.mxu1 %vm892_vm6, %v10603_v4  ;;  %4408 = vmatpush1.msra.mxu0 %v11033_v15  ;;  %vm11038_vm6 = vcmp.eq.s32.totalorder %v10982_v46, %v8886_v29  ;;  %v2234_v15 = vadd.f32 %v2233_v55, %v1990_v30 }
 0x286   : > { %5470 = vmatprep.subr.msk.mxu1 %vm11034_vm13, %v10603_v4  ;;  %4412 = vmatprep.subr.mxu0 %v11035_v40 }
 0x287   : > { %5471 = vmatpush1.msk.msra.mxu1 %vm11036_vm4, %v10603_v4  ;;  %4416 = vmatpush1.msra.mxu0 %v11037_v58 }
 0x288   : > { %5472 = vmatprep.subr.msk.mxu1 %vm11038_vm6, %v10603_v4  ;;  %4420 = vmatprep.subr.mxu0 %v11039_v52 }
 0x289   : > { %5473 = vmatpush1.msk.msra.mxu1 %vm11040_vm2, %v10603_v4  ;;  %4424 = vmatpush1.msra.mxu0 %v11041_v3  ;;  %v2378_v3 = vadd.f32 %v2377_v49, %v2234_v15 }
 0x28a   : > { %5474 = vmatprep.subr.msk.mxu1 %vm11042_vm12, %v10603_v4  ;;  %4428 = vmatprep.subr.mxu0 %v11043_v22 }
 0x28b   : > { %5475 = vmatpush1.msk.msra.mxu1 %vm889_vm8, %v10603_v4  ;;  %4432 = vmatpush1.msra.mxu0 %v11044_v44  ;;  %vm11047_vm8 = vcmp.eq.s32.totalorder %v11001_v38, %v8886_v29  ;;  %v2235_v29 = vpop.f32.mrf.mxu1  ;;  %v11053_v44 = vsub.s32 3, %v11001_v38 }
 0x28c   : > { %5476 = vmatprep.subr.msk.mxu1 %vm940_vm1, %v10603_v4  ;;  %4436 = vmatprep.subr.mxu0 %v3996_v21  ;;  %vm11048_vm1 = vcmp.eq.s32.totalorder %v11001_v38, %v8910_v51  ;;  %v2236_v16 = vadd.f32 %v2235_v29, %v1992_v31 }
 0x28d   : > { %5477 = vmatpush1.msk.msra.mxu1 %vm888_vm11, %v10603_v4  ;;  %4440 = vmatpush1.msra.mxu0 %v11045_v62  ;;  %v2240_v50 = vpop.f32.mrf.mxu1  ;;  %v4659_v62 = vrot.slane %v11051_v59, %v11053_v44 }
 0x28e   : > { %4473 = vmatprep.mubr.f32.mxu0 %v10602_v10  ;;  %5478 = vmatprep.subr.msk.mxu1 %vm939_vm10, %v10603_v4  ;;  %vm11046_vm10 = vcmp.eq.s32.totalorder %v10630_v60, %v8910_v51  ;;  %v2387_v51 = vpop.f32.mrf.mxu0  ;;  %v2241_v39 = vadd.f32 %v2240_v50, %v2001_v7 }
 0x28f   : > { %4475 = vmatmul.mubr.f32.vlgmr.msra.gmra.mxu0 %v6171_v1  ;;  %5479 = vmatpush1.msk.msra.mxu1 %vm887_vm15, %v10603_v4  ;;  %v2242_v37 = vpop.f32.mrf.mxu1  ;;  %vm4661_vm11 = vcmp.eq.s32.totalorder %v10630_v60, %v4659_v62  ;;  %vm4660_vm15 = vcmp.eq.s32.totalorder %v11001_v38, %v4659_v62 }
 0x290   : > { %5480 = vmatprep.subr.msk.mxu1 %vm938_vm5, %v10603_v4  ;;  %4480 = vmatprep.mubr.f32.mxu0 %v10602_v10  ;;  %v2668_v63 = vpop.f32.mrf.mxu0  ;;  %v2243_v40 = vadd.f32 %v2242_v37, %v2003_v20  ;;  %v2386_v58 = vadd.f32 %v2385_v26, %v2241_v39  ;;  %v2380_v26 = vadd.f32 %v10115_v24, %v2236_v16  ;;  %v5495_v24 = vsel %vm4661_vm11, 1.0, %v10602_v10 }
 0x291   : > { %5481 = vmatpush1.msk.msra.mxu1 %vm886_vm3, %v10603_v4  ;;  %4584 = vmatprep.mubr.f32.mxu1 %v10602_v10  ;;  %vm4757_vm11 = vcmask 1043456  }
 0x292   : > { %5482 = vmatprep.subr.msk.mxu1 %vm937_vm9, %v10603_v4  ;;  %v10119_v27 = vpop.f32.mrf.mxu0 }
 0x293   : > { %4482 = vmatmul.mubr.f32.gmra.mxu0 %v10993_v5  ;;  %5483 = vmatpush1.msk.msra.mxu1 %vm885_vm14, %v10603_v4  ;;  %vm4641_vm14 = vcmp.eq.s32.totalorder %v11001_v38, %v4640_v17 }
 0x294   : > { %5484 = vmatprep.subr.msk.mxu1 %vm936_vm0, %v10603_v4  ;;  %v2675_v21 = vpop.f32.mrf.mxu0  ;;  %vm4642_vm0 = vcmp.eq.s32.totalorder %v10630_v60, %v4640_v17  ;;  %v5492_v55 = vsel %vm4641_vm14, 1.0, %v10602_v10  ;;  %v11054_v17 = vsub.s32 4, %v11001_v38 }
 0x295   : > { %5485 = vmatpush1.msk.msra.mxu1 %vm11046_vm10, %v10603_v4 }
 0x296   : > { %5486 = vmatprep.subr.msk.mxu1 %vm11047_vm8, %v10603_v4  ;;  %v2677_v13 = vpop.f32.mrf.mxu0  ;;  %v4678_v15 = vrot.slane %v11051_v59, %v11054_v17  ;;  %vm4753_vm8 = vcmask 1041408  }
 0x297   : > { %5487 = vmatpush1.msk.msra.mxu1 %vm11048_vm1, %v10603_v4  ;;  %v2491_v4 = vpop.f32.mrf.mxu1  ;;  %vm4755_vm1 = vcmask 1042432  }
 0x298   : > { %4586 = vmatmul.mubr.f32.vlgmr.msra.gmra.mxu1 %v6171_v1  ;;  %v2894_v56 = vpop.f32.mrf.mxu0  ;;  %vm4680_vm5 = vcmp.eq.s32.totalorder %v10630_v60, %v4678_v15  ;;  %vm4679_vm3 = vcmp.eq.s32.totalorder %v11001_v38, %v4678_v15 }
 0x299   : > { %4591 = vmatprep.mubr.f32.mxu1 %v10602_v10  ;;  %v10117_v1 = vpop.f32.mrf.mxu1 }
 0x29a   : > { %v10123_v28 = vpop.f32.mrf.mxu0 }
 0x29b   : > { %v2500_v36 = vpop.f32.mrf.mxu1 }
 0x29c   : > { %4593 = vmatmul.mubr.f32.gmra.mxu1 %v10993_v5  ;;  %v2501_v22 = vadd.f32 %v2500_v36, %v2386_v58 }
 0x29d   : > { %v2502_v35 = vpop.f32.mrf.mxu1 }
 0x29e   : > { %v2676_v30 = vadd.f32 %v2675_v21, %v2501_v22 }
 0x29f   : > { %v2779_v46 = vpop.f32.mrf.mxu1 }
 0x2a1   : > { %v10121_v6 = vpop.f32.mrf.mxu1 }
 0x2a3   : > { %v2786_v34 = vpop.f32.mrf.mxu1 }
 0x2a4   : > { %v2787_v39 = vadd.f32 %v2786_v34, %v2676_v30 }
 0x2a5   : > { %v10125_v25 = vpop.f32.mrf.mxu1 }
 0x2a7   : > { %v3137_v5 = vpop.f32.mrf.mxu1 }
 0x2a9   : > { %v3139_v41 = vpop.f32.mrf.mxu1 }
 0x2b2   : > { %v2905_v2 = vpop.f32.mrf.mxu0 }
 0x2b4   : > { %v2907_v48 = vpop.f32.mrf.mxu0 }
 0x2b7   : > { %v3281_v57 = vpop.f32.mrf.mxu0 }
 0x2b9   : > { %v10127_v23 = vpop.f32.mrf.mxu0 }
 0x2ba   : > { %v3144_v45 = vpop.f32.mrf.mxu1 }
 0x2bb   : > { %v3145_v7 = vadd.f32 %v3144_v45, %v2905_v2  ;;  %v5493_v2 = vsel %vm4642_vm0, 1.0, %v10602_v10  ;;  %v3138_v45 = vadd.f32 %v3137_v5, %v2894_v56 }
 0x2bc   : > { %v3146_v18 = vpop.f32.mrf.mxu1 }
 0x2bd   : > { %v3289_v8 = vpop.f32.mrf.mxu0  ;;  %v3147_v31 = vadd.f32 %v3146_v18, %v2907_v48 }
 0x2be   : > { %v3290_v29 = vadd.f32 %v3289_v8, %v3145_v7 }
 0x2bf   : > { %v3291_v33 = vpop.f32.mrf.mxu0 }
 0x2c0   : > { %v3292_v48 = vadd.f32 %v3291_v33, %v3147_v31 }
 0x2c3   : > { %v3395_v32 = vpop.f32.mrf.mxu1 }
 0x2c5   : > { %v10131_v9 = vpop.f32.mrf.mxu1 }
 0x2c8   : > { %v3404_v43 = vpop.f32.mrf.mxu1 }
 0x2ca   : > { %v3406_v11 = vpop.f32.mrf.mxu1 }
 0x2cb   : > { %v3407_v58 = vadd.f32 %v3406_v11, %v3292_v48 }
 0x2e0   : > { %v10129_v42 = vpop.f32.mrf.mxu0 }
 0x2e2   : > { %v10133_v53 = vpop.f32.mrf.mxu0 }
 0x2e4   : > { %v3579_v12 = vpop.f32.mrf.mxu0 }
 0x2e6   : > { %v10137_v47 = vpop.f32.mrf.mxu0 }
 0x2eb   : > { %v10135_v54 = vpop.f32.mrf.mxu1 }
 0x2ed   : > { %v10141_v61 = vpop.f32.mrf.mxu1 }
 0x2ef   : > { %v3690_v19 = vpop.f32.mrf.mxu1 }
 0x2f1   : > { %v3692_v50 = vpop.f32.mrf.mxu1 }
 0x306   : > { %v10139_v14 = vpop.f32.mrf.mxu0 }
 0x307   : > { %11049 = vst [vmem:[#allocation28_spill] sm:$0xff] %v10139_v14  ;;  %v2492_v14 = vadd.f32 %v2491_v4, %v2378_v3 }
 0x308   : > { %v10146_v0 = vpop.f32.mrf.mxu0 }
 0x309   : > { %11052 = vst [vmem:[#allocation35_spill] sm:$0xff] %v10146_v0  ;;  %v2388_v0 = vadd.f32 %v2387_v51, %v2243_v40  ;;  %v2669_v36 = vadd.f32 %v2668_v63, %v2492_v14  ;;  %v2494_v51 = vadd.f32 %v10117_v1, %v2380_v26  ;;  %v3282_v63 = vadd.f32 %v3281_v57, %v3138_v45 }
 0x30a   : > { %v4648_v1 = vmul.f32 %v5493_v2, %v2787_v39  ;;  %v11055_v57 = vsub.s32 5, %v11001_v38 }
 0x30b   : > { %v2503_v37 = vadd.f32 %v2502_v35, %v2388_v0  ;;  %v2780_v21 = vadd.f32 %v2779_v46, %v2669_v36  ;;  %v3405_v35 = vadd.f32 %v3404_v43, %v3290_v29  ;;  %v2671_v34 = vadd.f32 %v10119_v27, %v2494_v51 }
 0x30c   : > { %v3140_v46 = vadd.f32 %v3139_v41, %v10123_v28  ;;  %v3396_v5 = vadd.f32 %v3395_v32, %v3282_v63  ;;  %v4697_v27 = vrot.slane %v11051_v59, %v11055_v57  ;;  %v5494_v41 = vsel %vm4660_vm15, 1.0, %v10602_v10 }
 0x30d   : > { %v2678_v4 = vadd.f32 %v2677_v13, %v2503_v37  ;;  %v3580_v8 = vadd.f32 %v3579_v12, %v3405_v35  ;;  %v4647_v14 = vmul.f32 %v5492_v55, %v2780_v21  ;;  %v2782_v0 = vadd.f32 %v10121_v6, %v2671_v34 }
 0x30e   : > { %v3573_v3 = vadd.f32 %v10129_v42, %v3396_v5  ;;  %v5497_v6 = vsel %vm4680_vm5, 1.0, %v10602_v10  ;;  %vm4699_vm9 = vcmp.eq.s32.totalorder %v10630_v60, %v4697_v27  ;;  %vm4698_vm7 = vcmp.eq.s32.totalorder %v11001_v38, %v4697_v27  ;;  %v11056_v15 = vld [vmem:[#allocation28_spill] sm:$0xff] }
 0x30f   : > { %v2789_v13 = vadd.f32 %v10125_v25, %v2678_v4  ;;  %v3284_v25 = vadd.f32 %v10127_v23, %v3140_v46  ;;  %v3691_v28 = vadd.f32 %v3690_v19, %v3580_v8  ;;  %v4649_v32 = vadd.f32 %v4648_v1, %v4647_v14 }
 0x310   : > { %v3582_v23 = vadd.f32 %v10137_v47, %v3407_v58  ;;  %v3684_v11 = vadd.f32 %v10135_v54, %v3573_v3  ;;  %v5496_v19 = vsel %vm4679_vm3, 1.0, %v10602_v10  ;;  %v4666_v44 = vmul.f32 %v5494_v41, %v2782_v0 }
 0x311   : > { %v4667_v33 = vmul.f32 %v5495_v24, %v2789_v13  ;;  %v3398_v12 = vadd.f32 %v10131_v9, %v3284_v25  ;;  %v4686_v7 = vmul.f32 %v5497_v6, %v3691_v28  ;;  %v5499_v9 = vsel %vm4699_vm9, 1.0, %v10602_v10  ;;  %v11058_v13 = vld [vmem:[#allocation35_spill] sm:$0xff] }
 0x312   : > { %v3693_v16 = vadd.f32 %v3692_v50, %v3582_v23  ;;  %v4650_v55 = vrot.slane %v4649_v32, 4  ;;  %v4685_v26 = vmul.f32 %v5496_v19, %v3684_v11  ;;  %v5498_v37 = vsel %vm4698_vm7, 1.0, %v10602_v10 }
 0x313   : > { %v10159_v49 = vpop.f32.mrf.mxu1  ;;  %v3575_v62 = vadd.f32 %v10133_v53, %v3398_v12  ;;  %v4668_v47 = vadd.f32 %v4667_v33, %v4666_v44  ;;  %v11057_v34 = vsub.s32 6, %v11001_v38  ;;  %vm4759_vm7 = vcmask 1044480  }
 0x314   : > { %v4687_v39 = vadd.f32 %v4686_v7, %v4685_v26  ;;  %v4705_v2 = vmul.f32 %v5499_v9, %v3693_v16  ;;  %v4651_v29 = vadd.f32 %v4650_v55, %v4649_v32  ;;  %v4042_v24 = vadd.f32 %v10159_v49, %v11056_v15 }
 0x315   : > { %v4043_v56 = vpop.f32.mrf.mxu1  ;;  %v3686_v54 = vadd.f32 %v10141_v61, %v3575_v62  ;;  %v4669_v51 = vrot.slane %v4668_v47, 4  ;;  %v4716_v1 = vrot.slane %v11051_v59, %v11057_v34  ;;  %v11059_v49 = vsub.s32 7, %v11001_v38 }
 0x316   : > { %v4688_v4 = vrot.slane %v4687_v39, 4  ;;  %v4652_v61 = vrot.slane %v4651_v29, 2  ;;  %v4044_v46 = vadd.f32 %v4043_v56, %v11058_v13  ;;  %v411_v13 = vld [vmem:[%s6093_s12] sm:$0xff]  ;;  %s5505_s12 = sshll.u32 %s5851_s24, 5 }
 0x317   : > { %v4704_v53 = vmul.f32 %v5498_v37, %v3686_v54  ;;  %v4670_v35 = vadd.f32 %v4669_v51, %v4668_v47  ;;  %vm4717_vm13 = vcmp.eq.s32.totalorder %v11001_v38, %v4716_v1  ;;  %vm4718_vm4 = vcmp.eq.s32.totalorder %v10630_v60, %v4716_v1  ;;  %s10247_s20 = scalar_lea.hbm %s11066_s3, %s5505_s12 }
 0x318   : > { %v4689_v8 = vadd.f32 %v4688_v4, %v4687_v39  ;;  %v4653_v58 = vadd.f32 %v4652_v61, %v4651_v29  ;;  %vm536_vm3 = vcmp.gt.f32.partialorder %v411_v13, 0.0 }
 0x319   : > { %v4706_v50 = vadd.f32 %v4705_v2, %v4704_v53  ;;  %v4671_v3 = vrot.slane %v4670_v35, 2  ;;  %v11060_v53 = vld [vmem:[#allocation34_spill] sm:$0xff] }
 0x31a   : > { %v4690_v32 = vrot.slane %v4689_v8, 2  ;;  %v4654_v44 = vrot.slane %v4653_v58, 1  ;;  %vm529_vm12 = vcmp.ge.s32.totalorder %v11060_v53, 0  ;;  %vm530_vm10 = vcmp.lt.s32.totalorder %v11060_v53, 16 }
 0x31b   : > { %v4707_v14 = vrot.slane %v4706_v50, 4  ;;  %vm531_vm14 = vmand %vm529_vm12, %vm530_vm10 }
 0x31d   : > { %v4708_v6 = vadd.f32 %v4707_v14, %v4706_v50 }
 0x31f   : > { %v4709_v9 = vrot.slane %v4708_v6, 2 }
 0x321   : > { %v4710_v51 = vadd.f32 %v4709_v9, %v4708_v6 }
 0x323   : > { %v4711_v15 = vrot.slane %v4710_v51, 1 }
 0x324   : > { %v10148_v52 = vpop.f32.mrf.mxu0 }
 0x325   : > { %v4712_v14 = vadd.f32 %v4711_v15, %v4710_v51 }
 0x326   : > { %v10155_v20 = vpop.f32.mrf.mxu0 }
 0x32a   : > { %v10167_v40 = vpop.f32.mrf.mxu0 }
 0x32b   : > { %v4186_v48 = vadd.f32 %v10167_v40, %v4042_v24  ;;  %v11061_v24 = vld [vmem:[#allocation43_spill] sm:$0xff] }
 0x32c   : > { %v4187_v43 = vpop.f32.mrf.mxu0  ;;  %vm532_vm0 = vcmp.ge.s32.totalorder %v11061_v24, 0  ;;  %vm534_vm5 = vcmp.lt.s32.totalorder %v11061_v24, 16 }
 0x32d   : > { %v4048_v18 = vpop.f32.mrf.mxu1  ;;  %vm533_vm15 = vmand %vm531_vm14, %vm532_vm0 }
 0x32e   : > { %v4049_v63 = vadd.f32 %v4048_v18, %v10148_v52  ;;  %v4735_v52 = vrot.slane %v11051_v59, %v11059_v49  ;;  %v4188_v18 = vadd.f32 %v4187_v43, %v4044_v46  ;;  %v412_v46 = vld [vmem:[%s6099_s16] sm:$0xff]  ;;  %s403_s16 = scalar_lea.vmem [#allocation14], %s4964_s10 }
 0x32f   : > { %v4050_v42 = vpop.f32.mrf.mxu1  ;;  %vm537_vm9 = vcmp.gt.f32.partialorder %v412_v46, 1.5  ;;  %s4786_s17 = sshll.u32 %s403_s16, 4  ;;  %s10249_s17 = int_to_ptr.vmem [resolvable:$true] %s4786_s17 }
 0x330   : > { %v4193_v22 = vpop.f32.mrf.mxu0  ;;  %v4051_v5 = vadd.f32 %v4050_v42, %v10155_v20  ;;  %vm4736_vm6 = vcmp.eq.s32.totalorder %v11001_v38, %v4735_v52  ;;  %vm4737_vm2 = vcmp.eq.s32.totalorder %v10630_v60, %v4735_v52  ;;  %v5500_v42 = vsel %vm4717_vm13, 1.0, %v10602_v10  ;;  %vm10236_vm13 = vmand %vm533_vm15, %vm534_vm5  ;;  %s5763_s24 = scalar_lea.vmem %s10249_s17, 32  ;;  %p5770_p8 = scmp.lt.s32.totalorder %s10249_s17, %s5768_s30 }
 0x331   : > { %v4194_v27 = vadd.f32 %v4193_v22, %v4049_v63  ;;  %v5501_v22 = vsel %vm4718_vm4, 1.0, %v10602_v10  ;;  %v5502_v55 = vsel %vm4736_vm6, 1.0, %v10602_v10  ;;  %v5503_v26 = vsel %vm4737_vm2, 1.0, %v10602_v10  ;;  %v11062_v63 = vld [vmem:[#allocation27_spill] sm:$0xff]  ;;  %vm538_vm6 = vmand %vm536_vm3, %vm537_vm9  ;;  %p5764_p1 = scmp.ne.s32.totalorder %s10249_s17, %s5763_s24  ;;  %p5771_p5 = scmp.lt.s32.totalorder %s5769_s23, %s5763_s24 }
 0x332   : > { %v4195_v36 = vpop.f32.mrf.mxu0  ;;  %v4691_v38 = vadd.f32 %v4690_v32, %v4689_v8  ;;  %vm4761_vm4 = vcmask 1045504   ;;  %vm4763_vm2 = vcmask 1046528   ;;  %vm539_vm12 = vmand %vm538_vm6, %vm10236_vm13 }
 0x333   : > { %v4196_v40 = vadd.f32 %v4195_v36, %v4051_v5  ;;  %p5765_p10 = pnand %p5764_p1, %p11067_p6  ;;  %p5772_p11 = por %p5771_p5, %p5770_p8 }
 0x334   : > { %v4692_v4 = vrot.slane %v4691_v38, 1 }
 0x335   : > { %p5766_p3 = pneg %p5765_p10 }
 0x336   : > { %v4299_v30 = vpop.f32.mrf.mxu1 }
 0x337   : > { %v4300_v25 = vadd.f32 %v4299_v30, %v4186_v48  ;;  %v4672_v30 = vadd.f32 %v4671_v3, %v4670_v35  ;;  %v4693_v35 = vadd.f32 %v4692_v4, %v4691_v38  ;;  %p5773_p12 = pnand %p5772_p11, %p5766_p3 }
 0x338   : > { %v4301_v45 = vpop.f32.mrf.mxu1 }
 0x339   : > { %v4302_v20 = vadd.f32 %v4301_v45, %v4188_v18  ;;  %v4673_v29 = vrot.slane %v4672_v30, 1 }
 0x33b   : > { %v4308_v21 = vpop.f32.mrf.mxu1 }
 0x33c   : > { %v4309_v56 = vadd.f32 %v4308_v21, %v4194_v27 }
 0x33d   : > { %v4310_v0 = vpop.f32.mrf.mxu1 }
 0x33e   : > { %v4311_v59 = vadd.f32 %v4310_v0, %v4196_v40  ;;  %v11065_v40 = vld [vmem:[#allocation29_spill] sm:$0xff] }
 0x34f   : > { %v4476_v31 = vpop.f32.mrf.mxu0 }
 0x350   : > { %v4477_v41 = vadd.f32 %v4476_v31, %v4300_v25  ;;  %v4655_v31 = vadd.f32 %v4654_v44, %v4653_v58 }
 0x351   : > { %v4478_v17 = vpop.f32.mrf.mxu0 }
 0x352   : > { %v4479_v43 = vadd.f32 %v4478_v17, %v4302_v20  ;;  %v4674_v17 = vadd.f32 %v4673_v29, %v4672_v30  ;;  %v4754_v61 = vsel %vm4753_vm8, %v11062_v63, %v4655_v31  ;;  %v5871_v20 = vmov 0  }
 0x353   : > { %v4483_v57 = vpop.f32.mrf.mxu0 }
 0x354   : > { %v4484_v23 = vadd.f32 %v4483_v57, %v4309_v56  ;;  %v4756_v8 = vsel %vm4755_vm1, %v4754_v61, %v4674_v17 }
 0x355   : > { %v4485_v33 = vpop.f32.mrf.mxu0  ;;  %v4758_v49 = vsel %vm4757_vm11, %v4756_v8, %v4693_v35 }
 0x356   : > { %v4486_v62 = vadd.f32 %v4485_v33, %v4311_v59  ;;  %v4760_v25 = vsel %vm4759_vm7, %v4758_v49, %v4712_v14 }
 0x358   : > { %v4587_v28 = vpop.f32.mrf.mxu1 }
 0x359   : > { %v4588_v11 = vadd.f32 %v4587_v28, %v4477_v41 }
 0x35a   : > { %v4589_v12 = vpop.f32.mrf.mxu1 }
 0x35b   : > { %v4590_v7 = vadd.f32 %v4589_v12, %v4479_v43  ;;  %v4723_v54 = vmul.f32 %v5500_v42, %v4588_v11 }
 0x35c   : > { %v4594_v19 = vpop.f32.mrf.mxu1 }
 0x35d   : > { %v4595_v16 = vadd.f32 %v4594_v19, %v4484_v23  ;;  %v4742_v39 = vmul.f32 %v5502_v55, %v4590_v7 }
 0x35e   : > { %v4596_v47 = vpop.f32.mrf.mxu1 }
 0x35f   : > { %v4724_v37 = vmul.f32 %v5501_v22, %v4595_v16  ;;  %v4597_v36 = vadd.f32 %v4596_v47, %v4486_v62 }
 0x361   : > { %v4725_v2 = vadd.f32 %v4724_v37, %v4723_v54  ;;  %v4743_v45 = vmul.f32 %v5503_v26, %v4597_v36 }
 0x363   : > { %v4726_v50 = vrot.slane %v4725_v2, 4  ;;  %v4744_v21 = vadd.f32 %v4743_v45, %v4742_v39 }
 0x365   : > { %v4727_v10 = vadd.f32 %v4726_v50, %v4725_v2  ;;  %v4745_v60 = vrot.slane %v4744_v21, 4 }
 0x367   : > { %v4728_v34 = vrot.slane %v4727_v10, 2  ;;  %v4746_v1 = vadd.f32 %v4745_v60, %v4744_v21 }
 0x369   : > { %v4729_v48 = vadd.f32 %v4728_v34, %v4727_v10  ;;  %v4747_v5 = vrot.slane %v4746_v1, 2 }
 0x36b   : > { %v4730_v0 = vrot.slane %v4729_v48, 1  ;;  %v4748_v57 = vadd.f32 %v4747_v5, %v4746_v1 }
 0x36d   : > { %v4731_v18 = vadd.f32 %v4730_v0, %v4729_v48  ;;  %v4749_v27 = vrot.slane %v4748_v57, 1 }
 0x36f   : > { %v4750_v58 = vadd.f32 %v4749_v27, %v4748_v57  ;;  %v4762_v3 = vsel %vm4761_vm4, %v4760_v25, %v4731_v18 }
 0x371   : > { %v4764_v28 = vsel %vm4763_vm2, %v4762_v3, %v4750_v58 }
 0x372   : > { %vm4765_vm10 = vcmp.gt.f32.partialorder %v11065_v40, %v4764_v28 }
 0x373   : > { %vm4766_vm8 = vmand %vm539_vm12, %vm4765_vm10 }
 0x374   : > { %vm4767_vm1 = vmpackc.low %vm4766_vm8, %vm4766_vm8 }
 0x375   : > { %vm4768_vm14 = vmpackc.even %vm4767_vm1, %vm4767_vm1 }
 0x376   : > { %v4769_v56 = vsel %vm4768_vm14, 16843009, %v5871_v20 }
 0x377   : > { %4770 = vst [vmem:[%s403_s16] sm:$0x3] %v4769_v56 }
 0x378   : > { %5776 = shalt.err (!%p5773_p12)
}
 0x379   : > { %s5777_s26 = scalar_lea.hbm %s10247_s20, 32  ;;  %s5781_s28 = scalar_lea.hbm %s11066_s3, 64 }
 0x37a   : > { %p5778_p13 = scmp.ne.s32.totalorder %s10247_s20, %s5777_s26  ;;  %p5782_p7 = scmp.lt.s32.totalorder %s10247_s20, %s11066_s3 }
 0x37b   : > { %p5783_p9 = scmp.lt.s32.totalorder %s5781_s28, %s5777_s26 }
 0x37c   : > { %p5779_p2 = pnand %p5778_p13, %p11067_p6 }
 0x37d   : > { %p5784_p0 = por %p5783_p9, %p5782_p7 }
 0x37e   : > { %p5780_p4 = pneg %p5779_p2 }
 0x380   : > { %p5785_p1 = pnand %p5784_p0, %p5780_p4 }
 0x382   : > { %5788 = shalt.err (!%p5785_p1)
}
 0x383   : > { %5533 = dma.vmem_to_hbm [thread:$0]  (%p11067_p6), %s10249_s17, 32, %s10247_s20, %s4772_s19  }
 0x384 PF: > { %s11068_s8 = sld [smem:[#allocation21_spill]] }
 0x385   : > { %s11069_s9 = sld [smem:[#allocation26_spill]] }
 0x386   : > { %s11070_s4 = sld [smem:[#allocation23_spill]] }
 0x38a   : > { %s4798_s27 = sand.u32 1, %s11068_s8  }
 0x38b   : > { %p11071_p10 = scmp.ne.s32.totalorder %s11069_s9, 0  ;;  %s4799_s6 = scalar_lea.sflag [#allocation4], %s4798_s27 }
 0x38c   : > { %p11072_p3 = scmp.ge.s32.totalorder %s11070_s4, 2 }
 0x38e   : > { %p5556_p8 = pnand %p11072_p3, %p11071_p10 }
 0x390   : > { %p5557_p5 = pneg %p5556_p8 }
 0x392   : > { %5834 = dma.done.wait (%p5557_p5), %s4799_s6, 32  }
 0x393   : > { %5836 = vsyncadd (%p5557_p5), %s4799_s6, 4294967264  ;;  %s28_s26 = sadd.s32 1, %s11070_s4   ;;  %s11073_s11 = sld [smem:[#allocation22_spill]] }
 0x394   : > { %p25_p11 = scmp.ge.s32.totalorder %s28_s26, 4   ;;  %s11074_s23 = sld [smem:[#allocation25_spill]] }
 0x395   : > { %s11075_s7 = sld [smem:[#allocation24_spill]]  ;;  %s11076_s21 = smov %s5843_s22 }
 0x396   : > { %s11078_s24 = smov %s5855_s25 }
 0x397   :  { %27 = sbr.rel (!%p25_p11) target bundleno = 17 (0x11), region = 129 }
 0x399   : > { %s11077_s22 = smov %s11073_s11 }
 0x39b   : > { %s11079_s25 = smov %s11075_s7 }
 0x39c   :  { %4804 = vsyncpa [#allocation3], 1 }
 0x39d   :  { %4806 = vsyncpa [#allocation3 + $0x1], 1 }
 0x39e   :  { %4807 = vsyncpa [#allocation10], 1 }
 0x39f   :  { %4809 = vsyncpa [#allocation10 + $0x1], 1 }
 0x3a0   :  { %4810 = vsyncpa [#allocation13], 1 }
 0x3a1   :  { %4811 = vsyncpa [#allocation4], 1 }
 0x3a2   :  { %4813 = vsyncpa [#allocation4 + $0x1], 1 }
 0x3a3   :  { %4814 = vsyncpa [#allocation5], 1 }
 0x3a4   :  { %4816 = vsyncpa [#allocation5 + $0x1], 1 }
 0x3a5   :  { %4817 = vsyncpa [#allocation6], 1 }
 0x3a6   :  { %4819 = vsyncpa [#allocation6 + $0x1], 1 }

</bundles_post_ra>
